<compile_context>
chip_gen: v5e
topology: v5e:2x2
jax: 0.10.0
libtpu: 0.0.40
codegen_flags: <defaults>
</compile_context>

<pallas_src>
import functools

import jax
import jax.numpy as jnp
from jax import lax
from jax.experimental import pallas as pl
from jax.experimental.pallas import tpu as pltpu


def _layer_norm(x, g, b, eps=1e-5):
    mu = jnp.mean(x, axis=-1, keepdims=True)
    var = jnp.mean((x - mu) ** 2, axis=-1, keepdims=True)
    return (x - mu) * lax.rsqrt(var + eps) * g + b


def fused_forward_kernel(x_ref, conv_w_ref, conv_b_ref,
                         wih0_ref, whh0_ref, lb0_ref,
                         wih1_ref, whh1_ref, lb1_ref,
                         perm_ref, head_pool_ref, sel_last_ref,
                         wqkv_ref, bqkv_ref, wo_ref, bo_ref,
                         w1_ref, fb1_ref, w2_ref, fb2_ref,
                         g1_ref, be1_ref, g2_ref, be2_ref,
                         hw_ref, hb_ref,
                         out_ref,
                         act_ref, h1_seq_ref, h2_seq_ref,
                         *, S, B, H, d_ff, ffn_chunk):
    f32 = jnp.float32
    bf16 = jnp.bfloat16
    n_rows = S * B
    li = pl.program_id(0)

    # ------------- grid step 0: Conv1d(k=3, pad=1)+ReLU and 2-layer LSTM ---------------
    @pl.when(li == 0)
    def _prologue():
        conv = jnp.dot(x_ref[...].astype(bf16), conv_w_ref[...],
                       preferred_element_type=f32) + conv_b_ref[...]
        conv = jnp.maximum(conv, 0.0)               # (S*B, H), time-major rows (t*B + b)

        lane = lax.broadcasted_iota(jnp.int32, (B, 2 * H), 1)
        low_half = lane < H

        def lstm_layer(x2d, wihT, whhT, bias, seq_ref):
            # x2d: (S*B, Din) f32; wihT: (Din, 4H) bf16 with gate cols packed [i|g|f|o];
            # whhT: (2H, 4H) bf16; recurrent state lane-duplicated as [h|h], [c|c] so no
            # 64-wide lane slices happen in the hot loop.  x@W_ih + bias hoisted out.
            xg = jnp.dot(x2d.astype(bf16), wihT, preferred_element_type=f32) + bias
            h_dup = jnp.zeros((B, 2 * H), f32)
            c_dup = jnp.zeros((B, 2 * H), f32)
            for t in range(S):                      # static unroll; fine at S=8
                z = xg[t * B:(t + 1) * B, :] + jnp.dot(
                    h_dup.astype(bf16), whhT, preferred_element_type=f32)
                z_ig = z[:, 0:2 * H]                # 128-aligned slice: [i | g]
                z_fo = z[:, 2 * H:4 * H]            # 128-aligned slice: [f | o]
                act_ig = jnp.where(low_half, jax.nn.sigmoid(z_ig), jnp.tanh(z_ig))
                act_fo = jax.nn.sigmoid(z_fo)
                ig_prod = act_ig * pltpu.roll(act_ig, H, axis=1)  # dup(sig(i)*tanh(g))
                fo_roll = pltpu.roll(act_fo, H, axis=1)
                f_dup = jnp.where(low_half, act_fo, fo_roll)      # [f | f]
                o_dup = jnp.where(low_half, fo_roll, act_fo)      # [o | o]
                c_dup = f_dup * c_dup + ig_prod
                h_dup = o_dup * jnp.tanh(c_dup)
                seq_ref[t * B:(t + 1) * B, :] = h_dup             # scratch write, no concat
            # TODO(synk): jnp.dot re-stages whhT into the MXU every step; explicit
            # pltpu.matmul_push_rhs/acc_lhs residency is left for a follow-up.

        lstm_layer(conv, wih0_ref[...], whh0_ref[...], lb0_ref[...], h1_seq_ref)
        lstm_layer(h1_seq_ref[...], wih1_ref[...], whh1_ref[...], lb1_ref[...], h2_seq_ref)
        lstm_out = h2_seq_ref[:, 0:H]               # single 64-lane slice, outside loops

        # time-major (t*B+b) -> batch-major (b*S+t) via one bf16 0/1 permutation matmul
        act_ref[...] = jnp.dot(perm_ref[...], lstm_out.astype(bf16),
                               preferred_element_type=f32)

    # --------------- transformer encoder layer `li` (runs every grid step) -------------
    # Rows are batch-major (b*S+t); PyTorch batch_first=False semantics: attended axis
    # L = B, attention batch N = S.
    src = act_ref[...]                                                       # (B*S, H) f32
    src_b = src.astype(bf16)
    qkv = jnp.dot(src_b, wqkv_ref[...], preferred_element_type=f32) + bqkv_ref[...]
    q2 = qkv[:, 0:H]
    k2 = qkv[:, H:2 * H]
    v2 = qkv[:, 2 * H:3 * H]
    qb = [q2[l * S:(l + 1) * S] for l in range(B)]      # tile-aligned (S, H) row blocks
    kb = [k2[m * S:(m + 1) * S] for m in range(B)]
    vb = [v2[m * S:(m + 1) * S] for m in range(B)]
    prods = jnp.concatenate([qb[l] * kb[m] for l in range(B) for m in range(B)],
                            axis=0)                                          # (B*B*S, H)
    # ONE dot: per-head scores (scale folded into head_pool), replicated over head lanes
    s_all = jnp.dot(prods.astype(bf16), head_pool_ref[...], preferred_element_type=f32)
    s_blk = [[s_all[(l * B + m) * S:(l * B + m + 1) * S] for m in range(B)]
             for l in range(B)]
    ctx_blocks = []
    for l in range(B):                              # softmax over attended axis (size B)
        mx = s_blk[l][0]
        for m in range(1, B):
            mx = jnp.maximum(mx, s_blk[l][m])
        es = [jnp.exp(s_blk[l][m] - mx) for m in range(B)]
        den = es[0]
        for m in range(1, B):
            den = den + es[m]
        inv = 1.0 / den
        acc = (es[0] * inv) * vb[0]
        for m in range(1, B):
            acc = acc + (es[m] * inv) * vb[m]
        ctx_blocks.append(acc)
    ctx = jnp.concatenate(ctx_blocks, axis=0)                                # (B*S, H)
    attn = jnp.dot(ctx.astype(bf16), wo_ref[...],
                   preferred_element_type=f32) + bo_ref[...]
    x1 = _layer_norm(src + attn, g1_ref[...], be1_ref[...])                  # post-norm
    # chunked FFN: keeps the live (B*S, d_ff) intermediate small and pipelines the dots
    x1_b = x1.astype(bf16)
    ff = jnp.zeros((n_rows, H), f32)
    for c0 in range(0, d_ff, ffn_chunk):
        h_c = jnp.dot(x1_b, w1_ref[:, c0:c0 + ffn_chunk],
                      preferred_element_type=f32) + fb1_ref[:, c0:c0 + ffn_chunk]
        h_c = jnp.maximum(h_c, 0.0)
        ff = ff + jnp.dot(h_c.astype(bf16), w2_ref[c0:c0 + ffn_chunk, :],
                          preferred_element_type=f32)
    ff = ff + fb2_ref[...]
    act_ref[...] = _layer_norm(x1 + ff, g2_ref[...], be2_ref[...])

    # ------------- last grid step: select last row per batch + fused heads -------------
    @pl.when(li == pl.num_programs(0) - 1)
    def _epilogue():
        final = jnp.dot(sel_last_ref[...], act_ref[...].astype(bf16),
                        preferred_element_type=f32)                          # (B, H)
        ho = jnp.dot(final.astype(bf16), hw_ref[...],
                     preferred_element_type=f32) + hb_ref[...]               # (B, 2)
        softplus = jnp.where(ho > 20.0, ho, jnp.log1p(jnp.exp(jnp.minimum(ho, 20.0))))
        col = lax.broadcasted_iota(jnp.int32, (B, 2), 1)
        out_ref[...] = jnp.where(col == 0, jax.nn.sigmoid(ho), softplus)


# --------------------------------------------------------------------------------------
# Full forward pass: one pallas_call, grid over transformer layers
# --------------------------------------------------------------------------------------
def forward(x, params, *, nhead=4):
    B, S, C = x.shape
    H = params["conv_b"].shape[-1]
    n_rows = S * B
    num_tl = params["wqkv"].shape[0]
    d_ff = params["w1"].shape[-1]
    hd = H // nhead
    bf16 = jnp.bfloat16
    ffn_chunk = min(512, d_ff)
    assert d_ff % ffn_chunk == 0

    # im2col for the k=3, pad=1 conv, time-major rows (t*B + b)
    x_tm = jnp.transpose(x, (1, 0, 2))                     # (S, B, C)
    x_pad = jnp.pad(x_tm, ((1, 1), (0, 0), (0, 0)))
    x_im2col = jnp.concatenate([x_pad[k:k + S] for k in range(3)],
                               axis=-1).reshape(S * B, 3 * C)

    # exact bf16 constants built once at trace time (0/1 and 0/scale matrices)
    old = jnp.arange(n_rows)
    perm = (jnp.arange(n_rows)[:, None]
            == ((old % B) * S + old // B)[None, :]).astype(bf16)             # (SB, SB)
    scale = 1.0 / float(hd) ** 0.5
    head_pool = jnp.where((jnp.arange(H)[:, None] // hd)
                          == (jnp.arange(H)[None, :] // hd), scale, 0.0).astype(bf16)
    sel_last = (jnp.arange(n_rows)[None, :]
                == (jnp.arange(B)[:, None] * S + (S - 1))).astype(bf16)      # (B, SB)

    def whole(arr):
        nd = arr.ndim
        return pl.BlockSpec(tuple(arr.shape), lambda li, _nd=nd: (0,) * _nd)

    def per_layer(arr):
        nd = arr.ndim - 1
        return pl.BlockSpec((None,) + tuple(arr.shape[1:]),
                            lambda li, _nd=nd: (li,) + (0,) * _nd)

    args = (x_im2col, params["conv_w"], params["conv_b"],
            params["lstm_wih0"], params["lstm_whh0"], params["lstm_b0"],
            params["lstm_wih1"], params["lstm_whh1"], params["lstm_b1"],
            perm, head_pool, sel_last,
            params["wqkv"], params["bqkv"], params["wo"], params["bo"],
            params["w1"], params["fb1"], params["w2"], params["fb2"],
            params["g1"], params["be1"], params["g2"], params["be2"],
            params["head_w"], params["head_b"])
    in_specs = ([whole(a) for a in args[:12]]
                + [per_layer(a) for a in args[12:24]]
                + [whole(a) for a in args[24:]])

    kern = functools.partial(fused_forward_kernel, S=S, B=B, H=H,
                             d_ff=d_ff, ffn_chunk=ffn_chunk)
    out = pl.pallas_call(
        kern,
        out_shape=jax.ShapeDtypeStruct((B, 2), jnp.float32),
        grid_spec=pltpu.PrefetchScalarGridSpec(
            num_scalar_prefetch=0,
            grid=(num_tl,),
            in_specs=in_specs,
            out_specs=pl.BlockSpec((B, 2), lambda li: (0, 0)),
            scratch_shapes=[pltpu.VMEM((n_rows, H), jnp.float32),       # activation carry
                            pltpu.VMEM((n_rows, 2 * H), jnp.float32),   # LSTM layer-0 seq
                            pltpu.VMEM((n_rows, 2 * H), jnp.float32)]), # LSTM layer-1 seq
        compiler_params=pltpu.CompilerParams(dimension_semantics=("arbitrary",)),
    )(*args)
    return out[:, 0:1], out[:, 1:2]                        # (mean, std) like the module


# --------------------------------------------------------------------------------------
# Deterministic parameter init + packing (shapes from the PyTorch __init__)
# --------------------------------------------------------------------------------------
def init_params(key, input_size=12, hidden=64, num_layers=2, d_ff=2048):
    keys = iter(jax.random.split(key, 64))
    bf16 = jnp.bfloat16
    H = hidden

    def nrm(shape, scale=0.1):
        return scale * jax.random.normal(next(keys), shape, dtype=jnp.float32)

    p = {}
    # Conv1d(input_size, H, kernel_size=3): PyTorch (H, Cin, 3) -> im2col layout (3*Cin, H)
    conv_w = nrm((H, input_size, 3))
    p["conv_w"] = jnp.transpose(conv_w, (2, 1, 0)).reshape(3 * input_size, H).astype(bf16)
    p["conv_b"] = nrm((1, H), 0.05)

    # LSTM(H, H, num_layers=2): PyTorch gate row order [i, f, g, o] -> packed [i, g, f, o]
    def reorder(w):
        return jnp.concatenate([w[0:H], w[2 * H:3 * H], w[H:2 * H], w[3 * H:4 * H]], axis=0)

    zeros = jnp.zeros((H, 4 * H), jnp.float32)
    for layer in range(num_layers):
        w_ih = nrm((4 * H, H))
        w_hh = nrm((4 * H, H))
        b_ih = nrm((4 * H,), 0.05)
        b_hh = nrm((4 * H,), 0.05)
        wihT = jnp.transpose(reorder(w_ih))                               # (H, 4H)
        whhT = jnp.concatenate([jnp.transpose(reorder(w_hh)), zeros], axis=0)  # (2H, 4H)
        if layer > 0:                                      # layer>0 consumes [h|h] input
            wihT = jnp.concatenate([wihT, zeros], axis=0)                 # (2H, 4H)
        p[f"lstm_wih{layer}"] = wihT.astype(bf16)
        p[f"lstm_whh{layer}"] = whhT.astype(bf16)
        p[f"lstm_b{layer}"] = reorder(b_ih + b_hh).reshape(1, 4 * H)

    # 2 x TransformerEncoderLayer(d_model=H, nhead=4, dim_feedforward=2048), stacked.
    wqkv, bqkv, wo, bo = [], [], [], []
    w1, fb1, w2, fb2, g1, be1, g2, be2 = [], [], [], [], [], [], [], []
    for _ in range(num_layers):
        in_w = nrm((3 * H, H))                             # in_proj_weight rows [q; k; v]
        in_b = nrm((3 * H,), 0.05)
        wqkv.append(jnp.transpose(in_w).astype(bf16))      # (H, 3H), cols [q | k | v]
        bqkv.append(in_b.reshape(1, 3 * H))
        wo.append(jnp.transpose(nrm((H, H))).astype(bf16))
        bo.append(nrm((1, H), 0.05))
        w1.append(jnp.transpose(nrm((d_ff, H), 0.05)).astype(bf16))       # (H, d_ff)
        fb1.append(nrm((1, d_ff), 0.05))
        w2.append(jnp.transpose(nrm((H, d_ff), 0.05)).astype(bf16))       # (d_ff, H)
        fb2.append(nrm((1, H), 0.05))
        g1.append(jnp.ones((1, H), jnp.float32))
        be1.append(jnp.zeros((1, H), jnp.float32))
        g2.append(jnp.ones((1, H), jnp.float32))
        be2.append(jnp.zeros((1, H), jnp.float32))
    for name, lst in (("wqkv", wqkv), ("bqkv", bqkv), ("wo", wo), ("bo", bo),
                      ("w1", w1), ("fb1", fb1), ("w2", w2), ("fb2", fb2),
                      ("g1", g1), ("be1", be1), ("g2", g2), ("be2", be2)):
        p[name] = jnp.stack(lst)

    # fc_mean / fc_std: Linear(H, 1) each, packed into one (H, 2) bf16 matrix + (1, 2) bias
    wm = jnp.transpose(nrm((1, H)))
    ws = jnp.transpose(nrm((1, H)))
    p["head_w"] = jnp.concatenate([wm, ws], axis=1).astype(bf16)
    p["head_b"] = jnp.concatenate([nrm((1, 1), 0.05), nrm((1, 1), 0.05)], axis=1)
    return p


if __name__ == "__main__":
    key = jax.random.PRNGKey(0)
    kx, kp = jax.random.split(key)
    B, S, C = 2, 8, 12                       # batch=2, seq=8, input_size=12 (module default)
    x = jax.random.normal(kx, (B, S, C), dtype=jnp.float32)
    params = init_params(kp)

    fwd = jax.jit(forward)
    mean, std = fwd(x, params)
    jax.block_until_ready((mean, std))

    assert mean.shape == (B, 1) and std.shape == (B, 1)
    assert bool(jnp.all(jnp.isfinite(mean))) and bool(jnp.all(jnp.isfinite(std)))
    assert bool(jnp.all(std >= 0.0))
    assert bool(jnp.all((mean >= 0.0) & (mean <= 1.0)))
    print("KERNEL_OK")
</pallas_src>

<mosaic_0001>
module attributes {stable_mosaic.version = 11 : i64} {
  func.func @fused_forward_kernel(%arg0: i32, %arg1: memref<16x36xf32, #tpu.memory_space<vmem>>, %arg2: memref<36x64xbf16, #tpu.memory_space<vmem>>, %arg3: memref<1x64xf32, #tpu.memory_space<vmem>>, %arg4: memref<64x256xbf16, #tpu.memory_space<vmem>>, %arg5: memref<128x256xbf16, #tpu.memory_space<vmem>>, %arg6: memref<1x256xf32, #tpu.memory_space<vmem>>, %arg7: memref<128x256xbf16, #tpu.memory_space<vmem>>, %arg8: memref<128x256xbf16, #tpu.memory_space<vmem>>, %arg9: memref<1x256xf32, #tpu.memory_space<vmem>>, %arg10: memref<16x16xbf16, #tpu.memory_space<vmem>>, %arg11: memref<64x64xbf16, #tpu.memory_space<vmem>>, %arg12: memref<2x16xbf16, #tpu.memory_space<vmem>>, %arg13: memref<1x64x192xbf16, #tpu.memory_space<vmem>>, %arg14: memref<1x1x192xf32, #tpu.memory_space<vmem>>, %arg15: memref<1x64x64xbf16, #tpu.memory_space<vmem>>, %arg16: memref<1x1x64xf32, #tpu.memory_space<vmem>>, %arg17: memref<1x64x2048xbf16, #tpu.memory_space<vmem>>, %arg18: memref<1x1x2048xf32, #tpu.memory_space<vmem>>, %arg19: memref<1x2048x64xbf16, #tpu.memory_space<vmem>>, %arg20: memref<1x1x64xf32, #tpu.memory_space<vmem>>, %arg21: memref<1x1x64xf32, #tpu.memory_space<vmem>>, %arg22: memref<1x1x64xf32, #tpu.memory_space<vmem>>, %arg23: memref<1x1x64xf32, #tpu.memory_space<vmem>>, %arg24: memref<1x1x64xf32, #tpu.memory_space<vmem>>, %arg25: memref<64x2xbf16, #tpu.memory_space<vmem>>, %arg26: memref<1x2xf32, #tpu.memory_space<vmem>>, %arg27: memref<2x2xf32, #tpu.memory_space<vmem>>, %arg28: memref<16x64xf32, #tpu.memory_space<vmem>>, %arg29: memref<16x128xf32, #tpu.memory_space<vmem>>, %arg30: memref<16x128xf32, #tpu.memory_space<vmem>>) attributes {dimension_semantics = [#tpu.dimension_semantics<arbitrary>], iteration_bounds = array<i64: 2>, scalar_prefetch = 0 : i64, scratch_operands = 3 : i64, tpu.core_type = #tpu.core_type<tc>, window_params = [{pipeline_mode = #tpu.pipeline_mode<synchronous>, transform_indices = @transform_0, window_bounds = array<i64: 16, 36>}, {pipeline_mode = #tpu.pipeline_mode<synchronous>, transform_indices = @transform_1, window_bounds = array<i64: 36, 64>}, {pipeline_mode = #tpu.pipeline_mode<synchronous>, transform_indices = @transform_2, window_bounds = array<i64: 1, 64>}, {pipeline_mode = #tpu.pipeline_mode<synchronous>, transform_indices = @transform_3, window_bounds = array<i64: 64, 256>}, {pipeline_mode = #tpu.pipeline_mode<synchronous>, transform_indices = @transform_4, window_bounds = array<i64: 128, 256>}, {pipeline_mode = #tpu.pipeline_mode<synchronous>, transform_indices = @transform_5, window_bounds = array<i64: 1, 256>}, {pipeline_mode = #tpu.pipeline_mode<synchronous>, transform_indices = @transform_6, window_bounds = array<i64: 128, 256>}, {pipeline_mode = #tpu.pipeline_mode<synchronous>, transform_indices = @transform_7, window_bounds = array<i64: 128, 256>}, {pipeline_mode = #tpu.pipeline_mode<synchronous>, transform_indices = @transform_8, window_bounds = array<i64: 1, 256>}, {pipeline_mode = #tpu.pipeline_mode<synchronous>, transform_indices = @transform_9, window_bounds = array<i64: 16, 16>}, {pipeline_mode = #tpu.pipeline_mode<synchronous>, transform_indices = @transform_10, window_bounds = array<i64: 64, 64>}, {pipeline_mode = #tpu.pipeline_mode<synchronous>, transform_indices = @transform_11, window_bounds = array<i64: 2, 16>}, {transform_indices = @transform_12, window_bounds = array<i64: 1, 64, 192>}, {transform_indices = @transform_13, window_bounds = array<i64: 1, 1, 192>}, {transform_indices = @transform_14, window_bounds = array<i64: 1, 64, 64>}, {transform_indices = @transform_15, window_bounds = array<i64: 1, 1, 64>}, {transform_indices = @transform_16, window_bounds = array<i64: 1, 64, 2048>}, {transform_indices = @transform_17, window_bounds = array<i64: 1, 1, 2048>}, {transform_indices = @transform_18, window_bounds = array<i64: 1, 2048, 64>}, {transform_indices = @transform_19, window_bounds = array<i64: 1, 1, 64>}, {transform_indices = @transform_20, window_bounds = array<i64: 1, 1, 64>}, {transform_indices = @transform_21, window_bounds = array<i64: 1, 1, 64>}, {transform_indices = @transform_22, window_bounds = array<i64: 1, 1, 64>}, {transform_indices = @transform_23, window_bounds = array<i64: 1, 1, 64>}, {pipeline_mode = #tpu.pipeline_mode<synchronous>, transform_indices = @transform_24, window_bounds = array<i64: 64, 2>}, {pipeline_mode = #tpu.pipeline_mode<synchronous>, transform_indices = @transform_25, window_bounds = array<i64: 1, 2>}, {pipeline_mode = #tpu.pipeline_mode<synchronous>, transform_indices = @transform_26, window_bounds = array<i64: 2, 2>}]} {
    %c0_i32 = arith.constant 0 : i32
    %0 = arith.cmpi eq, %arg0, %c0_i32 : i32
    %1 = arith.extui %0 : i1 to i32
    %c0_i32_0 = arith.constant 0 : i32
    %2 = arith.cmpi ne, %1, %c0_i32_0 : i32
    scf.if %2 {
      %c0_94 = arith.constant 0 : index
      %c0_95 = arith.constant 0 : index
      %188 = vector.load %arg1[%c0_94, %c0_95] : memref<16x36xf32, #tpu.memory_space<vmem>>, vector<16x36xf32>
      %189 = arith.truncf %188 : vector<16x36xf32> to vector<16x36xbf16>
      %c0_96 = arith.constant 0 : index
      %c0_97 = arith.constant 0 : index
      %190 = vector.load %arg2[%c0_96, %c0_97] : memref<36x64xbf16, #tpu.memory_space<vmem>>, vector<36x64xbf16>
      %cst_98 = arith.constant dense<0.000000e+00> : vector<16x64xf32>
      %191 = tpu.matmul %189, %190, %cst_98 {dimension_numbers = #tpu.dot_dimension_numbers<[1], [0], [0], [1], [0, 0, 1, 1], [], []>} : vector<16x36xbf16>, vector<36x64xbf16>, vector<16x64xf32> -> vector<16x64xf32>
      %c0_99 = arith.constant 0 : index
      %c0_100 = arith.constant 0 : index
      %192 = vector.load %arg3[%c0_99, %c0_100] : memref<1x64xf32, #tpu.memory_space<vmem>>, vector<1x64xf32>
      %193 = vector.broadcast %192 : vector<1x64xf32> to vector<16x64xf32>
      %194 = arith.addf %191, %193 : vector<16x64xf32>
      %cst_101 = arith.constant 0.000000e+00 : f32
      %195 = vector.broadcast %cst_101 : f32 to vector<16x64xf32>
      %196 = arith.maximumf %194, %195 : vector<16x64xf32>
      %197 = tpu.iota {dimensions = array<i32: 1>} : vector<2x128xi32>
      %c64_i32 = arith.constant 64 : i32
      %198 = vector.broadcast %c64_i32 : i32 to vector<2x128xi32>
      %199 = arith.cmpi slt, %197, %198 : vector<2x128xi32>
      %c0_102 = arith.constant 0 : index
      %c0_103 = arith.constant 0 : index
      %200 = vector.load %arg4[%c0_102, %c0_103] : memref<64x256xbf16, #tpu.memory_space<vmem>>, vector<64x256xbf16>
      %c0_104 = arith.constant 0 : index
      %c0_105 = arith.constant 0 : index
      %201 = vector.load %arg5[%c0_104, %c0_105] : memref<128x256xbf16, #tpu.memory_space<vmem>>, vector<128x256xbf16>
      %c0_106 = arith.constant 0 : index
      %c0_107 = arith.constant 0 : index
      %202 = vector.load %arg6[%c0_106, %c0_107] : memref<1x256xf32, #tpu.memory_space<vmem>>, vector<1x256xf32>
      %203 = arith.truncf %196 : vector<16x64xf32> to vector<16x64xbf16>
      %cst_108 = arith.constant dense<0.000000e+00> : vector<16x256xf32>
      %204 = tpu.matmul %203, %200, %cst_108 {dimension_numbers = #tpu.dot_dimension_numbers<[1], [0], [0], [1], [0, 0, 1, 1], [], []>} : vector<16x64xbf16>, vector<64x256xbf16>, vector<16x256xf32> -> vector<16x256xf32>
      %205 = vector.broadcast %202 : vector<1x256xf32> to vector<16x256xf32>
      %206 = arith.addf %204, %205 : vector<16x256xf32>
      %cst_109 = arith.constant 0.000000e+00 : f32
      %207 = vector.broadcast %cst_109 : f32 to vector<2x128xf32>
      %cst_110 = arith.constant 0.000000e+00 : f32
      %208 = vector.broadcast %cst_110 : f32 to vector<2x128xf32>
      %209 = vector.extract_strided_slice %206 {offsets = [0, 0], sizes = [2, 256], strides = [1, 1]} : vector<16x256xf32> to vector<2x256xf32>
      %210 = arith.truncf %207 : vector<2x128xf32> to vector<2x128xbf16>
      %cst_111 = arith.constant dense<0.000000e+00> : vector<2x256xf32>
      %211 = tpu.matmul %210, %201, %cst_111 {dimension_numbers = #tpu.dot_dimension_numbers<[1], [0], [0], [1], [0, 0, 1, 1], [], []>} : vector<2x128xbf16>, vector<128x256xbf16>, vector<2x256xf32> -> vector<2x256xf32>
      %212 = arith.addf %209, %211 : vector<2x256xf32>
      %213 = vector.extract_strided_slice %212 {offsets = [0, 0], sizes = [2, 128], strides = [1, 1]} : vector<2x256xf32> to vector<2x128xf32>
      %214 = vector.extract_strided_slice %212 {offsets = [0, 128], sizes = [2, 128], strides = [1, 1]} : vector<2x256xf32> to vector<2x128xf32>
      %215 = arith.negf %213 : vector<2x128xf32>
      %216 = math.exp %215 : vector<2x128xf32>
      %cst_112 = arith.constant 1.000000e+00 : f32
      %217 = vector.broadcast %cst_112 : f32 to vector<2x128xf32>
      %218 = arith.addf %217, %216 : vector<2x128xf32>
      %219 = arith.divf %217, %218 : vector<2x128xf32>
      %220 = math.tanh %213 : vector<2x128xf32>
      %221 = arith.select %199, %219, %220 : vector<2x128xi1>, vector<2x128xf32>
      %222 = arith.negf %214 : vector<2x128xf32>
      %223 = math.exp %222 : vector<2x128xf32>
      %cst_113 = arith.constant 1.000000e+00 : f32
      %224 = vector.broadcast %cst_113 : f32 to vector<2x128xf32>
      %225 = arith.addf %224, %223 : vector<2x128xf32>
      %226 = arith.divf %224, %225 : vector<2x128xf32>
      %c64_i32_114 = arith.constant 64 : i32
      %227 = tpu.dynamic_rotate %221 by %c64_i32_114 dim 1 : vector<2x128xf32>, i32 -> vector<2x128xf32>
      %228 = arith.mulf %221, %227 : vector<2x128xf32>
      %c64_i32_115 = arith.constant 64 : i32
      %229 = tpu.dynamic_rotate %226 by %c64_i32_115 dim 1 : vector<2x128xf32>, i32 -> vector<2x128xf32>
      %230 = arith.select %199, %226, %229 : vector<2x128xi1>, vector<2x128xf32>
      %231 = arith.select %199, %229, %226 : vector<2x128xi1>, vector<2x128xf32>
      %232 = arith.mulf %230, %208 : vector<2x128xf32>
      %233 = arith.addf %232, %228 : vector<2x128xf32>
      %234 = math.tanh %233 : vector<2x128xf32>
      %235 = arith.mulf %231, %234 : vector<2x128xf32>
      %c0_116 = arith.constant 0 : index
      %c0_117 = arith.constant 0 : index
      %236 = vector.load %arg29[%c0_116, %c0_117] : memref<16x128xf32, #tpu.memory_space<vmem>>, vector<2x128xf32>
      tpu.vector_store %arg29[%c0_116, %c0_117], %235 {strides = array<i32>} : memref<16x128xf32, #tpu.memory_space<vmem>>, vector<2x128xf32>,
      %237 = vector.extract_strided_slice %206 {offsets = [2, 0], sizes = [2, 256], strides = [1, 1]} : vector<16x256xf32> to vector<2x256xf32>
      %238 = arith.truncf %235 : vector<2x128xf32> to vector<2x128xbf16>
      %cst_118 = arith.constant dense<0.000000e+00> : vector<2x256xf32>
      %239 = tpu.matmul %238, %201, %cst_118 {dimension_numbers = #tpu.dot_dimension_numbers<[1], [0], [0], [1], [0, 0, 1, 1], [], []>} : vector<2x128xbf16>, vector<128x256xbf16>, vector<2x256xf32> -> vector<2x256xf32>
      %240 = arith.addf %237, %239 : vector<2x256xf32>
      %241 = vector.extract_strided_slice %240 {offsets = [0, 0], sizes = [2, 128], strides = [1, 1]} : vector<2x256xf32> to vector<2x128xf32>
      %242 = vector.extract_strided_slice %240 {offsets = [0, 128], sizes = [2, 128], strides = [1, 1]} : vector<2x256xf32> to vector<2x128xf32>
      %243 = arith.negf %241 : vector<2x128xf32>
      %244 = math.exp %243 : vector<2x128xf32>
      %cst_119 = arith.constant 1.000000e+00 : f32
      %245 = vector.broadcast %cst_119 : f32 to vector<2x128xf32>
      %246 = arith.addf %245, %244 : vector<2x128xf32>
      %247 = arith.divf %245, %246 : vector<2x128xf32>
      %248 = math.tanh %241 : vector<2x128xf32>
      %249 = arith.select %199, %247, %248 : vector<2x128xi1>, vector<2x128xf32>
      %250 = arith.negf %242 : vector<2x128xf32>
      %251 = math.exp %250 : vector<2x128xf32>
      %cst_120 = arith.constant 1.000000e+00 : f32
      %252 = vector.broadcast %cst_120 : f32 to vector<2x128xf32>
      %253 = arith.addf %252, %251 : vector<2x128xf32>
      %254 = arith.divf %252, %253 : vector<2x128xf32>
      %c64_i32_121 = arith.constant 64 : i32
      %255 = tpu.dynamic_rotate %249 by %c64_i32_121 dim 1 : vector<2x128xf32>, i32 -> vector<2x128xf32>
      %256 = arith.mulf %249, %255 : vector<2x128xf32>
      %c64_i32_122 = arith.constant 64 : i32
      %257 = tpu.dynamic_rotate %254 by %c64_i32_122 dim 1 : vector<2x128xf32>, i32 -> vector<2x128xf32>
      %258 = arith.select %199, %254, %257 : vector<2x128xi1>, vector<2x128xf32>
      %259 = arith.select %199, %257, %254 : vector<2x128xi1>, vector<2x128xf32>
      %260 = arith.mulf %258, %233 : vector<2x128xf32>
      %261 = arith.addf %260, %256 : vector<2x128xf32>
      %262 = math.tanh %261 : vector<2x128xf32>
      %263 = arith.mulf %259, %262 : vector<2x128xf32>
      %c2 = arith.constant 2 : index
      %c0_123 = arith.constant 0 : index
      %264 = vector.load %arg29[%c2, %c0_123] : memref<16x128xf32, #tpu.memory_space<vmem>>, vector<2x128xf32>
      tpu.vector_store %arg29[%c2, %c0_123], %263 {strides = array<i32>} : memref<16x128xf32, #tpu.memory_space<vmem>>, vector<2x128xf32>,
      %265 = vector.extract_strided_slice %206 {offsets = [4, 0], sizes = [2, 256], strides = [1, 1]} : vector<16x256xf32> to vector<2x256xf32>
      %266 = arith.truncf %263 : vector<2x128xf32> to vector<2x128xbf16>
      %cst_124 = arith.constant dense<0.000000e+00> : vector<2x256xf32>
      %267 = tpu.matmul %266, %201, %cst_124 {dimension_numbers = #tpu.dot_dimension_numbers<[1], [0], [0], [1], [0, 0, 1, 1], [], []>} : vector<2x128xbf16>, vector<128x256xbf16>, vector<2x256xf32> -> vector<2x256xf32>
      %268 = arith.addf %265, %267 : vector<2x256xf32>
      %269 = vector.extract_strided_slice %268 {offsets = [0, 0], sizes = [2, 128], strides = [1, 1]} : vector<2x256xf32> to vector<2x128xf32>
      %270 = vector.extract_strided_slice %268 {offsets = [0, 128], sizes = [2, 128], strides = [1, 1]} : vector<2x256xf32> to vector<2x128xf32>
      %271 = arith.negf %269 : vector<2x128xf32>
      %272 = math.exp %271 : vector<2x128xf32>
      %cst_125 = arith.constant 1.000000e+00 : f32
      %273 = vector.broadcast %cst_125 : f32 to vector<2x128xf32>
      %274 = arith.addf %273, %272 : vector<2x128xf32>
      %275 = arith.divf %273, %274 : vector<2x128xf32>
      %276 = math.tanh %269 : vector<2x128xf32>
      %277 = arith.select %199, %275, %276 : vector<2x128xi1>, vector<2x128xf32>
      %278 = arith.negf %270 : vector<2x128xf32>
      %279 = math.exp %278 : vector<2x128xf32>
      %cst_126 = arith.constant 1.000000e+00 : f32
      %280 = vector.broadcast %cst_126 : f32 to vector<2x128xf32>
      %281 = arith.addf %280, %279 : vector<2x128xf32>
      %282 = arith.divf %280, %281 : vector<2x128xf32>
      %c64_i32_127 = arith.constant 64 : i32
      %283 = tpu.dynamic_rotate %277 by %c64_i32_127 dim 1 : vector<2x128xf32>, i32 -> vector<2x128xf32>
      %284 = arith.mulf %277, %283 : vector<2x128xf32>
      %c64_i32_128 = arith.constant 64 : i32
      %285 = tpu.dynamic_rotate %282 by %c64_i32_128 dim 1 : vector<2x128xf32>, i32 -> vector<2x128xf32>
      %286 = arith.select %199, %282, %285 : vector<2x128xi1>, vector<2x128xf32>
      %287 = arith.select %199, %285, %282 : vector<2x128xi1>, vector<2x128xf32>
      %288 = arith.mulf %286, %261 : vector<2x128xf32>
      %289 = arith.addf %288, %284 : vector<2x128xf32>
      %290 = math.tanh %289 : vector<2x128xf32>
      %291 = arith.mulf %287, %290 : vector<2x128xf32>
      %c4 = arith.constant 4 : index
      %c0_129 = arith.constant 0 : index
      %292 = vector.load %arg29[%c4, %c0_129] : memref<16x128xf32, #tpu.memory_space<vmem>>, vector<2x128xf32>
      tpu.vector_store %arg29[%c4, %c0_129], %291 {strides = array<i32>} : memref<16x128xf32, #tpu.memory_space<vmem>>, vector<2x128xf32>,
      %293 = vector.extract_strided_slice %206 {offsets = [6, 0], sizes = [2, 256], strides = [1, 1]} : vector<16x256xf32> to vector<2x256xf32>
      %294 = arith.truncf %291 : vector<2x128xf32> to vector<2x128xbf16>
      %cst_130 = arith.constant dense<0.000000e+00> : vector<2x256xf32>
      %295 = tpu.matmul %294, %201, %cst_130 {dimension_numbers = #tpu.dot_dimension_numbers<[1], [0], [0], [1], [0, 0, 1, 1], [], []>} : vector<2x128xbf16>, vector<128x256xbf16>, vector<2x256xf32> -> vector<2x256xf32>
      %296 = arith.addf %293, %295 : vector<2x256xf32>
      %297 = vector.extract_strided_slice %296 {offsets = [0, 0], sizes = [2, 128], strides = [1, 1]} : vector<2x256xf32> to vector<2x128xf32>
      %298 = vector.extract_strided_slice %296 {offsets = [0, 128], sizes = [2, 128], strides = [1, 1]} : vector<2x256xf32> to vector<2x128xf32>
      %299 = arith.negf %297 : vector<2x128xf32>
      %300 = math.exp %299 : vector<2x128xf32>
      %cst_131 = arith.constant 1.000000e+00 : f32
      %301 = vector.broadcast %cst_131 : f32 to vector<2x128xf32>
      %302 = arith.addf %301, %300 : vector<2x128xf32>
      %303 = arith.divf %301, %302 : vector<2x128xf32>
      %304 = math.tanh %297 : vector<2x128xf32>
      %305 = arith.select %199, %303, %304 : vector<2x128xi1>, vector<2x128xf32>
      %306 = arith.negf %298 : vector<2x128xf32>
      %307 = math.exp %306 : vector<2x128xf32>
      %cst_132 = arith.constant 1.000000e+00 : f32
      %308 = vector.broadcast %cst_132 : f32 to vector<2x128xf32>
      %309 = arith.addf %308, %307 : vector<2x128xf32>
      %310 = arith.divf %308, %309 : vector<2x128xf32>
      %c64_i32_133 = arith.constant 64 : i32
      %311 = tpu.dynamic_rotate %305 by %c64_i32_133 dim 1 : vector<2x128xf32>, i32 -> vector<2x128xf32>
      %312 = arith.mulf %305, %311 : vector<2x128xf32>
      %c64_i32_134 = arith.constant 64 : i32
      %313 = tpu.dynamic_rotate %310 by %c64_i32_134 dim 1 : vector<2x128xf32>, i32 -> vector<2x128xf32>
      %314 = arith.select %199, %310, %313 : vector<2x128xi1>, vector<2x128xf32>
      %315 = arith.select %199, %313, %310 : vector<2x128xi1>, vector<2x128xf32>
      %316 = arith.mulf %314, %289 : vector<2x128xf32>
      %317 = arith.addf %316, %312 : vector<2x128xf32>
      %318 = math.tanh %317 : vector<2x128xf32>
      %319 = arith.mulf %315, %318 : vector<2x128xf32>
      %c6 = arith.constant 6 : index
      %c0_135 = arith.constant 0 : index
      %320 = vector.load %arg29[%c6, %c0_135] : memref<16x128xf32, #tpu.memory_space<vmem>>, vector<2x128xf32>
      tpu.vector_store %arg29[%c6, %c0_135], %319 {strides = array<i32>} : memref<16x128xf32, #tpu.memory_space<vmem>>, vector<2x128xf32>,
      %321 = vector.extract_strided_slice %206 {offsets = [8, 0], sizes = [2, 256], strides = [1, 1]} : vector<16x256xf32> to vector<2x256xf32>
      %322 = arith.truncf %319 : vector<2x128xf32> to vector<2x128xbf16>
      %cst_136 = arith.constant dense<0.000000e+00> : vector<2x256xf32>
      %323 = tpu.matmul %322, %201, %cst_136 {dimension_numbers = #tpu.dot_dimension_numbers<[1], [0], [0], [1], [0, 0, 1, 1], [], []>} : vector<2x128xbf16>, vector<128x256xbf16>, vector<2x256xf32> -> vector<2x256xf32>
      %324 = arith.addf %321, %323 : vector<2x256xf32>
      %325 = vector.extract_strided_slice %324 {offsets = [0, 0], sizes = [2, 128], strides = [1, 1]} : vector<2x256xf32> to vector<2x128xf32>
      %326 = vector.extract_strided_slice %324 {offsets = [0, 128], sizes = [2, 128], strides = [1, 1]} : vector<2x256xf32> to vector<2x128xf32>
      %327 = arith.negf %325 : vector<2x128xf32>
      %328 = math.exp %327 : vector<2x128xf32>
      %cst_137 = arith.constant 1.000000e+00 : f32
      %329 = vector.broadcast %cst_137 : f32 to vector<2x128xf32>
      %330 = arith.addf %329, %328 : vector<2x128xf32>
      %331 = arith.divf %329, %330 : vector<2x128xf32>
      %332 = math.tanh %325 : vector<2x128xf32>
      %333 = arith.select %199, %331, %332 : vector<2x128xi1>, vector<2x128xf32>
      %334 = arith.negf %326 : vector<2x128xf32>
      %335 = math.exp %334 : vector<2x128xf32>
      %cst_138 = arith.constant 1.000000e+00 : f32
      %336 = vector.broadcast %cst_138 : f32 to vector<2x128xf32>
      %337 = arith.addf %336, %335 : vector<2x128xf32>
      %338 = arith.divf %336, %337 : vector<2x128xf32>
      %c64_i32_139 = arith.constant 64 : i32
      %339 = tpu.dynamic_rotate %333 by %c64_i32_139 dim 1 : vector<2x128xf32>, i32 -> vector<2x128xf32>
      %340 = arith.mulf %333, %339 : vector<2x128xf32>
      %c64_i32_140 = arith.constant 64 : i32
      %341 = tpu.dynamic_rotate %338 by %c64_i32_140 dim 1 : vector<2x128xf32>, i32 -> vector<2x128xf32>
      %342 = arith.select %199, %338, %341 : vector<2x128xi1>, vector<2x128xf32>
      %343 = arith.select %199, %341, %338 : vector<2x128xi1>, vector<2x128xf32>
      %344 = arith.mulf %342, %317 : vector<2x128xf32>
      %345 = arith.addf %344, %340 : vector<2x128xf32>
      %346 = math.tanh %345 : vector<2x128xf32>
      %347 = arith.mulf %343, %346 : vector<2x128xf32>
      %c8 = arith.constant 8 : index
      %c0_141 = arith.constant 0 : index
      %348 = vector.load %arg29[%c8, %c0_141] : memref<16x128xf32, #tpu.memory_space<vmem>>, vector<2x128xf32>
      tpu.vector_store %arg29[%c8, %c0_141], %347 {strides = array<i32>} : memref<16x128xf32, #tpu.memory_space<vmem>>, vector<2x128xf32>,
      %349 = vector.extract_strided_slice %206 {offsets = [10, 0], sizes = [2, 256], strides = [1, 1]} : vector<16x256xf32> to vector<2x256xf32>
      %350 = arith.truncf %347 : vector<2x128xf32> to vector<2x128xbf16>
      %cst_142 = arith.constant dense<0.000000e+00> : vector<2x256xf32>
      %351 = tpu.matmul %350, %201, %cst_142 {dimension_numbers = #tpu.dot_dimension_numbers<[1], [0], [0], [1], [0, 0, 1, 1], [], []>} : vector<2x128xbf16>, vector<128x256xbf16>, vector<2x256xf32> -> vector<2x256xf32>
      %352 = arith.addf %349, %351 : vector<2x256xf32>
      %353 = vector.extract_strided_slice %352 {offsets = [0, 0], sizes = [2, 128], strides = [1, 1]} : vector<2x256xf32> to vector<2x128xf32>
      %354 = vector.extract_strided_slice %352 {offsets = [0, 128], sizes = [2, 128], strides = [1, 1]} : vector<2x256xf32> to vector<2x128xf32>
      %355 = arith.negf %353 : vector<2x128xf32>
      %356 = math.exp %355 : vector<2x128xf32>
      %cst_143 = arith.constant 1.000000e+00 : f32
      %357 = vector.broadcast %cst_143 : f32 to vector<2x128xf32>
      %358 = arith.addf %357, %356 : vector<2x128xf32>
      %359 = arith.divf %357, %358 : vector<2x128xf32>
      %360 = math.tanh %353 : vector<2x128xf32>
      %361 = arith.select %199, %359, %360 : vector<2x128xi1>, vector<2x128xf32>
      %362 = arith.negf %354 : vector<2x128xf32>
      %363 = math.exp %362 : vector<2x128xf32>
      %cst_144 = arith.constant 1.000000e+00 : f32
      %364 = vector.broadcast %cst_144 : f32 to vector<2x128xf32>
      %365 = arith.addf %364, %363 : vector<2x128xf32>
      %366 = arith.divf %364, %365 : vector<2x128xf32>
      %c64_i32_145 = arith.constant 64 : i32
      %367 = tpu.dynamic_rotate %361 by %c64_i32_145 dim 1 : vector<2x128xf32>, i32 -> vector<2x128xf32>
      %368 = arith.mulf %361, %367 : vector<2x128xf32>
      %c64_i32_146 = arith.constant 64 : i32
      %369 = tpu.dynamic_rotate %366 by %c64_i32_146 dim 1 : vector<2x128xf32>, i32 -> vector<2x128xf32>
      %370 = arith.select %199, %366, %369 : vector<2x128xi1>, vector<2x128xf32>
      %371 = arith.select %199, %369, %366 : vector<2x128xi1>, vector<2x128xf32>
      %372 = arith.mulf %370, %345 : vector<2x128xf32>
      %373 = arith.addf %372, %368 : vector<2x128xf32>
      %374 = math.tanh %373 : vector<2x128xf32>
      %375 = arith.mulf %371, %374 : vector<2x128xf32>
      %c10 = arith.constant 10 : index
      %c0_147 = arith.constant 0 : index
      %376 = vector.load %arg29[%c10, %c0_147] : memref<16x128xf32, #tpu.memory_space<vmem>>, vector<2x128xf32>
      tpu.vector_store %arg29[%c10, %c0_147], %375 {strides = array<i32>} : memref<16x128xf32, #tpu.memory_space<vmem>>, vector<2x128xf32>,
      %377 = vector.extract_strided_slice %206 {offsets = [12, 0], sizes = [2, 256], strides = [1, 1]} : vector<16x256xf32> to vector<2x256xf32>
      %378 = arith.truncf %375 : vector<2x128xf32> to vector<2x128xbf16>
      %cst_148 = arith.constant dense<0.000000e+00> : vector<2x256xf32>
      %379 = tpu.matmul %378, %201, %cst_148 {dimension_numbers = #tpu.dot_dimension_numbers<[1], [0], [0], [1], [0, 0, 1, 1], [], []>} : vector<2x128xbf16>, vector<128x256xbf16>, vector<2x256xf32> -> vector<2x256xf32>
      %380 = arith.addf %377, %379 : vector<2x256xf32>
      %381 = vector.extract_strided_slice %380 {offsets = [0, 0], sizes = [2, 128], strides = [1, 1]} : vector<2x256xf32> to vector<2x128xf32>
      %382 = vector.extract_strided_slice %380 {offsets = [0, 128], sizes = [2, 128], strides = [1, 1]} : vector<2x256xf32> to vector<2x128xf32>
      %383 = arith.negf %381 : vector<2x128xf32>
      %384 = math.exp %383 : vector<2x128xf32>
      %cst_149 = arith.constant 1.000000e+00 : f32
      %385 = vector.broadcast %cst_149 : f32 to vector<2x128xf32>
      %386 = arith.addf %385, %384 : vector<2x128xf32>
      %387 = arith.divf %385, %386 : vector<2x128xf32>
      %388 = math.tanh %381 : vector<2x128xf32>
      %389 = arith.select %199, %387, %388 : vector<2x128xi1>, vector<2x128xf32>
      %390 = arith.negf %382 : vector<2x128xf32>
      %391 = math.exp %390 : vector<2x128xf32>
      %cst_150 = arith.constant 1.000000e+00 : f32
      %392 = vector.broadcast %cst_150 : f32 to vector<2x128xf32>
      %393 = arith.addf %392, %391 : vector<2x128xf32>
      %394 = arith.divf %392, %393 : vector<2x128xf32>
      %c64_i32_151 = arith.constant 64 : i32
      %395 = tpu.dynamic_rotate %389 by %c64_i32_151 dim 1 : vector<2x128xf32>, i32 -> vector<2x128xf32>
      %396 = arith.mulf %389, %395 : vector<2x128xf32>
      %c64_i32_152 = arith.constant 64 : i32
      %397 = tpu.dynamic_rotate %394 by %c64_i32_152 dim 1 : vector<2x128xf32>, i32 -> vector<2x128xf32>
      %398 = arith.select %199, %394, %397 : vector<2x128xi1>, vector<2x128xf32>
      %399 = arith.select %199, %397, %394 : vector<2x128xi1>, vector<2x128xf32>
      %400 = arith.mulf %398, %373 : vector<2x128xf32>
      %401 = arith.addf %400, %396 : vector<2x128xf32>
      %402 = math.tanh %401 : vector<2x128xf32>
      %403 = arith.mulf %399, %402 : vector<2x128xf32>
      %c12 = arith.constant 12 : index
      %c0_153 = arith.constant 0 : index
      %404 = vector.load %arg29[%c12, %c0_153] : memref<16x128xf32, #tpu.memory_space<vmem>>, vector<2x128xf32>
      tpu.vector_store %arg29[%c12, %c0_153], %403 {strides = array<i32>} : memref<16x128xf32, #tpu.memory_space<vmem>>, vector<2x128xf32>,
      %405 = vector.extract_strided_slice %206 {offsets = [14, 0], sizes = [2, 256], strides = [1, 1]} : vector<16x256xf32> to vector<2x256xf32>
      %406 = arith.truncf %403 : vector<2x128xf32> to vector<2x128xbf16>
      %cst_154 = arith.constant dense<0.000000e+00> : vector<2x256xf32>
      %407 = tpu.matmul %406, %201, %cst_154 {dimension_numbers = #tpu.dot_dimension_numbers<[1], [0], [0], [1], [0, 0, 1, 1], [], []>} : vector<2x128xbf16>, vector<128x256xbf16>, vector<2x256xf32> -> vector<2x256xf32>
      %408 = arith.addf %405, %407 : vector<2x256xf32>
      %409 = vector.extract_strided_slice %408 {offsets = [0, 0], sizes = [2, 128], strides = [1, 1]} : vector<2x256xf32> to vector<2x128xf32>
      %410 = vector.extract_strided_slice %408 {offsets = [0, 128], sizes = [2, 128], strides = [1, 1]} : vector<2x256xf32> to vector<2x128xf32>
      %411 = arith.negf %409 : vector<2x128xf32>
      %412 = math.exp %411 : vector<2x128xf32>
      %cst_155 = arith.constant 1.000000e+00 : f32
      %413 = vector.broadcast %cst_155 : f32 to vector<2x128xf32>
      %414 = arith.addf %413, %412 : vector<2x128xf32>
      %415 = arith.divf %413, %414 : vector<2x128xf32>
      %416 = math.tanh %409 : vector<2x128xf32>
      %417 = arith.select %199, %415, %416 : vector<2x128xi1>, vector<2x128xf32>
      %418 = arith.negf %410 : vector<2x128xf32>
      %419 = math.exp %418 : vector<2x128xf32>
      %cst_156 = arith.constant 1.000000e+00 : f32
      %420 = vector.broadcast %cst_156 : f32 to vector<2x128xf32>
      %421 = arith.addf %420, %419 : vector<2x128xf32>
      %422 = arith.divf %420, %421 : vector<2x128xf32>
      %c64_i32_157 = arith.constant 64 : i32
      %423 = tpu.dynamic_rotate %417 by %c64_i32_157 dim 1 : vector<2x128xf32>, i32 -> vector<2x128xf32>
      %424 = arith.mulf %417, %423 : vector<2x128xf32>
      %c64_i32_158 = arith.constant 64 : i32
      %425 = tpu.dynamic_rotate %422 by %c64_i32_158 dim 1 : vector<2x128xf32>, i32 -> vector<2x128xf32>
      %426 = arith.select %199, %422, %425 : vector<2x128xi1>, vector<2x128xf32>
      %427 = arith.select %199, %425, %422 : vector<2x128xi1>, vector<2x128xf32>
      %428 = arith.mulf %426, %401 : vector<2x128xf32>
      %429 = arith.addf %428, %424 : vector<2x128xf32>
      %430 = math.tanh %429 : vector<2x128xf32>
      %431 = arith.mulf %427, %430 : vector<2x128xf32>
      %c14 = arith.constant 14 : index
      %c0_159 = arith.constant 0 : index
      %432 = vector.load %arg29[%c14, %c0_159] : memref<16x128xf32, #tpu.memory_space<vmem>>, vector<2x128xf32>
      tpu.vector_store %arg29[%c14, %c0_159], %431 {strides = array<i32>} : memref<16x128xf32, #tpu.memory_space<vmem>>, vector<2x128xf32>,
      %c0_160 = arith.constant 0 : index
      %c0_161 = arith.constant 0 : index
      %433 = vector.load %arg29[%c0_160, %c0_161] : memref<16x128xf32, #tpu.memory_space<vmem>>, vector<16x128xf32>
      %c0_162 = arith.constant 0 : index
      %c0_163 = arith.constant 0 : index
      %434 = vector.load %arg7[%c0_162, %c0_163] : memref<128x256xbf16, #tpu.memory_space<vmem>>, vector<128x256xbf16>
      %c0_164 = arith.constant 0 : index
      %c0_165 = arith.constant 0 : index
      %435 = vector.load %arg8[%c0_164, %c0_165] : memref<128x256xbf16, #tpu.memory_space<vmem>>, vector<128x256xbf16>
      %c0_166 = arith.constant 0 : index
      %c0_167 = arith.constant 0 : index
      %436 = vector.load %arg9[%c0_166, %c0_167] : memref<1x256xf32, #tpu.memory_space<vmem>>, vector<1x256xf32>
      %437 = arith.truncf %433 : vector<16x128xf32> to vector<16x128xbf16>
      %cst_168 = arith.constant dense<0.000000e+00> : vector<16x256xf32>
      %438 = tpu.matmul %437, %434, %cst_168 {dimension_numbers = #tpu.dot_dimension_numbers<[1], [0], [0], [1], [0, 0, 1, 1], [], []>} : vector<16x128xbf16>, vector<128x256xbf16>, vector<16x256xf32> -> vector<16x256xf32>
      %439 = vector.broadcast %436 : vector<1x256xf32> to vector<16x256xf32>
      %440 = arith.addf %438, %439 : vector<16x256xf32>
      %cst_169 = arith.constant 0.000000e+00 : f32
      %441 = vector.broadcast %cst_169 : f32 to vector<2x128xf32>
      %cst_170 = arith.constant 0.000000e+00 : f32
      %442 = vector.broadcast %cst_170 : f32 to vector<2x128xf32>
      %443 = vector.extract_strided_slice %440 {offsets = [0, 0], sizes = [2, 256], strides = [1, 1]} : vector<16x256xf32> to vector<2x256xf32>
      %444 = arith.truncf %441 : vector<2x128xf32> to vector<2x128xbf16>
      %cst_171 = arith.constant dense<0.000000e+00> : vector<2x256xf32>
      %445 = tpu.matmul %444, %435, %cst_171 {dimension_numbers = #tpu.dot_dimension_numbers<[1], [0], [0], [1], [0, 0, 1, 1], [], []>} : vector<2x128xbf16>, vector<128x256xbf16>, vector<2x256xf32> -> vector<2x256xf32>
      %446 = arith.addf %443, %445 : vector<2x256xf32>
      %447 = vector.extract_strided_slice %446 {offsets = [0, 0], sizes = [2, 128], strides = [1, 1]} : vector<2x256xf32> to vector<2x128xf32>
      %448 = vector.extract_strided_slice %446 {offsets = [0, 128], sizes = [2, 128], strides = [1, 1]} : vector<2x256xf32> to vector<2x128xf32>
      %449 = arith.negf %447 : vector<2x128xf32>
      %450 = math.exp %449 : vector<2x128xf32>
      %cst_172 = arith.constant 1.000000e+00 : f32
      %451 = vector.broadcast %cst_172 : f32 to vector<2x128xf32>
      %452 = arith.addf %451, %450 : vector<2x128xf32>
      %453 = arith.divf %451, %452 : vector<2x128xf32>
      %454 = math.tanh %447 : vector<2x128xf32>
      %455 = arith.select %199, %453, %454 : vector<2x128xi1>, vector<2x128xf32>
      %456 = arith.negf %448 : vector<2x128xf32>
      %457 = math.exp %456 : vector<2x128xf32>
      %cst_173 = arith.constant 1.000000e+00 : f32
      %458 = vector.broadcast %cst_173 : f32 to vector<2x128xf32>
      %459 = arith.addf %458, %457 : vector<2x128xf32>
      %460 = arith.divf %458, %459 : vector<2x128xf32>
      %c64_i32_174 = arith.constant 64 : i32
      %461 = tpu.dynamic_rotate %455 by %c64_i32_174 dim 1 : vector<2x128xf32>, i32 -> vector<2x128xf32>
      %462 = arith.mulf %455, %461 : vector<2x128xf32>
      %c64_i32_175 = arith.constant 64 : i32
      %463 = tpu.dynamic_rotate %460 by %c64_i32_175 dim 1 : vector<2x128xf32>, i32 -> vector<2x128xf32>
      %464 = arith.select %199, %460, %463 : vector<2x128xi1>, vector<2x128xf32>
      %465 = arith.select %199, %463, %460 : vector<2x128xi1>, vector<2x128xf32>
      %466 = arith.mulf %464, %442 : vector<2x128xf32>
      %467 = arith.addf %466, %462 : vector<2x128xf32>
      %468 = math.tanh %467 : vector<2x128xf32>
      %469 = arith.mulf %465, %468 : vector<2x128xf32>
      %c0_176 = arith.constant 0 : index
      %c0_177 = arith.constant 0 : index
      %470 = vector.load %arg30[%c0_176, %c0_177] : memref<16x128xf32, #tpu.memory_space<vmem>>, vector<2x128xf32>
      tpu.vector_store %arg30[%c0_176, %c0_177], %469 {strides = array<i32>} : memref<16x128xf32, #tpu.memory_space<vmem>>, vector<2x128xf32>,
      %471 = vector.extract_strided_slice %440 {offsets = [2, 0], sizes = [2, 256], strides = [1, 1]} : vector<16x256xf32> to vector<2x256xf32>
      %472 = arith.truncf %469 : vector<2x128xf32> to vector<2x128xbf16>
      %cst_178 = arith.constant dense<0.000000e+00> : vector<2x256xf32>
      %473 = tpu.matmul %472, %435, %cst_178 {dimension_numbers = #tpu.dot_dimension_numbers<[1], [0], [0], [1], [0, 0, 1, 1], [], []>} : vector<2x128xbf16>, vector<128x256xbf16>, vector<2x256xf32> -> vector<2x256xf32>
      %474 = arith.addf %471, %473 : vector<2x256xf32>
      %475 = vector.extract_strided_slice %474 {offsets = [0, 0], sizes = [2, 128], strides = [1, 1]} : vector<2x256xf32> to vector<2x128xf32>
      %476 = vector.extract_strided_slice %474 {offsets = [0, 128], sizes = [2, 128], strides = [1, 1]} : vector<2x256xf32> to vector<2x128xf32>
      %477 = arith.negf %475 : vector<2x128xf32>
      %478 = math.exp %477 : vector<2x128xf32>
      %cst_179 = arith.constant 1.000000e+00 : f32
      %479 = vector.broadcast %cst_179 : f32 to vector<2x128xf32>
      %480 = arith.addf %479, %478 : vector<2x128xf32>
      %481 = arith.divf %479, %480 : vector<2x128xf32>
      %482 = math.tanh %475 : vector<2x128xf32>
      %483 = arith.select %199, %481, %482 : vector<2x128xi1>, vector<2x128xf32>
      %484 = arith.negf %476 : vector<2x128xf32>
      %485 = math.exp %484 : vector<2x128xf32>
      %cst_180 = arith.constant 1.000000e+00 : f32
      %486 = vector.broadcast %cst_180 : f32 to vector<2x128xf32>
      %487 = arith.addf %486, %485 : vector<2x128xf32>
      %488 = arith.divf %486, %487 : vector<2x128xf32>
      %c64_i32_181 = arith.constant 64 : i32
      %489 = tpu.dynamic_rotate %483 by %c64_i32_181 dim 1 : vector<2x128xf32>, i32 -> vector<2x128xf32>
      %490 = arith.mulf %483, %489 : vector<2x128xf32>
      %c64_i32_182 = arith.constant 64 : i32
      %491 = tpu.dynamic_rotate %488 by %c64_i32_182 dim 1 : vector<2x128xf32>, i32 -> vector<2x128xf32>
      %492 = arith.select %199, %488, %491 : vector<2x128xi1>, vector<2x128xf32>
      %493 = arith.select %199, %491, %488 : vector<2x128xi1>, vector<2x128xf32>
      %494 = arith.mulf %492, %467 : vector<2x128xf32>
      %495 = arith.addf %494, %490 : vector<2x128xf32>
      %496 = math.tanh %495 : vector<2x128xf32>
      %497 = arith.mulf %493, %496 : vector<2x128xf32>
      %c2_183 = arith.constant 2 : index
      %c0_184 = arith.constant 0 : index
      %498 = vector.load %arg30[%c2_183, %c0_184] : memref<16x128xf32, #tpu.memory_space<vmem>>, vector<2x128xf32>
      tpu.vector_store %arg30[%c2_183, %c0_184], %497 {strides = array<i32>} : memref<16x128xf32, #tpu.memory_space<vmem>>, vector<2x128xf32>,
      %499 = vector.extract_strided_slice %440 {offsets = [4, 0], sizes = [2, 256], strides = [1, 1]} : vector<16x256xf32> to vector<2x256xf32>
      %500 = arith.truncf %497 : vector<2x128xf32> to vector<2x128xbf16>
      %cst_185 = arith.constant dense<0.000000e+00> : vector<2x256xf32>
      %501 = tpu.matmul %500, %435, %cst_185 {dimension_numbers = #tpu.dot_dimension_numbers<[1], [0], [0], [1], [0, 0, 1, 1], [], []>} : vector<2x128xbf16>, vector<128x256xbf16>, vector<2x256xf32> -> vector<2x256xf32>
      %502 = arith.addf %499, %501 : vector<2x256xf32>
      %503 = vector.extract_strided_slice %502 {offsets = [0, 0], sizes = [2, 128], strides = [1, 1]} : vector<2x256xf32> to vector<2x128xf32>
      %504 = vector.extract_strided_slice %502 {offsets = [0, 128], sizes = [2, 128], strides = [1, 1]} : vector<2x256xf32> to vector<2x128xf32>
      %505 = arith.negf %503 : vector<2x128xf32>
      %506 = math.exp %505 : vector<2x128xf32>
      %cst_186 = arith.constant 1.000000e+00 : f32
      %507 = vector.broadcast %cst_186 : f32 to vector<2x128xf32>
      %508 = arith.addf %507, %506 : vector<2x128xf32>
      %509 = arith.divf %507, %508 : vector<2x128xf32>
      %510 = math.tanh %503 : vector<2x128xf32>
      %511 = arith.select %199, %509, %510 : vector<2x128xi1>, vector<2x128xf32>
      %512 = arith.negf %504 : vector<2x128xf32>
      %513 = math.exp %512 : vector<2x128xf32>
      %cst_187 = arith.constant 1.000000e+00 : f32
      %514 = vector.broadcast %cst_187 : f32 to vector<2x128xf32>
      %515 = arith.addf %514, %513 : vector<2x128xf32>
      %516 = arith.divf %514, %515 : vector<2x128xf32>
      %c64_i32_188 = arith.constant 64 : i32
      %517 = tpu.dynamic_rotate %511 by %c64_i32_188 dim 1 : vector<2x128xf32>, i32 -> vector<2x128xf32>
      %518 = arith.mulf %511, %517 : vector<2x128xf32>
      %c64_i32_189 = arith.constant 64 : i32
      %519 = tpu.dynamic_rotate %516 by %c64_i32_189 dim 1 : vector<2x128xf32>, i32 -> vector<2x128xf32>
      %520 = arith.select %199, %516, %519 : vector<2x128xi1>, vector<2x128xf32>
      %521 = arith.select %199, %519, %516 : vector<2x128xi1>, vector<2x128xf32>
      %522 = arith.mulf %520, %495 : vector<2x128xf32>
      %523 = arith.addf %522, %518 : vector<2x128xf32>
      %524 = math.tanh %523 : vector<2x128xf32>
      %525 = arith.mulf %521, %524 : vector<2x128xf32>
      %c4_190 = arith.constant 4 : index
      %c0_191 = arith.constant 0 : index
      %526 = vector.load %arg30[%c4_190, %c0_191] : memref<16x128xf32, #tpu.memory_space<vmem>>, vector<2x128xf32>
      tpu.vector_store %arg30[%c4_190, %c0_191], %525 {strides = array<i32>} : memref<16x128xf32, #tpu.memory_space<vmem>>, vector<2x128xf32>,
      %527 = vector.extract_strided_slice %440 {offsets = [6, 0], sizes = [2, 256], strides = [1, 1]} : vector<16x256xf32> to vector<2x256xf32>
      %528 = arith.truncf %525 : vector<2x128xf32> to vector<2x128xbf16>
      %cst_192 = arith.constant dense<0.000000e+00> : vector<2x256xf32>
      %529 = tpu.matmul %528, %435, %cst_192 {dimension_numbers = #tpu.dot_dimension_numbers<[1], [0], [0], [1], [0, 0, 1, 1], [], []>} : vector<2x128xbf16>, vector<128x256xbf16>, vector<2x256xf32> -> vector<2x256xf32>
      %530 = arith.addf %527, %529 : vector<2x256xf32>
      %531 = vector.extract_strided_slice %530 {offsets = [0, 0], sizes = [2, 128], strides = [1, 1]} : vector<2x256xf32> to vector<2x128xf32>
      %532 = vector.extract_strided_slice %530 {offsets = [0, 128], sizes = [2, 128], strides = [1, 1]} : vector<2x256xf32> to vector<2x128xf32>
      %533 = arith.negf %531 : vector<2x128xf32>
      %534 = math.exp %533 : vector<2x128xf32>
      %cst_193 = arith.constant 1.000000e+00 : f32
      %535 = vector.broadcast %cst_193 : f32 to vector<2x128xf32>
      %536 = arith.addf %535, %534 : vector<2x128xf32>
      %537 = arith.divf %535, %536 : vector<2x128xf32>
      %538 = math.tanh %531 : vector<2x128xf32>
      %539 = arith.select %199, %537, %538 : vector<2x128xi1>, vector<2x128xf32>
      %540 = arith.negf %532 : vector<2x128xf32>
      %541 = math.exp %540 : vector<2x128xf32>
      %cst_194 = arith.constant 1.000000e+00 : f32
      %542 = vector.broadcast %cst_194 : f32 to vector<2x128xf32>
      %543 = arith.addf %542, %541 : vector<2x128xf32>
      %544 = arith.divf %542, %543 : vector<2x128xf32>
      %c64_i32_195 = arith.constant 64 : i32
      %545 = tpu.dynamic_rotate %539 by %c64_i32_195 dim 1 : vector<2x128xf32>, i32 -> vector<2x128xf32>
      %546 = arith.mulf %539, %545 : vector<2x128xf32>
      %c64_i32_196 = arith.constant 64 : i32
      %547 = tpu.dynamic_rotate %544 by %c64_i32_196 dim 1 : vector<2x128xf32>, i32 -> vector<2x128xf32>
      %548 = arith.select %199, %544, %547 : vector<2x128xi1>, vector<2x128xf32>
      %549 = arith.select %199, %547, %544 : vector<2x128xi1>, vector<2x128xf32>
      %550 = arith.mulf %548, %523 : vector<2x128xf32>
      %551 = arith.addf %550, %546 : vector<2x128xf32>
      %552 = math.tanh %551 : vector<2x128xf32>
      %553 = arith.mulf %549, %552 : vector<2x128xf32>
      %c6_197 = arith.constant 6 : index
      %c0_198 = arith.constant 0 : index
      %554 = vector.load %arg30[%c6_197, %c0_198] : memref<16x128xf32, #tpu.memory_space<vmem>>, vector<2x128xf32>
      tpu.vector_store %arg30[%c6_197, %c0_198], %553 {strides = array<i32>} : memref<16x128xf32, #tpu.memory_space<vmem>>, vector<2x128xf32>,
      %555 = vector.extract_strided_slice %440 {offsets = [8, 0], sizes = [2, 256], strides = [1, 1]} : vector<16x256xf32> to vector<2x256xf32>
      %556 = arith.truncf %553 : vector<2x128xf32> to vector<2x128xbf16>
      %cst_199 = arith.constant dense<0.000000e+00> : vector<2x256xf32>
      %557 = tpu.matmul %556, %435, %cst_199 {dimension_numbers = #tpu.dot_dimension_numbers<[1], [0], [0], [1], [0, 0, 1, 1], [], []>} : vector<2x128xbf16>, vector<128x256xbf16>, vector<2x256xf32> -> vector<2x256xf32>
      %558 = arith.addf %555, %557 : vector<2x256xf32>
      %559 = vector.extract_strided_slice %558 {offsets = [0, 0], sizes = [2, 128], strides = [1, 1]} : vector<2x256xf32> to vector<2x128xf32>
      %560 = vector.extract_strided_slice %558 {offsets = [0, 128], sizes = [2, 128], strides = [1, 1]} : vector<2x256xf32> to vector<2x128xf32>
      %561 = arith.negf %559 : vector<2x128xf32>
      %562 = math.exp %561 : vector<2x128xf32>
      %cst_200 = arith.constant 1.000000e+00 : f32
      %563 = vector.broadcast %cst_200 : f32 to vector<2x128xf32>
      %564 = arith.addf %563, %562 : vector<2x128xf32>
      %565 = arith.divf %563, %564 : vector<2x128xf32>
      %566 = math.tanh %559 : vector<2x128xf32>
      %567 = arith.select %199, %565, %566 : vector<2x128xi1>, vector<2x128xf32>
      %568 = arith.negf %560 : vector<2x128xf32>
      %569 = math.exp %568 : vector<2x128xf32>
      %cst_201 = arith.constant 1.000000e+00 : f32
      %570 = vector.broadcast %cst_201 : f32 to vector<2x128xf32>
      %571 = arith.addf %570, %569 : vector<2x128xf32>
      %572 = arith.divf %570, %571 : vector<2x128xf32>
      %c64_i32_202 = arith.constant 64 : i32
      %573 = tpu.dynamic_rotate %567 by %c64_i32_202 dim 1 : vector<2x128xf32>, i32 -> vector<2x128xf32>
      %574 = arith.mulf %567, %573 : vector<2x128xf32>
      %c64_i32_203 = arith.constant 64 : i32
      %575 = tpu.dynamic_rotate %572 by %c64_i32_203 dim 1 : vector<2x128xf32>, i32 -> vector<2x128xf32>
      %576 = arith.select %199, %572, %575 : vector<2x128xi1>, vector<2x128xf32>
      %577 = arith.select %199, %575, %572 : vector<2x128xi1>, vector<2x128xf32>
      %578 = arith.mulf %576, %551 : vector<2x128xf32>
      %579 = arith.addf %578, %574 : vector<2x128xf32>
      %580 = math.tanh %579 : vector<2x128xf32>
      %581 = arith.mulf %577, %580 : vector<2x128xf32>
      %c8_204 = arith.constant 8 : index
      %c0_205 = arith.constant 0 : index
      %582 = vector.load %arg30[%c8_204, %c0_205] : memref<16x128xf32, #tpu.memory_space<vmem>>, vector<2x128xf32>
      tpu.vector_store %arg30[%c8_204, %c0_205], %581 {strides = array<i32>} : memref<16x128xf32, #tpu.memory_space<vmem>>, vector<2x128xf32>,
      %583 = vector.extract_strided_slice %440 {offsets = [10, 0], sizes = [2, 256], strides = [1, 1]} : vector<16x256xf32> to vector<2x256xf32>
      %584 = arith.truncf %581 : vector<2x128xf32> to vector<2x128xbf16>
      %cst_206 = arith.constant dense<0.000000e+00> : vector<2x256xf32>
      %585 = tpu.matmul %584, %435, %cst_206 {dimension_numbers = #tpu.dot_dimension_numbers<[1], [0], [0], [1], [0, 0, 1, 1], [], []>} : vector<2x128xbf16>, vector<128x256xbf16>, vector<2x256xf32> -> vector<2x256xf32>
      %586 = arith.addf %583, %585 : vector<2x256xf32>
      %587 = vector.extract_strided_slice %586 {offsets = [0, 0], sizes = [2, 128], strides = [1, 1]} : vector<2x256xf32> to vector<2x128xf32>
      %588 = vector.extract_strided_slice %586 {offsets = [0, 128], sizes = [2, 128], strides = [1, 1]} : vector<2x256xf32> to vector<2x128xf32>
      %589 = arith.negf %587 : vector<2x128xf32>
      %590 = math.exp %589 : vector<2x128xf32>
      %cst_207 = arith.constant 1.000000e+00 : f32
      %591 = vector.broadcast %cst_207 : f32 to vector<2x128xf32>
      %592 = arith.addf %591, %590 : vector<2x128xf32>
      %593 = arith.divf %591, %592 : vector<2x128xf32>
      %594 = math.tanh %587 : vector<2x128xf32>
      %595 = arith.select %199, %593, %594 : vector<2x128xi1>, vector<2x128xf32>
      %596 = arith.negf %588 : vector<2x128xf32>
      %597 = math.exp %596 : vector<2x128xf32>
      %cst_208 = arith.constant 1.000000e+00 : f32
      %598 = vector.broadcast %cst_208 : f32 to vector<2x128xf32>
      %599 = arith.addf %598, %597 : vector<2x128xf32>
      %600 = arith.divf %598, %599 : vector<2x128xf32>
      %c64_i32_209 = arith.constant 64 : i32
      %601 = tpu.dynamic_rotate %595 by %c64_i32_209 dim 1 : vector<2x128xf32>, i32 -> vector<2x128xf32>
      %602 = arith.mulf %595, %601 : vector<2x128xf32>
      %c64_i32_210 = arith.constant 64 : i32
      %603 = tpu.dynamic_rotate %600 by %c64_i32_210 dim 1 : vector<2x128xf32>, i32 -> vector<2x128xf32>
      %604 = arith.select %199, %600, %603 : vector<2x128xi1>, vector<2x128xf32>
      %605 = arith.select %199, %603, %600 : vector<2x128xi1>, vector<2x128xf32>
      %606 = arith.mulf %604, %579 : vector<2x128xf32>
      %607 = arith.addf %606, %602 : vector<2x128xf32>
      %608 = math.tanh %607 : vector<2x128xf32>
      %609 = arith.mulf %605, %608 : vector<2x128xf32>
      %c10_211 = arith.constant 10 : index
      %c0_212 = arith.constant 0 : index
      %610 = vector.load %arg30[%c10_211, %c0_212] : memref<16x128xf32, #tpu.memory_space<vmem>>, vector<2x128xf32>
      tpu.vector_store %arg30[%c10_211, %c0_212], %609 {strides = array<i32>} : memref<16x128xf32, #tpu.memory_space<vmem>>, vector<2x128xf32>,
      %611 = vector.extract_strided_slice %440 {offsets = [12, 0], sizes = [2, 256], strides = [1, 1]} : vector<16x256xf32> to vector<2x256xf32>
      %612 = arith.truncf %609 : vector<2x128xf32> to vector<2x128xbf16>
      %cst_213 = arith.constant dense<0.000000e+00> : vector<2x256xf32>
      %613 = tpu.matmul %612, %435, %cst_213 {dimension_numbers = #tpu.dot_dimension_numbers<[1], [0], [0], [1], [0, 0, 1, 1], [], []>} : vector<2x128xbf16>, vector<128x256xbf16>, vector<2x256xf32> -> vector<2x256xf32>
      %614 = arith.addf %611, %613 : vector<2x256xf32>
      %615 = vector.extract_strided_slice %614 {offsets = [0, 0], sizes = [2, 128], strides = [1, 1]} : vector<2x256xf32> to vector<2x128xf32>
      %616 = vector.extract_strided_slice %614 {offsets = [0, 128], sizes = [2, 128], strides = [1, 1]} : vector<2x256xf32> to vector<2x128xf32>
      %617 = arith.negf %615 : vector<2x128xf32>
      %618 = math.exp %617 : vector<2x128xf32>
      %cst_214 = arith.constant 1.000000e+00 : f32
      %619 = vector.broadcast %cst_214 : f32 to vector<2x128xf32>
      %620 = arith.addf %619, %618 : vector<2x128xf32>
      %621 = arith.divf %619, %620 : vector<2x128xf32>
      %622 = math.tanh %615 : vector<2x128xf32>
      %623 = arith.select %199, %621, %622 : vector<2x128xi1>, vector<2x128xf32>
      %624 = arith.negf %616 : vector<2x128xf32>
      %625 = math.exp %624 : vector<2x128xf32>
      %cst_215 = arith.constant 1.000000e+00 : f32
      %626 = vector.broadcast %cst_215 : f32 to vector<2x128xf32>
      %627 = arith.addf %626, %625 : vector<2x128xf32>
      %628 = arith.divf %626, %627 : vector<2x128xf32>
      %c64_i32_216 = arith.constant 64 : i32
      %629 = tpu.dynamic_rotate %623 by %c64_i32_216 dim 1 : vector<2x128xf32>, i32 -> vector<2x128xf32>
      %630 = arith.mulf %623, %629 : vector<2x128xf32>
      %c64_i32_217 = arith.constant 64 : i32
      %631 = tpu.dynamic_rotate %628 by %c64_i32_217 dim 1 : vector<2x128xf32>, i32 -> vector<2x128xf32>
      %632 = arith.select %199, %628, %631 : vector<2x128xi1>, vector<2x128xf32>
      %633 = arith.select %199, %631, %628 : vector<2x128xi1>, vector<2x128xf32>
      %634 = arith.mulf %632, %607 : vector<2x128xf32>
      %635 = arith.addf %634, %630 : vector<2x128xf32>
      %636 = math.tanh %635 : vector<2x128xf32>
      %637 = arith.mulf %633, %636 : vector<2x128xf32>
      %c12_218 = arith.constant 12 : index
      %c0_219 = arith.constant 0 : index
      %638 = vector.load %arg30[%c12_218, %c0_219] : memref<16x128xf32, #tpu.memory_space<vmem>>, vector<2x128xf32>
      tpu.vector_store %arg30[%c12_218, %c0_219], %637 {strides = array<i32>} : memref<16x128xf32, #tpu.memory_space<vmem>>, vector<2x128xf32>,
      %639 = vector.extract_strided_slice %440 {offsets = [14, 0], sizes = [2, 256], strides = [1, 1]} : vector<16x256xf32> to vector<2x256xf32>
      %640 = arith.truncf %637 : vector<2x128xf32> to vector<2x128xbf16>
      %cst_220 = arith.constant dense<0.000000e+00> : vector<2x256xf32>
      %641 = tpu.matmul %640, %435, %cst_220 {dimension_numbers = #tpu.dot_dimension_numbers<[1], [0], [0], [1], [0, 0, 1, 1], [], []>} : vector<2x128xbf16>, vector<128x256xbf16>, vector<2x256xf32> -> vector<2x256xf32>
      %642 = arith.addf %639, %641 : vector<2x256xf32>
      %643 = vector.extract_strided_slice %642 {offsets = [0, 0], sizes = [2, 128], strides = [1, 1]} : vector<2x256xf32> to vector<2x128xf32>
      %644 = vector.extract_strided_slice %642 {offsets = [0, 128], sizes = [2, 128], strides = [1, 1]} : vector<2x256xf32> to vector<2x128xf32>
      %645 = arith.negf %643 : vector<2x128xf32>
      %646 = math.exp %645 : vector<2x128xf32>
      %cst_221 = arith.constant 1.000000e+00 : f32
      %647 = vector.broadcast %cst_221 : f32 to vector<2x128xf32>
      %648 = arith.addf %647, %646 : vector<2x128xf32>
      %649 = arith.divf %647, %648 : vector<2x128xf32>
      %650 = math.tanh %643 : vector<2x128xf32>
      %651 = arith.select %199, %649, %650 : vector<2x128xi1>, vector<2x128xf32>
      %652 = arith.negf %644 : vector<2x128xf32>
      %653 = math.exp %652 : vector<2x128xf32>
      %cst_222 = arith.constant 1.000000e+00 : f32
      %654 = vector.broadcast %cst_222 : f32 to vector<2x128xf32>
      %655 = arith.addf %654, %653 : vector<2x128xf32>
      %656 = arith.divf %654, %655 : vector<2x128xf32>
      %c64_i32_223 = arith.constant 64 : i32
      %657 = tpu.dynamic_rotate %651 by %c64_i32_223 dim 1 : vector<2x128xf32>, i32 -> vector<2x128xf32>
      %658 = arith.mulf %651, %657 : vector<2x128xf32>
      %c64_i32_224 = arith.constant 64 : i32
      %659 = tpu.dynamic_rotate %656 by %c64_i32_224 dim 1 : vector<2x128xf32>, i32 -> vector<2x128xf32>
      %660 = arith.select %199, %656, %659 : vector<2x128xi1>, vector<2x128xf32>
      %661 = arith.select %199, %659, %656 : vector<2x128xi1>, vector<2x128xf32>
      %662 = arith.mulf %660, %635 : vector<2x128xf32>
      %663 = arith.addf %662, %658 : vector<2x128xf32>
      %664 = math.tanh %663 : vector<2x128xf32>
      %665 = arith.mulf %661, %664 : vector<2x128xf32>
      %c14_225 = arith.constant 14 : index
      %c0_226 = arith.constant 0 : index
      %666 = vector.load %arg30[%c14_225, %c0_226] : memref<16x128xf32, #tpu.memory_space<vmem>>, vector<2x128xf32>
      tpu.vector_store %arg30[%c14_225, %c0_226], %665 {strides = array<i32>} : memref<16x128xf32, #tpu.memory_space<vmem>>, vector<2x128xf32>,
      %c0_227 = arith.constant 0 : index
      %c0_228 = arith.constant 0 : index
      %667 = vector.load %arg30[%c0_227, %c0_228] : memref<16x128xf32, #tpu.memory_space<vmem>>, vector<16x64xf32>
      %c0_229 = arith.constant 0 : index
      %c0_230 = arith.constant 0 : index
      %668 = vector.load %arg10[%c0_229, %c0_230] : memref<16x16xbf16, #tpu.memory_space<vmem>>, vector<16x16xbf16>
      %669 = arith.truncf %667 : vector<16x64xf32> to vector<16x64xbf16>
      %cst_231 = arith.constant dense<0.000000e+00> : vector<16x64xf32>
      %670 = tpu.matmul %668, %669, %cst_231 {dimension_numbers = #tpu.dot_dimension_numbers<[1], [0], [0], [1], [0, 0, 1, 1], [], []>} : vector<16x16xbf16>, vector<16x64xbf16>, vector<16x64xf32> -> vector<16x64xf32>
      %c0_232 = arith.constant 0 : index
      %c0_233 = arith.constant 0 : index
      %671 = vector.load %arg28[%c0_232, %c0_233] : memref<16x64xf32, #tpu.memory_space<vmem>>, vector<16x64xf32>
      tpu.vector_store %arg28[%c0_232, %c0_233], %670 {strides = array<i32>} : memref<16x64xf32, #tpu.memory_space<vmem>>, vector<16x64xf32>,
    } else {
    }
    %c0 = arith.constant 0 : index
    %c0_1 = arith.constant 0 : index
    %3 = vector.load %arg28[%c0, %c0_1] : memref<16x64xf32, #tpu.memory_space<vmem>>, vector<16x64xf32>
    %4 = arith.truncf %3 : vector<16x64xf32> to vector<16x64xbf16>
    %c0_2 = arith.constant 0 : index
    %c0_3 = arith.constant 0 : index
    %c0_4 = arith.constant 0 : index
    %5 = vector.load %arg13[%c0_2, %c0_3, %c0_4] : memref<1x64x192xbf16, #tpu.memory_space<vmem>>, vector<1x64x192xbf16>
    %6 = vector.shape_cast %5 : vector<1x64x192xbf16> to vector<64x192xbf16>
    %cst = arith.constant dense<0.000000e+00> : vector<16x192xf32>
    %7 = tpu.matmul %4, %6, %cst {dimension_numbers = #tpu.dot_dimension_numbers<[1], [0], [0], [1], [0, 0, 1, 1], [], []>} : vector<16x64xbf16>, vector<64x192xbf16>, vector<16x192xf32> -> vector<16x192xf32>
    %c0_5 = arith.constant 0 : index
    %c0_6 = arith.constant 0 : index
    %c0_7 = arith.constant 0 : index
    %8 = vector.load %arg14[%c0_5, %c0_6, %c0_7] : memref<1x1x192xf32, #tpu.memory_space<vmem>>, vector<1x1x192xf32>
    %9 = vector.shape_cast %8 : vector<1x1x192xf32> to vector<1x192xf32>
    %10 = vector.broadcast %9 : vector<1x192xf32> to vector<16x192xf32>
    %11 = arith.addf %7, %10 : vector<16x192xf32>
    %12 = vector.extract_strided_slice %11 {offsets = [0, 0], sizes = [16, 64], strides = [1, 1]} : vector<16x192xf32> to vector<16x64xf32>
    %13 = vector.extract_strided_slice %11 {offsets = [0, 64], sizes = [16, 64], strides = [1, 1]} : vector<16x192xf32> to vector<16x64xf32>
    %14 = vector.extract_strided_slice %11 {offsets = [0, 128], sizes = [16, 64], strides = [1, 1]} : vector<16x192xf32> to vector<16x64xf32>
    %15 = vector.extract_strided_slice %12 {offsets = [0, 0], sizes = [8, 64], strides = [1, 1]} : vector<16x64xf32> to vector<8x64xf32>
    %16 = vector.extract_strided_slice %12 {offsets = [8, 0], sizes = [8, 64], strides = [1, 1]} : vector<16x64xf32> to vector<8x64xf32>
    %17 = vector.extract_strided_slice %13 {offsets = [0, 0], sizes = [8, 64], strides = [1, 1]} : vector<16x64xf32> to vector<8x64xf32>
    %18 = vector.extract_strided_slice %13 {offsets = [8, 0], sizes = [8, 64], strides = [1, 1]} : vector<16x64xf32> to vector<8x64xf32>
    %19 = vector.extract_strided_slice %14 {offsets = [0, 0], sizes = [8, 64], strides = [1, 1]} : vector<16x64xf32> to vector<8x64xf32>
    %20 = vector.extract_strided_slice %14 {offsets = [8, 0], sizes = [8, 64], strides = [1, 1]} : vector<16x64xf32> to vector<8x64xf32>
    %21 = arith.mulf %15, %17 : vector<8x64xf32>
    %22 = arith.mulf %15, %18 : vector<8x64xf32>
    %23 = arith.mulf %16, %17 : vector<8x64xf32>
    %24 = arith.mulf %16, %18 : vector<8x64xf32>
    %25 = tpu.concatenate %21, %22, %23, %24 in 0 : vector<8x64xf32>, vector<8x64xf32>, vector<8x64xf32>, vector<8x64xf32> -> vector<32x64xf32>
    %26 = arith.truncf %25 : vector<32x64xf32> to vector<32x64xbf16>
    %c0_8 = arith.constant 0 : index
    %c0_9 = arith.constant 0 : index
    %27 = vector.load %arg11[%c0_8, %c0_9] : memref<64x64xbf16, #tpu.memory_space<vmem>>, vector<64x64xbf16>
    %cst_10 = arith.constant dense<0.000000e+00> : vector<32x64xf32>
    %28 = tpu.matmul %26, %27, %cst_10 {dimension_numbers = #tpu.dot_dimension_numbers<[1], [0], [0], [1], [0, 0, 1, 1], [], []>} : vector<32x64xbf16>, vector<64x64xbf16>, vector<32x64xf32> -> vector<32x64xf32>
    %29 = vector.extract_strided_slice %28 {offsets = [0, 0], sizes = [8, 64], strides = [1, 1]} : vector<32x64xf32> to vector<8x64xf32>
    %30 = vector.extract_strided_slice %28 {offsets = [8, 0], sizes = [8, 64], strides = [1, 1]} : vector<32x64xf32> to vector<8x64xf32>
    %31 = vector.extract_strided_slice %28 {offsets = [16, 0], sizes = [8, 64], strides = [1, 1]} : vector<32x64xf32> to vector<8x64xf32>
    %32 = vector.extract_strided_slice %28 {offsets = [24, 0], sizes = [8, 64], strides = [1, 1]} : vector<32x64xf32> to vector<8x64xf32>
    %33 = arith.maximumf %29, %30 : vector<8x64xf32>
    %34 = arith.subf %29, %33 : vector<8x64xf32>
    %35 = math.exp %34 : vector<8x64xf32>
    %36 = arith.subf %30, %33 : vector<8x64xf32>
    %37 = math.exp %36 : vector<8x64xf32>
    %38 = arith.addf %35, %37 : vector<8x64xf32>
    %cst_11 = arith.constant 1.000000e+00 : f32
    %39 = vector.broadcast %cst_11 : f32 to vector<8x64xf32>
    %40 = arith.divf %39, %38 : vector<8x64xf32>
    %41 = arith.mulf %35, %40 : vector<8x64xf32>
    %42 = arith.mulf %41, %19 : vector<8x64xf32>
    %43 = arith.mulf %37, %40 : vector<8x64xf32>
    %44 = arith.mulf %43, %20 : vector<8x64xf32>
    %45 = arith.addf %42, %44 : vector<8x64xf32>
    %46 = arith.maximumf %31, %32 : vector<8x64xf32>
    %47 = arith.subf %31, %46 : vector<8x64xf32>
    %48 = math.exp %47 : vector<8x64xf32>
    %49 = arith.subf %32, %46 : vector<8x64xf32>
    %50 = math.exp %49 : vector<8x64xf32>
    %51 = arith.addf %48, %50 : vector<8x64xf32>
    %cst_12 = arith.constant 1.000000e+00 : f32
    %52 = vector.broadcast %cst_12 : f32 to vector<8x64xf32>
    %53 = arith.divf %52, %51 : vector<8x64xf32>
    %54 = arith.mulf %48, %53 : vector<8x64xf32>
    %55 = arith.mulf %54, %19 : vector<8x64xf32>
    %56 = arith.mulf %50, %53 : vector<8x64xf32>
    %57 = arith.mulf %56, %20 : vector<8x64xf32>
    %58 = arith.addf %55, %57 : vector<8x64xf32>
    %59 = tpu.concatenate %45, %58 in 0 : vector<8x64xf32>, vector<8x64xf32> -> vector<16x64xf32>
    %60 = arith.truncf %59 : vector<16x64xf32> to vector<16x64xbf16>
    %c0_13 = arith.constant 0 : index
    %c0_14 = arith.constant 0 : index
    %c0_15 = arith.constant 0 : index
    %61 = vector.load %arg15[%c0_13, %c0_14, %c0_15] : memref<1x64x64xbf16, #tpu.memory_space<vmem>>, vector<1x64x64xbf16>
    %62 = vector.shape_cast %61 : vector<1x64x64xbf16> to vector<64x64xbf16>
    %cst_16 = arith.constant dense<0.000000e+00> : vector<16x64xf32>
    %63 = tpu.matmul %60, %62, %cst_16 {dimension_numbers = #tpu.dot_dimension_numbers<[1], [0], [0], [1], [0, 0, 1, 1], [], []>} : vector<16x64xbf16>, vector<64x64xbf16>, vector<16x64xf32> -> vector<16x64xf32>
    %c0_17 = arith.constant 0 : index
    %c0_18 = arith.constant 0 : index
    %c0_19 = arith.constant 0 : index
    %64 = vector.load %arg16[%c0_17, %c0_18, %c0_19] : memref<1x1x64xf32, #tpu.memory_space<vmem>>, vector<1x1x64xf32>
    %65 = vector.shape_cast %64 : vector<1x1x64xf32> to vector<1x64xf32>
    %66 = vector.broadcast %65 : vector<1x64xf32> to vector<16x64xf32>
    %67 = arith.addf %63, %66 : vector<16x64xf32>
    %68 = arith.addf %3, %67 : vector<16x64xf32>
    %c0_20 = arith.constant 0 : index
    %c0_21 = arith.constant 0 : index
    %c0_22 = arith.constant 0 : index
    %69 = vector.load %arg21[%c0_20, %c0_21, %c0_22] : memref<1x1x64xf32, #tpu.memory_space<vmem>>, vector<1x1x64xf32>
    %70 = vector.shape_cast %69 : vector<1x1x64xf32> to vector<1x64xf32>
    %c0_23 = arith.constant 0 : index
    %c0_24 = arith.constant 0 : index
    %c0_25 = arith.constant 0 : index
    %71 = vector.load %arg22[%c0_23, %c0_24, %c0_25] : memref<1x1x64xf32, #tpu.memory_space<vmem>>, vector<1x1x64xf32>
    %72 = vector.shape_cast %71 : vector<1x1x64xf32> to vector<1x64xf32>
    %cst_26 = arith.constant dense<0.000000e+00> : vector<16xf32>
    %73 = vector.multi_reduction <add>, %68, %cst_26 [1] : vector<16x64xf32> to vector<16xf32>
    %74 = vector.shape_cast %73 : vector<16xf32> to vector<16x1xf32>
    %cst_27 = arith.constant 6.400000e+01 : f32
    %75 = vector.broadcast %cst_27 : f32 to vector<16x1xf32>
    %76 = arith.divf %74, %75 : vector<16x1xf32>
    %77 = vector.broadcast %76 : vector<16x1xf32> to vector<16x64xf32>
    %78 = arith.subf %68, %77 : vector<16x64xf32>
    %79 = arith.mulf %78, %78 : vector<16x64xf32>
    %cst_28 = arith.constant dense<0.000000e+00> : vector<16xf32>
    %80 = vector.multi_reduction <add>, %79, %cst_28 [1] : vector<16x64xf32> to vector<16xf32>
    %81 = vector.shape_cast %80 : vector<16xf32> to vector<16x1xf32>
    %cst_29 = arith.constant 6.400000e+01 : f32
    %82 = vector.broadcast %cst_29 : f32 to vector<16x1xf32>
    %83 = arith.divf %81, %82 : vector<16x1xf32>
    %84 = vector.broadcast %76 : vector<16x1xf32> to vector<16x64xf32>
    %85 = arith.subf %68, %84 : vector<16x64xf32>
    %cst_30 = arith.constant 9.99999974E-6 : f32
    %86 = vector.broadcast %cst_30 : f32 to vector<16x1xf32>
    %87 = arith.addf %83, %86 : vector<16x1xf32>
    %88 = math.rsqrt %87 : vector<16x1xf32>
    %89 = vector.broadcast %88 : vector<16x1xf32> to vector<16x64xf32>
    %90 = arith.mulf %85, %89 : vector<16x64xf32>
    %91 = vector.broadcast %70 : vector<1x64xf32> to vector<16x64xf32>
    %92 = arith.mulf %90, %91 : vector<16x64xf32>
    %93 = vector.broadcast %72 : vector<1x64xf32> to vector<16x64xf32>
    %94 = arith.addf %92, %93 : vector<16x64xf32>
    %95 = arith.truncf %94 : vector<16x64xf32> to vector<16x64xbf16>
    %cst_31 = arith.constant 0.000000e+00 : f32
    %96 = vector.broadcast %cst_31 : f32 to vector<16x64xf32>
    %c0_32 = arith.constant 0 : index
    %c0_33 = arith.constant 0 : index
    %c0_34 = arith.constant 0 : index
    %97 = vector.load %arg17[%c0_32, %c0_33, %c0_34] : memref<1x64x2048xbf16, #tpu.memory_space<vmem>>, vector<1x64x512xbf16>
    %98 = vector.shape_cast %97 : vector<1x64x512xbf16> to vector<64x512xbf16>
    %cst_35 = arith.constant dense<0.000000e+00> : vector<16x512xf32>
    %99 = tpu.matmul %95, %98, %cst_35 {dimension_numbers = #tpu.dot_dimension_numbers<[1], [0], [0], [1], [0, 0, 1, 1], [], []>} : vector<16x64xbf16>, vector<64x512xbf16>, vector<16x512xf32> -> vector<16x512xf32>
    %c0_36 = arith.constant 0 : index
    %c0_37 = arith.constant 0 : index
    %c0_38 = arith.constant 0 : index
    %100 = vector.load %arg18[%c0_36, %c0_37, %c0_38] : memref<1x1x2048xf32, #tpu.memory_space<vmem>>, vector<1x1x512xf32>
    %101 = vector.shape_cast %100 : vector<1x1x512xf32> to vector<1x512xf32>
    %102 = vector.broadcast %101 : vector<1x512xf32> to vector<16x512xf32>
    %103 = arith.addf %99, %102 : vector<16x512xf32>
    %cst_39 = arith.constant 0.000000e+00 : f32
    %104 = vector.broadcast %cst_39 : f32 to vector<16x512xf32>
    %105 = arith.maximumf %103, %104 : vector<16x512xf32>
    %106 = arith.truncf %105 : vector<16x512xf32> to vector<16x512xbf16>
    %c0_40 = arith.constant 0 : index
    %c0_41 = arith.constant 0 : index
    %c0_42 = arith.constant 0 : index
    %107 = vector.load %arg19[%c0_40, %c0_41, %c0_42] : memref<1x2048x64xbf16, #tpu.memory_space<vmem>>, vector<1x512x64xbf16>
    %108 = vector.shape_cast %107 : vector<1x512x64xbf16> to vector<512x64xbf16>
    %cst_43 = arith.constant dense<0.000000e+00> : vector<16x64xf32>
    %109 = tpu.matmul %106, %108, %cst_43 {dimension_numbers = #tpu.dot_dimension_numbers<[1], [0], [0], [1], [0, 0, 1, 1], [], []>} : vector<16x512xbf16>, vector<512x64xbf16>, vector<16x64xf32> -> vector<16x64xf32>
    %110 = arith.addf %96, %109 : vector<16x64xf32>
    %c0_44 = arith.constant 0 : index
    %c0_45 = arith.constant 0 : index
    %c512 = arith.constant 512 : index
    %111 = vector.load %arg17[%c0_44, %c0_45, %c512] : memref<1x64x2048xbf16, #tpu.memory_space<vmem>>, vector<1x64x512xbf16>
    %112 = vector.shape_cast %111 : vector<1x64x512xbf16> to vector<64x512xbf16>
    %cst_46 = arith.constant dense<0.000000e+00> : vector<16x512xf32>
    %113 = tpu.matmul %95, %112, %cst_46 {dimension_numbers = #tpu.dot_dimension_numbers<[1], [0], [0], [1], [0, 0, 1, 1], [], []>} : vector<16x64xbf16>, vector<64x512xbf16>, vector<16x512xf32> -> vector<16x512xf32>
    %c0_47 = arith.constant 0 : index
    %c0_48 = arith.constant 0 : index
    %c512_49 = arith.constant 512 : index
    %114 = vector.load %arg18[%c0_47, %c0_48, %c512_49] : memref<1x1x2048xf32, #tpu.memory_space<vmem>>, vector<1x1x512xf32>
    %115 = vector.shape_cast %114 : vector<1x1x512xf32> to vector<1x512xf32>
    %116 = vector.broadcast %115 : vector<1x512xf32> to vector<16x512xf32>
    %117 = arith.addf %113, %116 : vector<16x512xf32>
    %cst_50 = arith.constant 0.000000e+00 : f32
    %118 = vector.broadcast %cst_50 : f32 to vector<16x512xf32>
    %119 = arith.maximumf %117, %118 : vector<16x512xf32>
    %120 = arith.truncf %119 : vector<16x512xf32> to vector<16x512xbf16>
    %c0_51 = arith.constant 0 : index
    %c512_52 = arith.constant 512 : index
    %c0_53 = arith.constant 0 : index
    %121 = vector.load %arg19[%c0_51, %c512_52, %c0_53] : memref<1x2048x64xbf16, #tpu.memory_space<vmem>>, vector<1x512x64xbf16>
    %122 = vector.shape_cast %121 : vector<1x512x64xbf16> to vector<512x64xbf16>
    %cst_54 = arith.constant dense<0.000000e+00> : vector<16x64xf32>
    %123 = tpu.matmul %120, %122, %cst_54 {dimension_numbers = #tpu.dot_dimension_numbers<[1], [0], [0], [1], [0, 0, 1, 1], [], []>} : vector<16x512xbf16>, vector<512x64xbf16>, vector<16x64xf32> -> vector<16x64xf32>
    %124 = arith.addf %110, %123 : vector<16x64xf32>
    %c0_55 = arith.constant 0 : index
    %c0_56 = arith.constant 0 : index
    %c1024 = arith.constant 1024 : index
    %125 = vector.load %arg17[%c0_55, %c0_56, %c1024] : memref<1x64x2048xbf16, #tpu.memory_space<vmem>>, vector<1x64x512xbf16>
    %126 = vector.shape_cast %125 : vector<1x64x512xbf16> to vector<64x512xbf16>
    %cst_57 = arith.constant dense<0.000000e+00> : vector<16x512xf32>
    %127 = tpu.matmul %95, %126, %cst_57 {dimension_numbers = #tpu.dot_dimension_numbers<[1], [0], [0], [1], [0, 0, 1, 1], [], []>} : vector<16x64xbf16>, vector<64x512xbf16>, vector<16x512xf32> -> vector<16x512xf32>
    %c0_58 = arith.constant 0 : index
    %c0_59 = arith.constant 0 : index
    %c1024_60 = arith.constant 1024 : index
    %128 = vector.load %arg18[%c0_58, %c0_59, %c1024_60] : memref<1x1x2048xf32, #tpu.memory_space<vmem>>, vector<1x1x512xf32>
    %129 = vector.shape_cast %128 : vector<1x1x512xf32> to vector<1x512xf32>
    %130 = vector.broadcast %129 : vector<1x512xf32> to vector<16x512xf32>
    %131 = arith.addf %127, %130 : vector<16x512xf32>
    %cst_61 = arith.constant 0.000000e+00 : f32
    %132 = vector.broadcast %cst_61 : f32 to vector<16x512xf32>
    %133 = arith.maximumf %131, %132 : vector<16x512xf32>
    %134 = arith.truncf %133 : vector<16x512xf32> to vector<16x512xbf16>
    %c0_62 = arith.constant 0 : index
    %c1024_63 = arith.constant 1024 : index
    %c0_64 = arith.constant 0 : index
    %135 = vector.load %arg19[%c0_62, %c1024_63, %c0_64] : memref<1x2048x64xbf16, #tpu.memory_space<vmem>>, vector<1x512x64xbf16>
    %136 = vector.shape_cast %135 : vector<1x512x64xbf16> to vector<512x64xbf16>
    %cst_65 = arith.constant dense<0.000000e+00> : vector<16x64xf32>
    %137 = tpu.matmul %134, %136, %cst_65 {dimension_numbers = #tpu.dot_dimension_numbers<[1], [0], [0], [1], [0, 0, 1, 1], [], []>} : vector<16x512xbf16>, vector<512x64xbf16>, vector<16x64xf32> -> vector<16x64xf32>
    %138 = arith.addf %124, %137 : vector<16x64xf32>
    %c0_66 = arith.constant 0 : index
    %c0_67 = arith.constant 0 : index
    %c1536 = arith.constant 1536 : index
    %139 = vector.load %arg17[%c0_66, %c0_67, %c1536] : memref<1x64x2048xbf16, #tpu.memory_space<vmem>>, vector<1x64x512xbf16>
    %140 = vector.shape_cast %139 : vector<1x64x512xbf16> to vector<64x512xbf16>
    %cst_68 = arith.constant dense<0.000000e+00> : vector<16x512xf32>
    %141 = tpu.matmul %95, %140, %cst_68 {dimension_numbers = #tpu.dot_dimension_numbers<[1], [0], [0], [1], [0, 0, 1, 1], [], []>} : vector<16x64xbf16>, vector<64x512xbf16>, vector<16x512xf32> -> vector<16x512xf32>
    %c0_69 = arith.constant 0 : index
    %c0_70 = arith.constant 0 : index
    %c1536_71 = arith.constant 1536 : index
    %142 = vector.load %arg18[%c0_69, %c0_70, %c1536_71] : memref<1x1x2048xf32, #tpu.memory_space<vmem>>, vector<1x1x512xf32>
    %143 = vector.shape_cast %142 : vector<1x1x512xf32> to vector<1x512xf32>
    %144 = vector.broadcast %143 : vector<1x512xf32> to vector<16x512xf32>
    %145 = arith.addf %141, %144 : vector<16x512xf32>
    %cst_72 = arith.constant 0.000000e+00 : f32
    %146 = vector.broadcast %cst_72 : f32 to vector<16x512xf32>
    %147 = arith.maximumf %145, %146 : vector<16x512xf32>
    %148 = arith.truncf %147 : vector<16x512xf32> to vector<16x512xbf16>
    %c0_73 = arith.constant 0 : index
    %c1536_74 = arith.constant 1536 : index
    %c0_75 = arith.constant 0 : index
    %149 = vector.load %arg19[%c0_73, %c1536_74, %c0_75] : memref<1x2048x64xbf16, #tpu.memory_space<vmem>>, vector<1x512x64xbf16>
    %150 = vector.shape_cast %149 : vector<1x512x64xbf16> to vector<512x64xbf16>
    %cst_76 = arith.constant dense<0.000000e+00> : vector<16x64xf32>
    %151 = tpu.matmul %148, %150, %cst_76 {dimension_numbers = #tpu.dot_dimension_numbers<[1], [0], [0], [1], [0, 0, 1, 1], [], []>} : vector<16x512xbf16>, vector<512x64xbf16>, vector<16x64xf32> -> vector<16x64xf32>
    %152 = arith.addf %138, %151 : vector<16x64xf32>
    %c0_77 = arith.constant 0 : index
    %c0_78 = arith.constant 0 : index
    %c0_79 = arith.constant 0 : index
    %153 = vector.load %arg20[%c0_77, %c0_78, %c0_79] : memref<1x1x64xf32, #tpu.memory_space<vmem>>, vector<1x1x64xf32>
    %154 = vector.shape_cast %153 : vector<1x1x64xf32> to vector<1x64xf32>
    %155 = vector.broadcast %154 : vector<1x64xf32> to vector<16x64xf32>
    %156 = arith.addf %152, %155 : vector<16x64xf32>
    %157 = arith.addf %94, %156 : vector<16x64xf32>
    %c0_80 = arith.constant 0 : index
    %c0_81 = arith.constant 0 : index
    %c0_82 = arith.constant 0 : index
    %158 = vector.load %arg23[%c0_80, %c0_81, %c0_82] : memref<1x1x64xf32, #tpu.memory_space<vmem>>, vector<1x1x64xf32>
    %159 = vector.shape_cast %158 : vector<1x1x64xf32> to vector<1x64xf32>
    %c0_83 = arith.constant 0 : index
    %c0_84 = arith.constant 0 : index
    %c0_85 = arith.constant 0 : index
    %160 = vector.load %arg24[%c0_83, %c0_84, %c0_85] : memref<1x1x64xf32, #tpu.memory_space<vmem>>, vector<1x1x64xf32>
    %161 = vector.shape_cast %160 : vector<1x1x64xf32> to vector<1x64xf32>
    %cst_86 = arith.constant dense<0.000000e+00> : vector<16xf32>
    %162 = vector.multi_reduction <add>, %157, %cst_86 [1] : vector<16x64xf32> to vector<16xf32>
    %163 = vector.shape_cast %162 : vector<16xf32> to vector<16x1xf32>
    %cst_87 = arith.constant 6.400000e+01 : f32
    %164 = vector.broadcast %cst_87 : f32 to vector<16x1xf32>
    %165 = arith.divf %163, %164 : vector<16x1xf32>
    %166 = vector.broadcast %165 : vector<16x1xf32> to vector<16x64xf32>
    %167 = arith.subf %157, %166 : vector<16x64xf32>
    %168 = arith.mulf %167, %167 : vector<16x64xf32>
    %cst_88 = arith.constant dense<0.000000e+00> : vector<16xf32>
    %169 = vector.multi_reduction <add>, %168, %cst_88 [1] : vector<16x64xf32> to vector<16xf32>
    %170 = vector.shape_cast %169 : vector<16xf32> to vector<16x1xf32>
    %cst_89 = arith.constant 6.400000e+01 : f32
    %171 = vector.broadcast %cst_89 : f32 to vector<16x1xf32>
    %172 = arith.divf %170, %171 : vector<16x1xf32>
    %173 = vector.broadcast %165 : vector<16x1xf32> to vector<16x64xf32>
    %174 = arith.subf %157, %173 : vector<16x64xf32>
    %cst_90 = arith.constant 9.99999974E-6 : f32
    %175 = vector.broadcast %cst_90 : f32 to vector<16x1xf32>
    %176 = arith.addf %172, %175 : vector<16x1xf32>
    %177 = math.rsqrt %176 : vector<16x1xf32>
    %178 = vector.broadcast %177 : vector<16x1xf32> to vector<16x64xf32>
    %179 = arith.mulf %174, %178 : vector<16x64xf32>
    %180 = vector.broadcast %159 : vector<1x64xf32> to vector<16x64xf32>
    %181 = arith.mulf %179, %180 : vector<16x64xf32>
    %182 = vector.broadcast %161 : vector<1x64xf32> to vector<16x64xf32>
    %183 = arith.addf %181, %182 : vector<16x64xf32>
    %c0_91 = arith.constant 0 : index
    %c0_92 = arith.constant 0 : index
    %184 = vector.load %arg28[%c0_91, %c0_92] : memref<16x64xf32, #tpu.memory_space<vmem>>, vector<16x64xf32>
    tpu.vector_store %arg28[%c0_91, %c0_92], %183 {strides = array<i32>} : memref<16x64xf32, #tpu.memory_space<vmem>>, vector<16x64xf32>,
    %c1_i32 = arith.constant 1 : i32
    %185 = arith.cmpi eq, %arg0, %c1_i32 : i32
    %186 = arith.extui %185 : i1 to i32
    %c0_i32_93 = arith.constant 0 : i32
    %187 = arith.cmpi ne, %186, %c0_i32_93 : i32
    scf.if %187 {
      %c0_94 = arith.constant 0 : index
      %c0_95 = arith.constant 0 : index
      %188 = vector.load %arg12[%c0_94, %c0_95] : memref<2x16xbf16, #tpu.memory_space<vmem>>, vector<2x16xbf16>
      %c0_96 = arith.constant 0 : index
      %c0_97 = arith.constant 0 : index
      %189 = vector.load %arg28[%c0_96, %c0_97] : memref<16x64xf32, #tpu.memory_space<vmem>>, vector<16x64xf32>
      %190 = arith.truncf %189 : vector<16x64xf32> to vector<16x64xbf16>
      %cst_98 = arith.constant dense<0.000000e+00> : vector<2x64xf32>
      %191 = tpu.matmul %188, %190, %cst_98 {dimension_numbers = #tpu.dot_dimension_numbers<[1], [0], [0], [1], [0, 0, 1, 1], [], []>} : vector<2x16xbf16>, vector<16x64xbf16>, vector<2x64xf32> -> vector<2x64xf32>
      %192 = arith.truncf %191 : vector<2x64xf32> to vector<2x64xbf16>
      %c0_99 = arith.constant 0 : index
      %c0_100 = arith.constant 0 : index
      %193 = vector.load %arg25[%c0_99, %c0_100] : memref<64x2xbf16, #tpu.memory_space<vmem>>, vector<64x2xbf16>
      %cst_101 = arith.constant dense<0.000000e+00> : vector<2x2xf32>
      %194 = tpu.matmul %192, %193, %cst_101 {dimension_numbers = #tpu.dot_dimension_numbers<[1], [0], [0], [1], [0, 0, 1, 1], [], []>} : vector<2x64xbf16>, vector<64x2xbf16>, vector<2x2xf32> -> vector<2x2xf32>
      %c0_102 = arith.constant 0 : index
      %c0_103 = arith.constant 0 : index
      %195 = vector.load %arg26[%c0_102, %c0_103] : memref<1x2xf32, #tpu.memory_space<vmem>>, vector<1x2xf32>
      %196 = vector.broadcast %195 : vector<1x2xf32> to vector<2x2xf32>
      %197 = arith.addf %194, %196 : vector<2x2xf32>
      %cst_104 = arith.constant 2.000000e+01 : f32
      %198 = vector.broadcast %cst_104 : f32 to vector<2x2xf32>
      %199 = arith.cmpf ogt, %197, %198 : vector<2x2xf32>
      %cst_105 = arith.constant 2.000000e+01 : f32
      %200 = vector.broadcast %cst_105 : f32 to vector<2x2xf32>
      %201 = arith.minimumf %197, %200 : vector<2x2xf32>
      %202 = math.exp %201 : vector<2x2xf32>
      %203 = math.log1p %202 : vector<2x2xf32>
      %204 = arith.select %199, %197, %203 : vector<2x2xi1>, vector<2x2xf32>
      %205 = tpu.iota {dimensions = array<i32: 1>} : vector<2x2xi32>
      %c0_i32_106 = arith.constant 0 : i32
      %206 = vector.broadcast %c0_i32_106 : i32 to vector<2x2xi32>
      %207 = arith.cmpi eq, %205, %206 : vector<2x2xi32>
      %208 = arith.negf %197 : vector<2x2xf32>
      %209 = math.exp %208 : vector<2x2xf32>
      %cst_107 = arith.constant 1.000000e+00 : f32
      %210 = vector.broadcast %cst_107 : f32 to vector<2x2xf32>
      %211 = arith.addf %210, %209 : vector<2x2xf32>
      %212 = arith.divf %210, %211 : vector<2x2xf32>
      %213 = arith.select %207, %212, %204 : vector<2x2xi1>, vector<2x2xf32>
      %c0_108 = arith.constant 0 : index
      %c0_109 = arith.constant 0 : index
      %214 = vector.load %arg27[%c0_108, %c0_109] : memref<2x2xf32, #tpu.memory_space<vmem>>, vector<2x2xf32>
      tpu.vector_store %arg27[%c0_108, %c0_109], %213 {strides = array<i32>} : memref<2x2xf32, #tpu.memory_space<vmem>>, vector<2x2xf32>,
    } else {
    }
    return
  }
  func.func @transform_0(%arg0: i32) -> (i32, i32) {
    %c0_i32 = arith.constant 0 : i32
    %c0_i32_0 = arith.constant 0 : i32
    %c0_i32_1 = arith.constant 0 : i32
    return %c0_i32, %c0_i32_0 : i32, i32
  }
  func.func @transform_1(%arg0: i32) -> (i32, i32) {
    %c0_i32 = arith.constant 0 : i32
    %c0_i32_0 = arith.constant 0 : i32
    %c0_i32_1 = arith.constant 0 : i32
    return %c0_i32, %c0_i32_0 : i32, i32
  }
  func.func @transform_2(%arg0: i32) -> (i32, i32) {
    %c0_i32 = arith.constant 0 : i32
    %c0_i32_0 = arith.constant 0 : i32
    %c0_i32_1 = arith.constant 0 : i32
    return %c0_i32, %c0_i32_0 : i32, i32
  }
  func.func @transform_3(%arg0: i32) -> (i32, i32) {
    %c0_i32 = arith.constant 0 : i32
    %c0_i32_0 = arith.constant 0 : i32
    %c0_i32_1 = arith.constant 0 : i32
    return %c0_i32, %c0_i32_0 : i32, i32
  }
  func.func @transform_4(%arg0: i32) -> (i32, i32) {
    %c0_i32 = arith.constant 0 : i32
    %c0_i32_0 = arith.constant 0 : i32
    %c0_i32_1 = arith.constant 0 : i32
    return %c0_i32, %c0_i32_0 : i32, i32
  }
  func.func @transform_5(%arg0: i32) -> (i32, i32) {
    %c0_i32 = arith.constant 0 : i32
    %c0_i32_0 = arith.constant 0 : i32
    %c0_i32_1 = arith.constant 0 : i32
    return %c0_i32, %c0_i32_0 : i32, i32
  }
  func.func @transform_6(%arg0: i32) -> (i32, i32) {
    %c0_i32 = arith.constant 0 : i32
    %c0_i32_0 = arith.constant 0 : i32
    %c0_i32_1 = arith.constant 0 : i32
    return %c0_i32, %c0_i32_0 : i32, i32
  }
  func.func @transform_7(%arg0: i32) -> (i32, i32) {
    %c0_i32 = arith.constant 0 : i32
    %c0_i32_0 = arith.constant 0 : i32
    %c0_i32_1 = arith.constant 0 : i32
    return %c0_i32, %c0_i32_0 : i32, i32
  }
  func.func @transform_8(%arg0: i32) -> (i32, i32) {
    %c0_i32 = arith.constant 0 : i32
    %c0_i32_0 = arith.constant 0 : i32
    %c0_i32_1 = arith.constant 0 : i32
    return %c0_i32, %c0_i32_0 : i32, i32
  }
  func.func @transform_9(%arg0: i32) -> (i32, i32) {
    %c0_i32 = arith.constant 0 : i32
    %c0_i32_0 = arith.constant 0 : i32
    %c0_i32_1 = arith.constant 0 : i32
    return %c0_i32, %c0_i32_0 : i32, i32
  }
  func.func @transform_10(%arg0: i32) -> (i32, i32) {
    %c0_i32 = arith.constant 0 : i32
    %c0_i32_0 = arith.constant 0 : i32
    %c0_i32_1 = arith.constant 0 : i32
    return %c0_i32, %c0_i32_0 : i32, i32
  }
  func.func @transform_11(%arg0: i32) -> (i32, i32) {
    %c0_i32 = arith.constant 0 : i32
    %c0_i32_0 = arith.constant 0 : i32
    %c0_i32_1 = arith.constant 0 : i32
    return %c0_i32, %c0_i32_0 : i32, i32
  }
  func.func @transform_12(%arg0: i32) -> (i32, i32, i32) {
    %c0_i32 = arith.constant 0 : i32
    %c0_i32_0 = arith.constant 0 : i32
    %c0_i32_1 = arith.constant 0 : i32
    return %arg0, %c0_i32, %c0_i32_0 : i32, i32, i32
  }
  func.func @transform_13(%arg0: i32) -> (i32, i32, i32) {
    %c0_i32 = arith.constant 0 : i32
    %c0_i32_0 = arith.constant 0 : i32
    %c0_i32_1 = arith.constant 0 : i32
    return %arg0, %c0_i32, %c0_i32_0 : i32, i32, i32
  }
  func.func @transform_14(%arg0: i32) -> (i32, i32, i32) {
    %c0_i32 = arith.constant 0 : i32
    %c0_i32_0 = arith.constant 0 : i32
    %c0_i32_1 = arith.constant 0 : i32
    return %arg0, %c0_i32, %c0_i32_0 : i32, i32, i32
  }
  func.func @transform_15(%arg0: i32) -> (i32, i32, i32) {
    %c0_i32 = arith.constant 0 : i32
    %c0_i32_0 = arith.constant 0 : i32
    %c0_i32_1 = arith.constant 0 : i32
    return %arg0, %c0_i32, %c0_i32_0 : i32, i32, i32
  }
  func.func @transform_16(%arg0: i32) -> (i32, i32, i32) {
    %c0_i32 = arith.constant 0 : i32
    %c0_i32_0 = arith.constant 0 : i32
    %c0_i32_1 = arith.constant 0 : i32
    return %arg0, %c0_i32, %c0_i32_0 : i32, i32, i32
  }
  func.func @transform_17(%arg0: i32) -> (i32, i32, i32) {
    %c0_i32 = arith.constant 0 : i32
    %c0_i32_0 = arith.constant 0 : i32
    %c0_i32_1 = arith.constant 0 : i32
    return %arg0, %c0_i32, %c0_i32_0 : i32, i32, i32
  }
  func.func @transform_18(%arg0: i32) -> (i32, i32, i32) {
    %c0_i32 = arith.constant 0 : i32
    %c0_i32_0 = arith.constant 0 : i32
    %c0_i32_1 = arith.constant 0 : i32
    return %arg0, %c0_i32, %c0_i32_0 : i32, i32, i32
  }
  func.func @transform_19(%arg0: i32) -> (i32, i32, i32) {
    %c0_i32 = arith.constant 0 : i32
    %c0_i32_0 = arith.constant 0 : i32
    %c0_i32_1 = arith.constant 0 : i32
    return %arg0, %c0_i32, %c0_i32_0 : i32, i32, i32
  }
  func.func @transform_20(%arg0: i32) -> (i32, i32, i32) {
    %c0_i32 = arith.constant 0 : i32
    %c0_i32_0 = arith.constant 0 : i32
    %c0_i32_1 = arith.constant 0 : i32
    return %arg0, %c0_i32, %c0_i32_0 : i32, i32, i32
  }
  func.func @transform_21(%arg0: i32) -> (i32, i32, i32) {
    %c0_i32 = arith.constant 0 : i32
    %c0_i32_0 = arith.constant 0 : i32
    %c0_i32_1 = arith.constant 0 : i32
    return %arg0, %c0_i32, %c0_i32_0 : i32, i32, i32
  }
  func.func @transform_22(%arg0: i32) -> (i32, i32, i32) {
    %c0_i32 = arith.constant 0 : i32
    %c0_i32_0 = arith.constant 0 : i32
    %c0_i32_1 = arith.constant 0 : i32
    return %arg0, %c0_i32, %c0_i32_0 : i32, i32, i32
  }
  func.func @transform_23(%arg0: i32) -> (i32, i32, i32) {
    %c0_i32 = arith.constant 0 : i32
    %c0_i32_0 = arith.constant 0 : i32
    %c0_i32_1 = arith.constant 0 : i32
    return %arg0, %c0_i32, %c0_i32_0 : i32, i32, i32
  }
  func.func @transform_24(%arg0: i32) -> (i32, i32) {
    %c0_i32 = arith.constant 0 : i32
    %c0_i32_0 = arith.constant 0 : i32
    %c0_i32_1 = arith.constant 0 : i32
    return %c0_i32, %c0_i32_0 : i32, i32
  }
  func.func @transform_25(%arg0: i32) -> (i32, i32) {
    %c0_i32 = arith.constant 0 : i32
    %c0_i32_0 = arith.constant 0 : i32
    %c0_i32_1 = arith.constant 0 : i32
    return %c0_i32, %c0_i32_0 : i32, i32
  }
  func.func @transform_26(%arg0: i32) -> (i32, i32) {
    %c0_i32 = arith.constant 0 : i32
    %c0_i32_0 = arith.constant 0 : i32
    %c0_i32_1 = arith.constant 0 : i32
    return %c0_i32, %c0_i32_0 : i32, i32
  }
}

</mosaic_0001>

<bundles_post_ra>
// kernel: forward.1
= control target key start
LH: loop header
LB: loop body
LE: loop exit
PB: predicated region body
PF: predicated region fallthrough
CT: control target
= control target key end

     0   :  { %s7482_s27 = smov 0   ;;  %s9019_s0 = inlined_call_operand.vmem [shape: f32[16,36], index: 0, kind: input, shape index: {}]   ;;  %s9020_s1 = inlined_call_operand.vmem [shape: bf16[36,64], index: 1, kind: input, shape index: {}]   ;;  %s9021_s2 = inlined_call_operand.vmem [shape: f32[1,64], index: 2, kind: input, shape index: {}]   ;;  %s9022_s3 = inlined_call_operand.vmem [shape: bf16[64,256], index: 3, kind: input, shape index: {}]   ;;  %s9023_s4 = inlined_call_operand.vmem [shape: bf16[128,256], index: 4, kind: input, shape index: {}]   ;;  %s9024_s5 = inlined_call_operand.vmem [shape: f32[1,256], index: 5, kind: input, shape index: {}]   ;;  %s9025_s6 = inlined_call_operand.vmem [shape: bf16[128,256], index: 6, kind: input, shape index: {}]   ;;  %s9026_s7 = inlined_call_operand.vmem [shape: bf16[128,256], index: 7, kind: input, shape index: {}]   ;;  %s9027_s8 = inlined_call_operand.vmem [shape: f32[1,256], index: 8, kind: input, shape index: {}]   ;;  %s9028_s9 = inlined_call_operand.vmem [shape: bf16[16,16], index: 9, kind: input, shape index: {}]   ;;  %s9029_s10 = inlined_call_operand.vmem [shape: bf16[64,64], index: 10, kind: input, shape index: {}]   ;;  %s9030_s11 = inlined_call_operand.vmem [shape: bf16[2,16], index: 11, kind: input, shape index: {}]   ;;  %s9031_s12 = inlined_call_operand.vmem [shape: bf16[2,64,192], index: 12, kind: input, shape index: {}]   ;;  %s9032_s13 = inlined_call_operand.vmem [shape: f32[2,1,192], index: 13, kind: input, shape index: {}]   ;;  %s9033_s14 = inlined_call_operand.vmem [shape: bf16[2,64,64], index: 14, kind: input, shape index: {}]   ;;  %s9034_s15 = inlined_call_operand.vmem [shape: f32[2,1,64], index: 15, kind: input, shape index: {}]   ;;  %s9035_s16 = inlined_call_operand.vmem [shape: bf16[2,64,2048], index: 16, kind: input, shape index: {}]   ;;  %s9036_s17 = inlined_call_operand.vmem [shape: f32[2,1,2048], index: 17, kind: input, shape index: {}]   ;;  %s9037_s18 = inlined_call_operand.vmem [shape: bf16[2,2048,64], index: 18, kind: input, shape index: {}]   ;;  %s9038_s19 = inlined_call_operand.vmem [shape: f32[2,1,64], index: 19, kind: input, shape index: {}]   ;;  %s9039_s20 = inlined_call_operand.vmem [shape: f32[2,1,64], index: 20, kind: input, shape index: {}]   ;;  %s9040_s21 = inlined_call_operand.vmem [shape: f32[2,1,64], index: 21, kind: input, shape index: {}]   ;;  %s9041_s22 = inlined_call_operand.vmem [shape: f32[2,1,64], index: 22, kind: input, shape index: {}]   ;;  %s9042_s23 = inlined_call_operand.vmem [shape: f32[2,1,64], index: 23, kind: input, shape index: {}]   ;;  %s9043_s24 = inlined_call_operand.vmem [shape: bf16[64,2], index: 24, kind: input, shape index: {}]   ;;  %s9044_s25 = inlined_call_operand.vmem [shape: f32[1,2], index: 25, kind: input, shape index: {}]   ;;  %s9045_s26 = inlined_call_operand.vmem [shape: f32[2,2], index: 26, kind: output, shape index: {}]  }
   0x1   :  { %9058 = sst [smem:[#allocation6_spill]] %s9019_s0 }
   0x2   :  { %9059 = sst [smem:[#allocation7_spill]] %s9020_s1 }
   0x3   :  { %9060 = sst [smem:[#allocation8_spill]] %s9021_s2 }
   0x4   :  { %9061 = sst [smem:[#allocation9_spill]] %s9022_s3 }
   0x5   :  { %9062 = sst [smem:[#allocation10_spill]] %s9023_s4 }
   0x6   :  { %9063 = sst [smem:[#allocation11_spill]] %s9024_s5 }
   0x7   :  { %9064 = sst [smem:[#allocation12_spill]] %s9025_s6 }
   0x8   :  { %9065 = sst [smem:[#allocation13_spill]] %s9026_s7 }
   0x9   :  { %9066 = sst [smem:[#allocation14_spill]] %s9027_s8 }
   0xa   :  { %9067 = sst [smem:[#allocation15_spill]] %s9028_s9 }
   0xb   :  { %9068 = sst [smem:[#allocation16_spill]] %s9029_s10 }
   0xc   :  { %9069 = sst [smem:[#allocation17_spill]] %s9030_s11 }
   0xd   :  { %9070 = sst [smem:[#allocation18_spill]] %s9031_s12 }
   0xe   :  { %9071 = sst [smem:[#allocation19_spill]] %s9032_s13 }
   0xf   :  { %9072 = sst [smem:[#allocation20_spill]] %s9033_s14 }
  0x10   :  { %9073 = sst [smem:[#allocation21_spill]] %s9035_s16 }
  0x11   :  { %9074 = sst [smem:[#allocation22_spill]] %s9036_s17 }
  0x12   :  { %9075 = sst [smem:[#allocation23_spill]] %s9043_s24 }
  0x13   :  { %9076 = sst [smem:[#allocation24_spill]] %s9044_s25 }
  0x14   :  { %9077 = sst [smem:[#allocation25_spill]] %s9045_s26 }
  0x15 LB: > { %9078 = sst [smem:[#allocation5_spill]] %s7341_s27  ;;  %s7488_s3 = sadd.s32 4294967295, %s7341_s27   ;;  %s7341_s27 = sphi %s7482_s27, %s36_s27  }
  0x16   : > { %p5659_p0 = scmp.ge.s32.totalorder %s7341_s27, 1  ;;  %p803_p1 = scmp.lt.s32.totalorder %s7341_s27, 3 }
  0x18   : > { %p804_p2 = pnand %p5659_p0, %p803_p1 }
  0x19   : > { %p909_p3 = scmp.lt.s32.totalorder (!%p804_p2), %s7488_s3, 1  ;;  %s9079_s12 = sld [smem:[#allocation18_spill]] (!%p804_p2) }
  0x1a   : > { %807 = sbr.rel (%p804_p2) target bundleno = 7220 (0x1c34), region = 124  ;;  %s9080_s13 = sld [smem:[#allocation19_spill]] (!%p804_p2) }
  0x1b   : > { %s9081_s14 = sld [smem:[#allocation20_spill]] (!%p804_p2)  ;;  %p5670_p4 = scmp.ne.s32.totalorder (!%p804_p2), %s7488_s3, 0 }
  0x1c   : > { %s9082_s16 = sld [smem:[#allocation21_spill]] (!%p804_p2) }
  0x1d   : > { %s9083_s17 = sld [smem:[#allocation22_spill]] (!%p804_p2) }
  0x1f   : > { %s7494_s7 = scalar_select %p909_p3, %s7488_s3, 1 }
  0x20   : > { %s9084_s27 = sld [smem:[#allocation7_spill]] (!%p5670_p4)  ;;  %s9055_s29 = smov (!%p5670_p4), 64  }
  0x21   : > { %s6818_s28 = sshll.u32 %s7494_s7, 6  ;;  %s5662_s8 = sshll.u32 %s7494_s7, 1 }
  0x22   : > { %s7501_s0 = scalar_lea.vmem %s9079_s12, %s6818_s28  ;;  %s7506_s2 = scalar_lea.vmem %s9080_s13, %s5662_s8 }
  0x23   : > { %s6819_s5 = sshll.u32 %s7494_s7, 5  ;;  %s6820_s11 = sshll.u32 %s7494_s7, 9 }
  0x24   : > { %s7516_s25 = scalar_lea.vmem %s9081_s14, %s6819_s5  ;;  %s7522_s28 = scalar_lea.vmem %s9082_s16, %s6820_s11 }
  0x25   : > { %s5667_s12 = sshll.u32 %s7494_s7, 4  ;;  %s6821_s13 = sshll.u32 %s7494_s7, 10 }
  0x26   : > { %s7528_s30 = scalar_lea.vmem %s9083_s17, %s5667_s12  ;;  %s7534_s1 = scalar_lea.vmem %s9037_s18, %s6821_s13 }
  0x27   : > { %959 = sbr.rel (%p5670_p4) target bundleno = 5116 (0x13fc), region = 128  ;;  %s9085_s5 = smov (!%p5670_p4), %s9084_s27 }
  0x28   : > { %s9086_s4 = sld [smem:[#allocation10_spill]] (!%p5670_p4) }
  0x29   : > { %s9087_s6 = sld [smem:[#allocation6_spill]] (!%p5670_p4) }
  0x2a   : > { %s9088_s13 = sld [smem:[#allocation9_spill]] (!%p5670_p4) }
  0x2b   : > { %s9089_s26 = sld [smem:[#allocation8_spill]] (!%p5670_p4) }
  0x2c   : > { %v967_v0 = vld [vmem:[%s9084_s27 + $0x10] sm:$0x3]  ;;  %vm991_vm0 = vcmask 1041408   ;;  %v6823_v15 = vld [vmem:[%s9085_s5 + $0x8] sm:$0xff]  ;;  %v6822_v21 = vld [vmem:[%s9085_s5] sm:$0xff]  ;;  %vm987_vm1 = vcmask 293888  }
  0x2d   : > { %v981_v1 = vunpack.c.l.b16 %v967_v0  ;;  %vm1085_vm2 = vcmask 523264   ;;  %s9090_s16 = sld [smem:[#allocation11_spill]] }
  0x2e   : > { %v5772_v2 = vld [vmem:[%s9086_s4 + $0x70] sm:$0xf]  ;;  %v6847_v3 = vld [vmem:[%s9086_s4 + $0x74] sm:$0xf0]  ;;  %v5764_v4 = vld [vmem:[%s9086_s4 + $0x60] sm:$0xf] }
  0x2f   : > { %v6845_v5 = vld [vmem:[%s9086_s4 + $0x64] sm:$0xf0]  ;;  %v984_v6 = vpack.c.b16 %v981_v1, %v981_v1  ;;  %v7572_v7 = vor.u32 %v6847_v3, %v5772_v2  ;;  %v6846_v8 = vld [vmem:[%s9086_s4 + $0x74] sm:$0xf]  ;;  %v5774_v9 = vld [vmem:[%s9086_s4 + $0x78] sm:$0xf0] }
  0x30   : > { %v7580_v10 = vor.u32 %v6846_v8, %v5774_v9  ;;  %v6844_v11 = vld [vmem:[%s9086_s4 + $0x64] sm:$0xf]  ;;  %v5766_v12 = vld [vmem:[%s9086_s4 + $0x68] sm:$0xf0]  ;;  %v7589_v14 = vor.u32 %v6845_v5, %v5764_v4  ;;  %v5756_v16 = vld [vmem:[%s9086_s4 + $0x50] sm:$0xf] }
  0x31   : > { %v993_v13 = vsel %vm991_vm0, %v984_v6, 0  ;;  %1197 = vmatpush.bf16.msra.mxu3 %v7572_v7  ;;  %v6843_v17 = vld [vmem:[%s9086_s4 + $0x54] sm:$0xf0]  ;;  %v7601_v18 = vor.u32 %v6844_v11, %v5766_v12  ;;  %v6842_v19 = vld [vmem:[%s9086_s4 + $0x54] sm:$0xf]  ;;  %v960_v22 = vld [vmem:[%s9087_s6] sm:$0xff] }
  0x32   : > { %1000 = vmatpush.bf16.msra.mxu2 %v993_v13  ;;  %1210 = vmatpush.bf16.msra.mxu0 %v7580_v10  ;;  %v5758_v20 = vld [vmem:[%s9086_s4 + $0x58] sm:$0xf0]  ;;  %v7616_v23 = vor.u32 %v6843_v17, %v5756_v16  ;;  %v961_v24 = vld [vmem:[%s9087_s6 + $0x8] sm:$0xff]  ;;  %v5748_v25 = vld [vmem:[%s9086_s4 + $0x40] sm:$0xf]  ;;  %s9091_s24 = sld [smem:[#allocation13_spill]] }
  0x33   : > { %v6841_v26 = vld [vmem:[%s9086_s4 + $0x44] sm:$0xf0]  ;;  %v7628_v27 = vor.u32 %v6842_v19, %v5758_v20  ;;  %v6840_v28 = vld [vmem:[%s9086_s4 + $0x44] sm:$0xf]  ;;  %v5750_v29 = vld [vmem:[%s9086_s4 + $0x48] sm:$0xf0]  ;;  %v962_v30 = vpack.c.bf16 %v961_v24, %v960_v22 }
  0x34   : > { %v7637_v31 = vor.u32 %v6841_v26, %v5748_v25  ;;  %v5740_v32 = vld [vmem:[%s9086_s4 + $0x30] sm:$0xf]  ;;  %v6839_v33 = vld [vmem:[%s9086_s4 + $0x34] sm:$0xf0]  ;;  %v7646_v34 = vor.u32 %v6840_v28, %v5750_v29  ;;  %v6830_v38 = vld [vmem:[%s9088_s13 + $0x34] sm:$0xf] }
  0x35   : > { %1198 = vmatpush.bf16.msra.mxu3 %v7589_v14  ;;  %v7649_v35 = vor.u32 %v6839_v33, %v5740_v32  ;;  %v5706_v36 = vld [vmem:[%s9088_s13 + $0x30] sm:$0xf]  ;;  %v6831_v37 = vld [vmem:[%s9088_s13 + $0x34] sm:$0xf0]  ;;  %v5708_v40 = vld [vmem:[%s9088_s13 + $0x38] sm:$0xf0] }
  0x36   : > { %1001 = vmatpush.bf16.msra.mxu2 %v6823_v15  ;;  %1211 = vmatpush.bf16.msra.mxu0 %v7601_v18  ;;  %v5707_v39 = vor.u32 %v6831_v37, %v5706_v36  ;;  %v5732_v41 = vld [vmem:[%s9086_s4 + $0x20] sm:$0xf]  ;;  %v6837_v42 = vld [vmem:[%s9086_s4 + $0x24] sm:$0xf0]  ;;  %v5711_v43 = vor.u32 %v6830_v38, %v5708_v40  ;;  %v6838_v45 = vld [vmem:[%s9086_s4 + $0x34] sm:$0xf] }
  0x37   : > { %v7671_v44 = vor.u32 %v6837_v42, %v5732_v41  ;;  %v5742_v46 = vld [vmem:[%s9086_s4 + $0x38] sm:$0xf0]  ;;  %v5698_v48 = vld [vmem:[%s9088_s13 + $0x20] sm:$0xf]  ;;  %v6829_v49 = vld [vmem:[%s9088_s13 + $0x24] sm:$0xf0] }
  0x38   : > { %1093 = vmatpush.bf16.msra.mxu1 %v5707_v39  ;;  %v7679_v47 = vor.u32 %v6838_v45, %v5742_v46  ;;  %v6828_v50 = vld [vmem:[%s9088_s13 + $0x24] sm:$0xf]  ;;  %v5699_v51 = vor.u32 %v6829_v49, %v5698_v48  ;;  %v5700_v52 = vld [vmem:[%s9088_s13 + $0x28] sm:$0xf0]  ;;  %v5724_v53 = vld [vmem:[%s9086_s4 + $0x10] sm:$0xf] }
  0x39   : > { %1199 = vmatpush.bf16.msra.mxu3 %v7616_v23  ;;  %v6835_v54 = vld [vmem:[%s9086_s4 + $0x14] sm:$0xf0]  ;;  %v5703_v55 = vor.u32 %v6828_v50, %v5700_v52  ;;  %v6836_v57 = vld [vmem:[%s9086_s4 + $0x24] sm:$0xf]  ;;  %v5734_v58 = vld [vmem:[%s9086_s4 + $0x28] sm:$0xf0] }
  0x3a   : > { %1002 = vmatpush.bf16.msra.mxu2 %v6822_v21  ;;  %1212 = vmatpush.bf16.msra.mxu0 %v7628_v27  ;;  %v7701_v56 = vor.u32 %v6835_v54, %v5724_v53  ;;  %v7709_v59 = vor.u32 %v6836_v57, %v5734_v58  ;;  %v5690_v60 = vld [vmem:[%s9088_s13 + $0x10] sm:$0xf]  ;;  %v6827_v61 = vld [vmem:[%s9088_s13 + $0x14] sm:$0xf0]  ;;  %v6826_v62 = vld [vmem:[%s9088_s13 + $0x14] sm:$0xf] }
  0x3b   : > { %v5691_v63 = vor.u32 %v6827_v61, %v5690_v60  ;;  %v5692_v0 = vld [vmem:[%s9088_s13 + $0x18] sm:$0xf0]  ;;  %v5716_v1 = vld [vmem:[%s9086_s4] sm:$0xf]  ;;  %v6833_v2 = vld [vmem:[%s9086_s4 + $0x4] sm:$0xf0] }
  0x3c   : > { %1094 = vmatpush.bf16.msra.mxu1 %v5699_v51  ;;  %v5695_v3 = vor.u32 %v6826_v62, %v5692_v0  ;;  %v7731_v4 = vor.u32 %v6833_v2, %v5716_v1  ;;  %v6834_v5 = vld [vmem:[%s9086_s4 + $0x14] sm:$0xf]  ;;  %v5726_v6 = vld [vmem:[%s9086_s4 + $0x18] sm:$0xf0]  ;;  %v5682_v9 = vld [vmem:[%s9088_s13] sm:$0xf] }
  0x3d   : > { %5679 = vmatmul.msk.bf16.vlgmr.msra.gmra.mxu2 %vm987_vm1, %v962_v30  ;;  %1200 = vmatpush.bf16.msra.mxu3 %v7637_v31  ;;  %v7739_v8 = vor.u32 %v6834_v5, %v5726_v6  ;;  %v6825_v11 = vld [vmem:[%s9088_s13 + $0x4] sm:$0xf0]  ;;  %v6824_v12 = vld [vmem:[%s9088_s13 + $0x4] sm:$0xf]  ;;  %v5684_v15 = vld [vmem:[%s9088_s13 + $0x8] sm:$0xf0]  ;;  %v1011_v6 = vlaneseq }
  0x3e   : > { %1213 = vmatpush.bf16.msra.mxu0 %v7646_v34  ;;  %1107 = vmatpush.bf16.msrb.mxu2 %v5711_v43  ;;  %v5683_v13 = vor.u32 %v6825_v11, %v5682_v9  ;;  %v6832_v16 = vld [vmem:[%s9086_s4 + $0x4] sm:$0xf]  ;;  %v5687_v17 = vor.u32 %v6824_v12, %v5684_v15  ;;  %v5718_v19 = vld [vmem:[%s9086_s4 + $0x8] sm:$0xf0]  ;;  %v7343_v20 = vmov 0   ;;  %s9092_s17 = sld [smem:[#allocation12_spill]] }
  0x3f   : > { %v7763_v21 = vor.u32 %v6832_v16, %v5718_v19  ;;  %v7105_v24 = vld [vmem:[%s9089_s26] ss:$0 sm:$0xff]  ;;  %s9093_s11 = sld [smem:[#allocation14_spill]] }
  0x40   : > { %1095 = vmatpush.bf16.msra.mxu1 %v5691_v63  ;;  %v7838_v39 = vld [vmem:[%s9090_s16] sm:$0x3]  ;;  %s9095_s4 = sld [smem:[#allocation15_spill]] }
  0x41   : > { %1201 = vmatpush.bf16.msra.mxu3 %v7649_v35  ;;  %v1041_v40 = vperm.slane %v7838_v39, 0  ;;  %v1042_v45 = vperm.slane %v7838_v39, 1 }
  0x42   : > { %1214 = vmatpush.bf16.msra.mxu0 %v7679_v47  ;;  %1108 = vmatpush.bf16.msrb.mxu2 %v5703_v55 }
  0x44   : > { %1096 = vmatpush.bf16.msra.mxu1 %v5683_v13 }
  0x45   : > { %1202 = vmatpush.bf16.msra.mxu3 %v7671_v44 }
  0x46   : > { %1215 = vmatpush.bf16.msra.mxu0 %v7709_v59  ;;  %1109 = vmatpush.bf16.msrb.mxu2 %v5695_v3 }
  0x48   : > { %1278 = vmatpush.bf16.msrb.mxu1 %v7572_v7 }
  0x49   : > { %1203 = vmatpush.bf16.msra.mxu3 %v7701_v56 }
  0x4a   : > { %1216 = vmatpush.bf16.msra.mxu0 %v7739_v8  ;;  %1110 = vmatpush.bf16.msrb.mxu2 %v5687_v17  ;;  %v7853_v17 = vand.u32 127, %v1011_v6 }
  0x4c   : > { %1279 = vmatpush.bf16.msrb.mxu1 %v7589_v14  ;;  %vm1013_vm11 = vcmp.lt.s32.totalorder %v7853_v17, 64 }
  0x4d   : > { %1204 = vmatpush.bf16.msra.mxu3 %v7731_v4 }
  0x4e   : > { %1217 = vmatpush.bf16.msra.mxu0 %v7763_v21  ;;  %1291 = vmatpush.bf16.msra.mxu2 %v7580_v10 }
  0x50   : > { %1205 = vmatmul.bf16.vlgmr.msra.gmra.mxu3 %v7343_v20  ;;  %1280 = vmatpush.bf16.msrb.mxu1 %v7616_v23 }
  0x51   : > { %1383 = vmatpush.bf16.msrb.mxu3 %v7572_v7  ;;  %1218 = vmatmul.bf16.vlgmr.msra.gmra.mxu0 %v7343_v20 }
  0x52   : > { %1396 = vmatpush.bf16.msrb.mxu0 %v7580_v10  ;;  %1292 = vmatpush.bf16.msra.mxu2 %v7601_v18 }
  0x54   : > { %1281 = vmatpush.bf16.msrb.mxu1 %v7637_v31 }
  0x55   : > { %1384 = vmatpush.bf16.msrb.mxu3 %v7589_v14 }
  0x56   : > { %1397 = vmatpush.bf16.msrb.mxu0 %v7601_v18  ;;  %1293 = vmatpush.bf16.msra.mxu2 %v7628_v27 }
  0x58   : > { %1282 = vmatpush.bf16.msrb.mxu1 %v7649_v35 }
  0x59   : > { %1385 = vmatpush.bf16.msrb.mxu3 %v7616_v23 }
  0x5a   : > { %1398 = vmatpush.bf16.msrb.mxu0 %v7628_v27  ;;  %1294 = vmatpush.bf16.msra.mxu2 %v7646_v34 }
  0x5c   : > { %1283 = vmatpush.bf16.msrb.mxu1 %v7671_v44 }
  0x5d   : > { %1386 = vmatpush.bf16.msrb.mxu3 %v7637_v31 }
  0x5e   : > { %1399 = vmatpush.bf16.msrb.mxu0 %v7646_v34  ;;  %1295 = vmatpush.bf16.msra.mxu2 %v7679_v47 }
  0x60   : > { %1284 = vmatpush.bf16.msrb.mxu1 %v7701_v56 }
  0x61   : > { %1387 = vmatpush.bf16.msrb.mxu3 %v7649_v35 }
  0x62   : > { %1400 = vmatpush.bf16.msrb.mxu0 %v7679_v47  ;;  %1296 = vmatpush.bf16.msra.mxu2 %v7709_v59 }
  0x64   : > { %1285 = vmatpush.bf16.msrb.mxu1 %v7731_v4 }
  0x65   : > { %1388 = vmatpush.bf16.msrb.mxu3 %v7671_v44 }
  0x66   : > { %1401 = vmatpush.bf16.msrb.mxu0 %v7709_v59  ;;  %1297 = vmatpush.bf16.msra.mxu2 %v7739_v8 }
  0x69   : > { %1389 = vmatpush.bf16.msrb.mxu3 %v7701_v56 }
  0x6a   : > { %1402 = vmatpush.bf16.msrb.mxu0 %v7739_v8  ;;  %1298 = vmatpush.bf16.msra.mxu2 %v7763_v21 }
  0x6d   : > { %1390 = vmatpush.bf16.msrb.mxu3 %v7731_v4 }
  0x6e   : > { %1403 = vmatpush.bf16.msrb.mxu0 %v7763_v21 }
  0x71   : > { %1593 = vmatpush.bf16.msra.mxu3 %v7572_v7 }
  0x72   : > { %1606 = vmatpush.bf16.msra.mxu0 %v7580_v10 }
  0x75   : > { %1594 = vmatpush.bf16.msra.mxu3 %v7589_v14 }
  0x76   : > { %1607 = vmatpush.bf16.msra.mxu0 %v7601_v18 }
  0x79   : > { %1595 = vmatpush.bf16.msra.mxu3 %v7616_v23 }
  0x7a   : > { %1608 = vmatpush.bf16.msra.mxu0 %v7628_v27 }
  0x7d   : > { %1596 = vmatpush.bf16.msra.mxu3 %v7637_v31 }
  0x7e   : > { %1609 = vmatpush.bf16.msra.mxu0 %v7646_v34 }
  0x81   : > { %1597 = vmatpush.bf16.msra.mxu3 %v7649_v35 }
  0x82   : > { %1610 = vmatpush.bf16.msra.mxu0 %v7679_v47 }
  0x85   : > { %1598 = vmatpush.bf16.msra.mxu3 %v7671_v44 }
  0x86   : > { %1611 = vmatpush.bf16.msra.mxu0 %v7709_v59 }
  0x89   : > { %1599 = vmatpush.bf16.msra.mxu3 %v7701_v56 }
  0x8a   : > { %1612 = vmatpush.bf16.msra.mxu0 %v7739_v8 }
  0x8d   : > { %1600 = vmatpush.bf16.msra.mxu3 %v7731_v4 }
  0x8e   : > { %1613 = vmatpush.bf16.msra.mxu0 %v7763_v21 }
  0xc0   : > { %v1004_v22 = vpop.f32.mrf.mxu2 }
  0xc1   : > { %v1005_v25 = vadd.f32 %v7105_v24, %v1004_v22 }
  0xc3   : > { %v1009_v29 = vmax.f32 %v1005_v25, 0.0 }
  0xc8   : > { %v1006_v26 = vpop.f32.mrf.mxu2 }
  0xc9   : > { %v1007_v28 = vadd.f32 %v7105_v24, %v1006_v26 }
  0xcb   : > { %v1010_v30 = vmax.f32 %v1007_v28, 0.0 }
  0xcd   : > { %v1039_v32 = vpack.c.bf16 %v1010_v30, %v1009_v29 }
  0xce   : > { %v1219_v33 = vpop.f32.mrf.mxu0 }
  0xcf   : > { %5712 = vmatmul.msk.bf16.vlgmr.msra.gmra.mxu1 %vm1085_vm2, %v1039_v32  ;;  %5713 = vmatmul.msk.bf16.vlgmr.msrb.gmra.mxu2 %vm1085_vm2, %v1039_v32 }
  0xd0   : > { %1488 = vmatpush.bf16.msra.mxu1 %v7572_v7  ;;  %1501 = vmatpush.bf16.msrb.mxu2 %v7580_v10 }
  0xd3   : > { %v1206_v36 = vpop.f32.mrf.mxu3 }
  0xd4   : > { %1489 = vmatpush.bf16.msra.mxu1 %v7589_v14  ;;  %1502 = vmatpush.bf16.msrb.mxu2 %v7601_v18 }
  0xd6   : > { %v1221_v37 = vpop.f32.mrf.mxu0 }
  0xd8   : > { %1490 = vmatpush.bf16.msra.mxu1 %v7616_v23  ;;  %1503 = vmatpush.bf16.msrb.mxu2 %v7628_v27 }
  0xdb   : > { %v1208_v38 = vpop.f32.mrf.mxu3 }
  0xdc   : > { %1491 = vmatpush.bf16.msra.mxu1 %v7637_v31  ;;  %1504 = vmatpush.bf16.msrb.mxu2 %v7646_v34 }
  0xe0   : > { %1492 = vmatpush.bf16.msra.mxu1 %v7649_v35  ;;  %1505 = vmatpush.bf16.msrb.mxu2 %v7679_v47 }
  0xe4   : > { %1493 = vmatpush.bf16.msra.mxu1 %v7671_v44  ;;  %1506 = vmatpush.bf16.msrb.mxu2 %v7709_v59 }
  0xe8   : > { %1494 = vmatpush.bf16.msra.mxu1 %v7701_v56  ;;  %1507 = vmatpush.bf16.msrb.mxu2 %v7739_v8 }
  0xec   : > { %1495 = vmatpush.bf16.msra.mxu1 %v7731_v4  ;;  %1508 = vmatpush.bf16.msrb.mxu2 %v7763_v21 }
 0x14c   : > { %v1098_v41 = vpop.f32.mrf.mxu1 }
 0x14d   : > { %v7843_v42 = vadd.f32 %v1098_v41, %v1041_v40 }
 0x14f   : > { %v1223_v43 = vadd.f32 %v1206_v36, %v7843_v42 }
 0x151   : > { %v5778_v46 = vmul.f32 -1.442695, %v1223_v43 }
 0x152   : > { %v1112_v48 = vpop.f32.mrf.mxu2 }
 0x153   : > { %7106 = vpow2.f32 %v5778_v46  ;;  %v7849_v49 = vadd.f32 %v1112_v48, %v1042_v45 }
 0x154   : > { %v7882_v46 = vpop.f32.mrf.mxu1 }
 0x155   : > { %v1224_v50 = vadd.f32 %v1219_v33, %v7849_v49 }
 0x157   : > { %v5779_v51 = vmul.f32 -1.442695, %v1224_v50 }
 0x159   : > { %v7107_v52 = vpop.eup %7106  ;;  %7108 = vpow2.f32 %v5779_v51 }
 0x15a   : > { %v1228_v53 = vadd.f32 1.0, %v7107_v52  ;;  %v7884_v48 = vpop.f32.mrf.mxu2 }
 0x15c   : > { %7110 = vrcp.f32 %v1228_v53  ;;  %v1240_v13 = vand.u32 2147483648, %v1228_v53  ;;  %vm1234_vm8 = vweird.f32 %v1228_v53  ;;  %v1238_v16 = vand.u32 2147483647, %v1228_v53 }
 0x15e   : > { %v1241_v22 = vor.u32 1.1754944e-38, %v1240_v13  ;;  %vm1239_vm10 = vcmp.eq.f32.partialorder %v1238_v16, 8.507059e+37 }
 0x15f   : > { %v7109_v54 = vpop.eup %7108 }
 0x160   : > { %v1249_v55 = vadd.f32 1.0, %v7109_v54 }
 0x162   : > { %v7111_v57 = vpop.eup %7110  ;;  %7112 = vrcp.f32 %v1249_v55  ;;  %v1261_v0 = vand.u32 2147483648, %v1249_v55  ;;  %v1259_v3 = vand.u32 2147483647, %v1249_v55  ;;  %vm1255_vm4 = vweird.f32 %v1249_v55 }
 0x163   : > { %v1230_v58 = vmul.f32 %v7111_v57, %v1228_v53  ;;  %vm1235_vm6 = vweird.f32 %v7111_v57  ;;  %7114 = vtanh.f32 %v1223_v43 }
 0x164   : > { %v1262_v9 = vor.u32 1.1754944e-38, %v1261_v0  ;;  %vm1260_vm7 = vcmp.eq.f32.partialorder %v1259_v3, 8.507059e+37  ;;  %vm1236_vm9 = vmor %vm1234_vm8, %vm1235_vm6 }
 0x165   : > { %v1231_v61 = vsub.f32 1.0, %v1230_v58 }
 0x167   : > { %v1232_v1 = vmul.f32 %v7111_v57, %v1231_v61 }
 0x168   : > { %v7113_v60 = vpop.eup %7112 }
 0x169   : > { %v1251_v62 = vmul.f32 %v7113_v60, %v1249_v55  ;;  %vm1256_vm3 = vweird.f32 %v7113_v60  ;;  %v1233_v11 = vadd.f32 %v7111_v57, %v1232_v1  ;;  %v7115_v25 = vpop.eup %7114 }
 0x16a   : > { %vm1257_vm5 = vmor %vm1255_vm4, %vm1256_vm3 }
 0x16b   : > { %v1252_v63 = vsub.f32 1.0, %v1251_v62  ;;  %v1237_v19 = vsel %vm1236_vm9, %v7111_v57, %v1233_v11 }
 0x16c   : > { %v1242_v24 = vsel %vm1239_vm10, %v1241_v22, %v1237_v19 }
 0x16d   : > { %v1253_v2 = vmul.f32 %v7113_v60, %v1252_v63  ;;  %v1245_v26 = vsel %vm1013_vm11, %v1242_v24, %v7115_v25 }
 0x16f   : > { %v1254_v5 = vadd.f32 %v7113_v60, %v1253_v2 }
 0x171   : > { %v1258_v12 = vsel %vm1257_vm5, %v7113_v60, %v1254_v5 }
 0x172   : > { %v1263_v15 = vsel %vm1260_vm7, %v1262_v9, %v1258_v12 }
 0x173   : > { %1268 = vrot.lane.b32.xlu0 %v1263_v15, %s9055_s29 }
 0x17b   : > { %1265 = vrot.lane.b32.xlu0 %v1245_v26, %s9055_s29 }
 0x1e5   : > { %v1269_v28 = vpop.permute.xlu0 %1268 }
 0x1e6   : > { %v1270_v29 = vsel %vm1013_vm11, %v1263_v15, %v1269_v28  ;;  %v1271_v38 = vsel %vm1013_vm11, %v1269_v28, %v1263_v15 }
 0x1e7   : > { %v1272_v32 = vmul.f32 0.0, %v1270_v29 }
 0x1ed   : > { %v1266_v30 = vpop.permute.xlu0 %1265 }
 0x1ee   : > { %v1267_v33 = vmul.f32 %v1266_v30, %v1245_v26 }
 0x1f0   : > { %v7861_v36 = vadd.f32 %v1272_v32, %v1267_v33 }
 0x1f2   : > { %7116 = vtanh.f32 %v7861_v36 }
 0x1f8   : > { %v7117_v37 = vpop.eup %7116 }
 0x1f9   : > { %v1275_v41 = vmul.f32 %v7117_v37, %v1271_v38 }
 0x1fb   : > { %1276 = vst [vmem:[#allocation3] sm:$0x3] %v1275_v41  ;;  %v1277_v43 = vpack.c.bf16 %v1275_v41, %v1275_v41 }
 0x1fd   : > { %1286 = vmatmul.bf16.vlgmr.msrb.gmra.mxu1 %v1277_v43  ;;  %1299 = vmatmul.bf16.vlgmr.msra.gmra.mxu2 %v1277_v43 }
 0x1fe   : > { %1677 = vmatpush.bf16.msrb.mxu1 %v7572_v7  ;;  %1690 = vmatpush.bf16.msra.mxu2 %v7580_v10 }
 0x202   : > { %1678 = vmatpush.bf16.msrb.mxu1 %v7589_v14  ;;  %1691 = vmatpush.bf16.msra.mxu2 %v7601_v18 }
 0x206   : > { %1679 = vmatpush.bf16.msrb.mxu1 %v7616_v23  ;;  %1692 = vmatpush.bf16.msra.mxu2 %v7628_v27 }
 0x20a   : > { %1680 = vmatpush.bf16.msrb.mxu1 %v7637_v31  ;;  %1693 = vmatpush.bf16.msra.mxu2 %v7646_v34 }
 0x20e   : > { %1681 = vmatpush.bf16.msrb.mxu1 %v7649_v35  ;;  %1694 = vmatpush.bf16.msra.mxu2 %v7679_v47 }
 0x212   : > { %1682 = vmatpush.bf16.msrb.mxu1 %v7671_v44  ;;  %1695 = vmatpush.bf16.msra.mxu2 %v7709_v59 }
 0x216   : > { %1683 = vmatpush.bf16.msrb.mxu1 %v7701_v56  ;;  %1696 = vmatpush.bf16.msra.mxu2 %v7739_v8 }
 0x21a   : > { %1684 = vmatpush.bf16.msrb.mxu1 %v7731_v4  ;;  %1697 = vmatpush.bf16.msra.mxu2 %v7763_v21 }
 0x27a   : > { %v1287_v50 = vpop.f32.mrf.mxu1 }
 0x27b   : > { %v1306_v51 = vrot.slane %v1287_v50, 6 }
 0x27d   : > { %v1310_v52 = vadd.f32 %v1306_v51, %v7843_v42 }
 0x27f   : > { %v5780_v53 = vmul.f32 -1.442695, %v1310_v52 }
 0x280   : > { %v1300_v54 = vpop.f32.mrf.mxu2 }
 0x281   : > { %7118 = vpow2.f32 %v5780_v53  ;;  %v1307_v55 = vrot.slane %v1300_v54, 6  ;;  %v1372_v54 = vrot.slane %v7861_v36, 6 }
 0x282   : > { %v1289_v57 = vpop.f32.mrf.mxu1 }
 0x283   : > { %v1311_v58 = vadd.f32 %v1307_v55, %v7849_v49 }
 0x285   : > { %v5781_v60 = vmul.f32 -1.442695, %v1311_v58 }
 0x287   : > { %v7119_v61 = vpop.eup %7118  ;;  %7120 = vpow2.f32 %v5781_v60 }
 0x288   : > { %v1315_v62 = vadd.f32 1.0, %v7119_v61  ;;  %v1302_v63 = vpop.f32.mrf.mxu2 }
 0x28a   : > { %7122 = vrcp.f32 %v1315_v62  ;;  %v1327_v24 = vand.u32 2147483648, %v1315_v62  ;;  %vm1321_vm0 = vweird.f32 %v1315_v62  ;;  %v1325_v26 = vand.u32 2147483647, %v1315_v62 }
 0x28c   : > { %v1328_v33 = vor.u32 1.1754944e-38, %v1327_v24  ;;  %vm1326_vm4 = vcmp.eq.f32.partialorder %v1325_v26, 8.507059e+37 }
 0x28d   : > { %v7121_v0 = vpop.eup %7120 }
 0x28e   : > { %v1336_v1 = vadd.f32 1.0, %v7121_v0 }
 0x290   : > { %v7123_v2 = vpop.eup %7122  ;;  %7124 = vrcp.f32 %v1336_v1  ;;  %v1348_v13 = vand.u32 2147483648, %v1336_v1  ;;  %v1346_v16 = vand.u32 2147483647, %v1336_v1  ;;  %vm1342_vm14 = vweird.f32 %v1336_v1 }
 0x291   : > { %v1317_v3 = vmul.f32 %v7123_v2, %v1315_v62  ;;  %vm1322_vm13 = vweird.f32 %v7123_v2  ;;  %7126 = vtanh.f32 %v1310_v52 }
 0x292   : > { %v1349_v25 = vor.u32 1.1754944e-38, %v1348_v13  ;;  %vm1347_vm1 = vcmp.eq.f32.partialorder %v1346_v16, 8.507059e+37  ;;  %vm1323_vm3 = vmor %vm1321_vm0, %vm1322_vm13 }
 0x293   : > { %v1318_v5 = vsub.f32 1.0, %v1317_v3 }
 0x295   : > { %v1319_v11 = vmul.f32 %v7123_v2, %v1318_v5 }
 0x296   : > { %v7125_v6 = vpop.eup %7124 }
 0x297   : > { %v1338_v9 = vmul.f32 %v7125_v6, %v1336_v1  ;;  %vm1343_vm12 = vweird.f32 %v7125_v6  ;;  %v1320_v19 = vadd.f32 %v7123_v2, %v1319_v11  ;;  %v7127_v38 = vpop.eup %7126 }
 0x298   : > { %vm1344_vm15 = vmor %vm1342_vm14, %vm1343_vm12 }
 0x299   : > { %v1339_v12 = vsub.f32 1.0, %v1338_v9  ;;  %v1324_v30 = vsel %vm1323_vm3, %v7123_v2, %v1320_v19 }
 0x29a   : > { %v1329_v37 = vsel %vm1326_vm4, %v1328_v33, %v1324_v30 }
 0x29b   : > { %v1340_v15 = vmul.f32 %v7125_v6, %v1339_v12  ;;  %v1332_v41 = vsel %vm1013_vm11, %v1329_v37, %v7127_v38 }
 0x29c   : > { %v1353_v43 = vrot.slane %v1332_v41, 2 }
 0x29d   : > { %v1341_v22 = vadd.f32 %v7125_v6, %v1340_v15 }
 0x29f   : > { %v1345_v28 = vsel %vm1344_vm15, %v7125_v6, %v1341_v22 }
 0x2a0   : > { %v1350_v29 = vsel %vm1347_vm1, %v1349_v25, %v1345_v28 }
 0x2a1   : > { %v1362_v32 = vrot.slane %v1350_v29, 2 }
 0x2a3   : > { %1364 = vrot.lane.b32.xlu1 %v1362_v32, %s9055_s29 }
 0x2ab   : > { %1355 = vrot.lane.b32.xlu1 %v1353_v43, %s9055_s29 }
 0x315   : > { %v1365_v50 = vpop.permute.xlu1 %1364 }
 0x316   : > { %v1367_v51 = vrot.slane %v1365_v50, 6  ;;  %v1370_v63 = vsel %vm1013_vm11, %v1365_v50, %v1362_v32 }
 0x318   : > { %v1369_v52 = vsel %vm1013_vm11, %v1350_v29, %v1367_v51 }
 0x319   : > { %v1374_v57 = vmul.f32 %v1372_v54, %v1369_v52 }
 0x31d   : > { %v1356_v53 = vpop.permute.xlu1 %1355 }
 0x31e   : > { %v1358_v55 = vrot.slane %v1356_v53, 6 }
 0x320   : > { %v1360_v58 = vmul.f32 %v1358_v55, %v1332_v41 }
 0x322   : > { %v7895_v60 = vadd.f32 %v1374_v57, %v1360_v58 }
 0x324   : > { %7128 = vtanh.f32 %v7895_v60 }
 0x32a   : > { %v7129_v61 = vpop.eup %7128 }
 0x32b   : > { %v1378_v62 = vrot.slane %v7129_v61, 2 }
 0x32d   : > { %v1380_v0 = vmul.f32 %v1378_v62, %v1370_v63 }
 0x32f   : > { %1381 = vst [vmem:[#allocation3 + $0x2] sm:$0x3] %v1380_v0  ;;  %v1382_v1 = vpack.c.bf16 %v1380_v0, %v1380_v0 }
 0x331   : > { %1391 = vmatmul.bf16.vlgmr.msrb.gmra.mxu3 %v1382_v1  ;;  %1404 = vmatmul.bf16.vlgmr.msrb.gmra.mxu0 %v1382_v1 }
 0x332   : > { %1782 = vmatpush.bf16.msrb.mxu3 %v7572_v7  ;;  %1795 = vmatpush.bf16.msrb.mxu0 %v7580_v10 }
 0x336   : > { %1783 = vmatpush.bf16.msrb.mxu3 %v7589_v14  ;;  %1796 = vmatpush.bf16.msrb.mxu0 %v7601_v18 }
 0x33a   : > { %1784 = vmatpush.bf16.msrb.mxu3 %v7616_v23  ;;  %1797 = vmatpush.bf16.msrb.mxu0 %v7628_v27 }
 0x33e   : > { %1785 = vmatpush.bf16.msrb.mxu3 %v7637_v31  ;;  %1798 = vmatpush.bf16.msrb.mxu0 %v7646_v34 }
 0x342   : > { %1786 = vmatpush.bf16.msrb.mxu3 %v7649_v35  ;;  %1799 = vmatpush.bf16.msrb.mxu0 %v7679_v47 }
 0x346   : > { %1787 = vmatpush.bf16.msrb.mxu3 %v7671_v44  ;;  %1800 = vmatpush.bf16.msrb.mxu0 %v7709_v59 }
 0x34a   : > { %1788 = vmatpush.bf16.msrb.mxu3 %v7701_v56  ;;  %1801 = vmatpush.bf16.msrb.mxu0 %v7739_v8 }
 0x34e   : > { %1789 = vmatpush.bf16.msrb.mxu3 %v7731_v4  ;;  %1802 = vmatpush.bf16.msrb.mxu0 %v7763_v21 }
 0x3ae   : > { %v1405_v36 = vpop.f32.mrf.mxu0 }
 0x3af   : > { %v1412_v2 = vrot.slane %v1405_v36, 4 }
 0x3b1   : > { %v1416_v3 = vadd.f32 %v1412_v2, %v7849_v49 }
 0x3b3   : > { %v5783_v5 = vmul.f32 -1.442695, %v1416_v3 }
 0x3b4   : > { %v1392_v6 = vpop.f32.mrf.mxu3 }
 0x3b5   : > { %7130 = vpow2.f32 %v5783_v5  ;;  %v1411_v9 = vrot.slane %v1392_v6, 4  ;;  %v1477_v6 = vrot.slane %v7895_v60, 6 }
 0x3b6   : > { %v1407_v11 = vpop.f32.mrf.mxu0 }
 0x3b7   : > { %v1415_v12 = vadd.f32 %v1411_v9, %v7843_v42 }
 0x3b9   : > { %v5782_v13 = vmul.f32 -1.442695, %v1415_v12 }
 0x3bb   : > { %v7131_v15 = vpop.eup %7130  ;;  %7132 = vpow2.f32 %v5782_v13 }
 0x3bc   : > { %v1441_v16 = vadd.f32 1.0, %v7131_v15  ;;  %v1394_v19 = vpop.f32.mrf.mxu3 }
 0x3be   : > { %7134 = vrcp.f32 %v1441_v16  ;;  %v1453_v29 = vand.u32 2147483648, %v1441_v16  ;;  %v1451_v32 = vand.u32 2147483647, %v1441_v16  ;;  %vm1447_vm6 = vweird.f32 %v1441_v16 }
 0x3c0   : > { %v1454_v41 = vor.u32 1.1754944e-38, %v1453_v29  ;;  %vm1452_vm8 = vcmp.eq.f32.partialorder %v1451_v32, 8.507059e+37 }
 0x3c1   : > { %v7133_v22 = vpop.eup %7132 }
 0x3c2   : > { %v1420_v24 = vadd.f32 1.0, %v7133_v22 }
 0x3c4   : > { %v7135_v25 = vpop.eup %7134  ;;  %7136 = vrcp.f32 %v1420_v24  ;;  %v1432_v52 = vand.u32 2147483648, %v1420_v24  ;;  %v1430_v55 = vand.u32 2147483647, %v1420_v24  ;;  %vm1426_vm10 = vweird.f32 %v1420_v24 }
 0x3c5   : > { %v1443_v26 = vmul.f32 %v7135_v25, %v1441_v16  ;;  %vm1448_vm5 = vweird.f32 %v7135_v25  ;;  %7138 = vtanh.f32 %v1415_v12 }
 0x3c6   : > { %vm1449_vm7 = vmor %vm1447_vm6, %vm1448_vm5  ;;  %v1433_v58 = vor.u32 1.1754944e-38, %v1432_v52  ;;  %vm1431_vm13 = vcmp.eq.f32.partialorder %v1430_v55, 8.507059e+37 }
 0x3c7   : > { %v1444_v28 = vsub.f32 1.0, %v1443_v26 }
 0x3c9   : > { %v1445_v30 = vmul.f32 %v7135_v25, %v1444_v28 }
 0x3ca   : > { %v7137_v33 = vpop.eup %7136 }
 0x3cb   : > { %v1446_v37 = vadd.f32 %v7135_v25, %v1445_v30  ;;  %v1422_v38 = vmul.f32 %v7137_v33, %v1420_v24  ;;  %vm1427_vm9 = vweird.f32 %v7137_v33  ;;  %v7139_v62 = vpop.eup %7138 }
 0x3cc   : > { %vm1428_vm12 = vmor %vm1426_vm10, %vm1427_vm9 }
 0x3cd   : > { %v1450_v43 = vsel %vm1449_vm7, %v7135_v25, %v1446_v37  ;;  %v1423_v50 = vsub.f32 1.0, %v1422_v38 }
 0x3ce   : > { %v1455_v51 = vsel %vm1452_vm8, %v1454_v41, %v1450_v43 }
 0x3cf   : > { %v1467_v53 = vrot.slane %v1455_v51, 4  ;;  %v1424_v54 = vmul.f32 %v7137_v33, %v1423_v50 }
 0x3d1   : > { %1469 = vrot.lane.b32.xlu2 %v1467_v53, %s9055_s29  ;;  %v1425_v57 = vadd.f32 %v7137_v33, %v1424_v54 }
 0x3d3   : > { %v1429_v61 = vsel %vm1428_vm12, %v7137_v33, %v1425_v57 }
 0x3d4   : > { %v1434_v63 = vsel %vm1431_vm13, %v1433_v58, %v1429_v61 }
 0x3d5   : > { %v1437_v0 = vsel %vm1013_vm11, %v1434_v63, %v7139_v62 }
 0x3d6   : > { %v1458_v1 = vrot.slane %v1437_v0, 4 }
 0x3d9   : > { %1460 = vrot.lane.b32.xlu2 %v1458_v1, %s9055_s29 }
 0x42b   : > { %v1470_v36 = vpop.permute.xlu2 %1469 }
 0x42c   : > { %v1472_v2 = vrot.slane %v1470_v36, 4  ;;  %v1475_v19 = vsel %vm1013_vm11, %v1470_v36, %v1467_v53 }
 0x42e   : > { %v1474_v3 = vsel %vm1013_vm11, %v1455_v51, %v1472_v2 }
 0x42f   : > { %v1479_v11 = vmul.f32 %v1477_v6, %v1474_v3 }
 0x433   : > { %v1461_v5 = vpop.permute.xlu2 %1460 }
 0x434   : > { %v1463_v9 = vrot.slane %v1461_v5, 4 }
 0x436   : > { %v1465_v12 = vmul.f32 %v1463_v9, %v1437_v0 }
 0x438   : > { %v7925_v13 = vadd.f32 %v1479_v11, %v1465_v12 }
 0x43a   : > { %7140 = vtanh.f32 %v7925_v13  ;;  %v1582_v1 = vrot.slane %v7925_v13, 6  ;;  %v7963_v13 = vadd.f32 %v7884_v48, %v1042_v45 }
 0x440   : > { %v7141_v15 = vpop.eup %7140 }
 0x441   : > { %v1483_v16 = vrot.slane %v7141_v15, 4 }
 0x443   : > { %v1485_v22 = vmul.f32 %v1483_v16, %v1475_v19 }
 0x445   : > { %1486 = vst [vmem:[#allocation3 + $0x4] sm:$0x3] %v1485_v22  ;;  %v1487_v24 = vpack.c.bf16 %v1485_v22, %v1485_v22 }
 0x447   : > { %1496 = vmatmul.bf16.vlgmr.msra.gmra.mxu1 %v1487_v24  ;;  %1509 = vmatmul.bf16.vlgmr.msrb.gmra.mxu2 %v1487_v24  ;;  %v7969_v24 = vadd.f32 %v7882_v46, %v1041_v40 }
 0x448   : > { %1887 = vmatpush.bf16.msra.mxu1 %v7572_v7  ;;  %1900 = vmatpush.bf16.msrb.mxu2 %v7580_v10 }
 0x44c   : > { %1888 = vmatpush.bf16.msra.mxu1 %v7589_v14  ;;  %1901 = vmatpush.bf16.msrb.mxu2 %v7601_v18 }
 0x450   : > { %1889 = vmatpush.bf16.msra.mxu1 %v7616_v23  ;;  %1902 = vmatpush.bf16.msrb.mxu2 %v7628_v27 }
 0x454   : > { %1890 = vmatpush.bf16.msra.mxu1 %v7637_v31  ;;  %1903 = vmatpush.bf16.msrb.mxu2 %v7646_v34 }
 0x458   : > { %1891 = vmatpush.bf16.msra.mxu1 %v7649_v35  ;;  %1904 = vmatpush.bf16.msrb.mxu2 %v7679_v47 }
 0x45c   : > { %1892 = vmatpush.bf16.msra.mxu1 %v7671_v44  ;;  %1905 = vmatpush.bf16.msrb.mxu2 %v7709_v59 }
 0x460   : > { %1893 = vmatpush.bf16.msra.mxu1 %v7701_v56  ;;  %1906 = vmatpush.bf16.msrb.mxu2 %v7739_v8 }
 0x464   : > { %1894 = vmatpush.bf16.msra.mxu1 %v7731_v4  ;;  %1907 = vmatpush.bf16.msrb.mxu2 %v7763_v21 }
 0x4c4   : > { %v1497_v7 = vpop.f32.mrf.mxu1 }
 0x4c5   : > { %v1516_v10 = vrot.slane %v1497_v7, 2 }
 0x4c7   : > { %v1520_v14 = vadd.f32 %v1516_v10, %v7843_v42 }
 0x4c9   : > { %v5784_v18 = vmul.f32 -1.442695, %v1520_v14 }
 0x4ca   : > { %v1510_v23 = vpop.f32.mrf.mxu2 }
 0x4cb   : > { %7142 = vpow2.f32 %v5784_v18  ;;  %v1517_v27 = vrot.slane %v1510_v23, 2 }
 0x4cc   : > { %v1499_v31 = vpop.f32.mrf.mxu1 }
 0x4cd   : > { %v1521_v34 = vadd.f32 %v1517_v27, %v7849_v49 }
 0x4cf   : > { %v5785_v35 = vmul.f32 -1.442695, %v1521_v34 }
 0x4d1   : > { %v7143_v44 = vpop.eup %7142  ;;  %7144 = vpow2.f32 %v5785_v35 }
 0x4d2   : > { %v1525_v47 = vadd.f32 1.0, %v7143_v44  ;;  %v1512_v56 = vpop.f32.mrf.mxu2 }
 0x4d4   : > { %7146 = vrcp.f32 %v1525_v47  ;;  %v1537_v42 = vand.u32 2147483648, %v1525_v47  ;;  %v1535_v26 = vand.u32 2147483647, %v1525_v47  ;;  %vm1531_vm15 = vweird.f32 %v1525_v47 }
 0x4d6   : > { %v1538_v30 = vor.u32 1.1754944e-38, %v1537_v42  ;;  %vm1536_vm1 = vcmp.eq.f32.partialorder %v1535_v26, 8.507059e+37 }
 0x4d7   : > { %v7145_v59 = vpop.eup %7144 }
 0x4d8   : > { %v1546_v4 = vadd.f32 1.0, %v7145_v59 }
 0x4da   : > { %v7147_v8 = vpop.eup %7146  ;;  %7148 = vrcp.f32 %v1546_v4  ;;  %v1558_v41 = vand.u32 2147483648, %v1546_v4  ;;  %v1556_v51 = vand.u32 2147483647, %v1546_v4  ;;  %vm1552_vm4 = vweird.f32 %v1546_v4 }
 0x4db   : > { %v1527_v21 = vmul.f32 %v7147_v8, %v1525_v47  ;;  %7150 = vtanh.f32 %v1520_v14  ;;  %vm1532_vm14 = vweird.f32 %v7147_v8 }
 0x4dc   : > { %vm1533_vm0 = vmor %vm1531_vm15, %vm1532_vm14  ;;  %v1559_v54 = vor.u32 1.1754944e-38, %v1558_v41  ;;  %vm1557_vm6 = vcmp.eq.f32.partialorder %v1556_v51, 8.507059e+37 }
 0x4dd   : > { %v1528_v60 = vsub.f32 1.0, %v1527_v21 }
 0x4df   : > { %v1529_v25 = vmul.f32 %v7147_v8, %v1528_v60 }
 0x4e0   : > { %v7149_v28 = vpop.eup %7148 }
 0x4e1   : > { %v1530_v29 = vadd.f32 %v7147_v8, %v1529_v25  ;;  %v1548_v49 = vmul.f32 %v7149_v28, %v1546_v4  ;;  %v7151_v37 = vpop.eup %7150  ;;  %vm1553_vm3 = vweird.f32 %v7149_v28 }
 0x4e2   : > { %vm1554_vm5 = vmor %vm1552_vm4, %vm1553_vm3 }
 0x4e3   : > { %v1534_v32 = vsel %vm1533_vm0, %v7147_v8, %v1530_v29  ;;  %v1549_v33 = vsub.f32 1.0, %v1548_v49 }
 0x4e4   : > { %v1539_v38 = vsel %vm1536_vm1, %v1538_v30, %v1534_v32 }
 0x4e5   : > { %v1542_v43 = vsel %vm1013_vm11, %v1539_v38, %v7151_v37  ;;  %v1550_v50 = vmul.f32 %v7149_v28, %v1549_v33 }
 0x4e6   : > { %v1563_v52 = vrot.slane %v1542_v43, 6 }
 0x4e7   : > { %v1551_v53 = vadd.f32 %v7149_v28, %v1550_v50 }
 0x4e8   : > { %1565 = vrot.lane.b32.xlu1 %v1563_v52, %s9055_s29 }
 0x4e9   : > { %v1555_v55 = vsel %vm1554_vm5, %v7149_v28, %v1551_v53 }
 0x4ea   : > { %v1560_v57 = vsel %vm1557_vm6, %v1559_v54, %v1555_v55 }
 0x4eb   : > { %v1572_v58 = vrot.slane %v1560_v57, 6 }
 0x4ed   : > { %1574 = vrot.lane.b32.xlu0 %v1572_v58, %s9055_s29 }
 0x55a   : > { %v1566_v61 = vpop.permute.xlu1 %1565 }
 0x55b   : > { %v1568_v62 = vrot.slane %v1566_v61, 2 }
 0x55d   : > { %v1570_v2 = vmul.f32 %v1568_v62, %v1542_v43 }
 0x55f   : > { %v1575_v63 = vpop.permute.xlu0 %1574 }
 0x560   : > { %v1577_v0 = vrot.slane %v1575_v63, 2  ;;  %v1580_v11 = vsel %vm1013_vm11, %v1575_v63, %v1572_v58 }
 0x562   : > { %v1579_v36 = vsel %vm1013_vm11, %v1560_v57, %v1577_v0 }
 0x563   : > { %v1584_v3 = vmul.f32 %v1582_v1, %v1579_v36 }
 0x565   : > { %v7955_v5 = vadd.f32 %v1584_v3, %v1570_v2 }
 0x567   : > { %7152 = vtanh.f32 %v7955_v5  ;;  %v1669_v41 = vrot.slane %v7955_v5, 6 }
 0x56d   : > { %v7153_v6 = vpop.eup %7152 }
 0x56e   : > { %v1588_v9 = vrot.slane %v7153_v6, 6 }
 0x570   : > { %v1590_v12 = vmul.f32 %v1588_v9, %v1580_v11 }
 0x572   : > { %1591 = vst [vmem:[#allocation3 + $0x6] sm:$0x3] %v1590_v12  ;;  %v1592_v15 = vpack.c.bf16 %v1590_v12, %v1590_v12 }
 0x574   : > { %1601 = vmatmul.bf16.vlgmr.msra.gmra.mxu3 %v1592_v15  ;;  %1614 = vmatmul.bf16.vlgmr.msra.gmra.mxu0 %v1592_v15 }
 0x5f1   : > { %v1615_v16 = vpop.f32.mrf.mxu0 }
 0x5f2   : > { %v1620_v19 = vadd.f32 %v1615_v16, %v7963_v13 }
 0x5f4   : > { %v5787_v22 = vmul.f32 -1.442695, %v1620_v19 }
 0x5f6   : > { %7154 = vpow2.f32 %v5787_v22 }
 0x5f7   : > { %v1602_v7 = vpop.f32.mrf.mxu3 }
 0x5f8   : > { %v1619_v10 = vadd.f32 %v1602_v7, %v7969_v24 }
 0x5f9   : > { %v1617_v14 = vpop.f32.mrf.mxu0 }
 0x5fa   : > { %v5786_v18 = vmul.f32 -1.442695, %v1619_v10 }
 0x5fc   : > { %v7155_v23 = vpop.eup %7154  ;;  %7156 = vpow2.f32 %v5786_v18 }
 0x5fd   : > { %v1645_v27 = vadd.f32 1.0, %v7155_v23 }
 0x5ff   : > { %7158 = vrcp.f32 %v1645_v27  ;;  %v1604_v45 = vpop.f32.mrf.mxu3  ;;  %v1657_v44 = vand.u32 2147483648, %v1645_v27  ;;  %v1655_v46 = vand.u32 2147483647, %v1645_v27  ;;  %vm1651_vm8 = vweird.f32 %v1645_v27 }
 0x601   : > { %v1658_v4 = vor.u32 1.1754944e-38, %v1657_v44  ;;  %vm1656_vm10 = vcmp.eq.f32.partialorder %v1655_v46, 8.507059e+37 }
 0x602   : > { %v7157_v48 = vpop.eup %7156 }
 0x603   : > { %v1624_v31 = vadd.f32 1.0, %v7157_v48 }
 0x605   : > { %v7159_v34 = vpop.eup %7158  ;;  %7160 = vrcp.f32 %v1624_v31  ;;  %v1636_v42 = vand.u32 2147483648, %v1624_v31  ;;  %v1634_v26 = vand.u32 2147483647, %v1624_v31  ;;  %vm1630_vm13 = vweird.f32 %v1624_v31 }
 0x606   : > { %v1647_v35 = vmul.f32 %v7159_v34, %v1645_v27  ;;  %vm1652_vm7 = vweird.f32 %v7159_v34  ;;  %7162 = vtanh.f32 %v1619_v10 }
 0x607   : > { %vm1653_vm9 = vmor %vm1651_vm8, %vm1652_vm7  ;;  %v1637_v29 = vor.u32 1.1754944e-38, %v1636_v42  ;;  %vm1635_vm15 = vcmp.eq.f32.partialorder %v1634_v26, 8.507059e+37 }
 0x608   : > { %v1648_v39 = vsub.f32 1.0, %v1647_v35 }
 0x60a   : > { %v1649_v40 = vmul.f32 %v7159_v34, %v1648_v39 }
 0x60b   : > { %v7161_v47 = vpop.eup %7160 }
 0x60c   : > { %v1650_v56 = vadd.f32 %v7159_v34, %v1649_v40  ;;  %v1626_v59 = vmul.f32 %v7161_v47, %v1624_v31  ;;  %vm1631_vm12 = vweird.f32 %v7161_v47  ;;  %v7163_v30 = vpop.eup %7162 }
 0x60d   : > { %vm1632_vm14 = vmor %vm1630_vm13, %vm1631_vm12 }
 0x60e   : > { %v1654_v8 = vsel %vm1653_vm9, %v7159_v34, %v1650_v56  ;;  %v1627_v21 = vsub.f32 1.0, %v1626_v59 }
 0x60f   : > { %v1659_v60 = vsel %vm1656_vm10, %v1658_v4, %v1654_v8 }
 0x610   : > { %1664 = vrot.lane.b32.xlu2 %v1659_v60, %s9055_s29  ;;  %v1628_v25 = vmul.f32 %v7161_v47, %v1627_v21 }
 0x612   : > { %v1629_v28 = vadd.f32 %v7161_v47, %v1628_v25 }
 0x614   : > { %v1633_v49 = vsel %vm1632_vm14, %v7161_v47, %v1629_v28 }
 0x615   : > { %v1638_v32 = vsel %vm1635_vm15, %v1637_v29, %v1633_v49 }
 0x616   : > { %v1641_v33 = vsel %vm1013_vm11, %v1638_v32, %v7163_v30 }
 0x617   : > { %1661 = vrot.lane.b32.xlu0 %v1641_v33, %s9055_s29 }
 0x66a   : > { %v1665_v37 = vpop.permute.xlu2 %1664 }
 0x66b   : > { %v1666_v38 = vsel %vm1013_vm11, %v1659_v60, %v1665_v37  ;;  %v1667_v54 = vsel %vm1013_vm11, %v1665_v37, %v1659_v60 }
 0x66c   : > { %v1671_v50 = vmul.f32 %v1669_v41, %v1666_v38 }
 0x689   : > { %v1662_v43 = vpop.permute.xlu0 %1661 }
 0x68a   : > { %v1663_v51 = vmul.f32 %v1662_v43, %v1641_v33 }
 0x68c   : > { %v7979_v52 = vadd.f32 %v1671_v50, %v1663_v51 }
 0x68e   : > { %7164 = vtanh.f32 %v7979_v52  ;;  %v1771_v26 = vrot.slane %v7979_v52, 6 }
 0x694   : > { %v7165_v53 = vpop.eup %7164 }
 0x695   : > { %v1674_v55 = vmul.f32 %v7165_v53, %v1667_v54 }
 0x697   : > { %1675 = vst [vmem:[#allocation3 + $0x8] sm:$0x3] %v1674_v55  ;;  %v1676_v57 = vpack.c.bf16 %v1674_v55, %v1674_v55 }
 0x699   : > { %1685 = vmatmul.bf16.vlgmr.msrb.gmra.mxu1 %v1676_v57  ;;  %1698 = vmatmul.bf16.vlgmr.msra.gmra.mxu2 %v1676_v57 }
 0x716   : > { %v1686_v58 = vpop.f32.mrf.mxu1 }
 0x717   : > { %v1705_v61 = vrot.slane %v1686_v58, 6 }
 0x719   : > { %v1709_v62 = vadd.f32 %v1705_v61, %v7969_v24 }
 0x71b   : > { %v5788_v63 = vmul.f32 -1.442695, %v1709_v62 }
 0x71c   : > { %v1699_v0 = vpop.f32.mrf.mxu2 }
 0x71d   : > { %7166 = vpow2.f32 %v5788_v63  ;;  %v1706_v1 = vrot.slane %v1699_v0, 6 }
 0x71e   : > { %v1688_v36 = vpop.f32.mrf.mxu1 }
 0x71f   : > { %v1710_v2 = vadd.f32 %v1706_v1, %v7963_v13 }
 0x721   : > { %v5789_v3 = vmul.f32 -1.442695, %v1710_v2 }
 0x723   : > { %v7167_v5 = vpop.eup %7166  ;;  %7168 = vpow2.f32 %v5789_v3 }
 0x724   : > { %v1714_v6 = vadd.f32 1.0, %v7167_v5  ;;  %v1701_v9 = vpop.f32.mrf.mxu2 }
 0x726   : > { %7170 = vrcp.f32 %v1714_v6  ;;  %v1726_v22 = vand.u32 2147483648, %v1714_v6  ;;  %v1724_v10 = vand.u32 2147483647, %v1714_v6  ;;  %vm1720_vm1 = vweird.f32 %v1714_v6 }
 0x728   : > { %v1727_v27 = vor.u32 1.1754944e-38, %v1726_v22  ;;  %vm1725_vm4 = vcmp.eq.f32.partialorder %v1724_v10, 8.507059e+37 }
 0x729   : > { %v7169_v11 = vpop.eup %7168 }
 0x72a   : > { %v1735_v12 = vadd.f32 1.0, %v7169_v11 }
 0x72c   : > { %v7171_v15 = vpop.eup %7170  ;;  %7172 = vrcp.f32 %v1735_v12  ;;  %v1747_v35 = vand.u32 2147483648, %v1735_v12  ;;  %v1745_v40 = vand.u32 2147483647, %v1735_v12  ;;  %vm1741_vm6 = vweird.f32 %v1735_v12 }
 0x72d   : > { %v1716_v16 = vmul.f32 %v7171_v15, %v1714_v6  ;;  %7174 = vtanh.f32 %v1709_v62  ;;  %vm1721_vm0 = vweird.f32 %v7171_v15 }
 0x72e   : > { %vm1722_vm3 = vmor %vm1720_vm1, %vm1721_vm0  ;;  %v1748_v56 = vor.u32 1.1754944e-38, %v1747_v35  ;;  %vm1746_vm8 = vcmp.eq.f32.partialorder %v1745_v40, 8.507059e+37 }
 0x72f   : > { %v1717_v19 = vsub.f32 1.0, %v1716_v16 }
 0x731   : > { %v1718_v7 = vmul.f32 %v7171_v15, %v1717_v19 }
 0x732   : > { %v7173_v14 = vpop.eup %7172 }
 0x733   : > { %v1719_v18 = vadd.f32 %v7171_v15, %v1718_v7  ;;  %v1737_v23 = vmul.f32 %v7173_v14, %v1735_v12  ;;  %v7175_v31 = vpop.eup %7174  ;;  %vm1742_vm5 = vweird.f32 %v7173_v14 }
 0x734   : > { %vm1743_vm7 = vmor %vm1741_vm6, %vm1742_vm5 }
 0x735   : > { %v1723_v45 = vsel %vm1722_vm3, %v7171_v15, %v1719_v18  ;;  %v1738_v48 = vsub.f32 1.0, %v1737_v23 }
 0x736   : > { %v1728_v34 = vsel %vm1725_vm4, %v1727_v27, %v1723_v45 }
 0x737   : > { %v1731_v39 = vsel %vm1013_vm11, %v1728_v34, %v7175_v31  ;;  %v1739_v44 = vmul.f32 %v7173_v14, %v1738_v48 }
 0x738   : > { %v1752_v46 = vrot.slane %v1731_v39, 2 }
 0x739   : > { %v1740_v47 = vadd.f32 %v7173_v14, %v1739_v44 }
 0x73a   : > { %1754 = vrot.lane.b32.xlu2 %v1752_v46, %s9055_s29 }
 0x73b   : > { %v1744_v59 = vsel %vm1743_vm7, %v7173_v14, %v1740_v47 }
 0x73c   : > { %v1749_v4 = vsel %vm1746_vm8, %v1748_v56, %v1744_v59 }
 0x73d   : > { %v1761_v8 = vrot.slane %v1749_v4, 2 }
 0x73f   : > { %1763 = vrot.lane.b32.xlu1 %v1761_v8, %s9055_s29 }
 0x794   : > { %v1755_v21 = vpop.permute.xlu2 %1754 }
 0x795   : > { %v1757_v60 = vrot.slane %v1755_v21, 6 }
 0x797   : > { %v1759_v29 = vmul.f32 %v1757_v60, %v1731_v39 }
 0x7b1   : > { %v1764_v42 = vpop.permute.xlu1 %1763 }
 0x7b2   : > { %v1766_v25 = vrot.slane %v1764_v42, 6  ;;  %v1769_v37 = vsel %vm1013_vm11, %v1764_v42, %v1761_v8 }
 0x7b4   : > { %v1768_v28 = vsel %vm1013_vm11, %v1749_v4, %v1766_v25 }
 0x7b5   : > { %v1773_v49 = vmul.f32 %v1771_v26, %v1768_v28 }
 0x7b7   : > { %v7993_v30 = vadd.f32 %v1773_v49, %v1759_v29 }
 0x7b9   : > { %7176 = vtanh.f32 %v7993_v30  ;;  %v1876_v56 = vrot.slane %v7993_v30, 6 }
 0x7bf   : > { %v7177_v32 = vpop.eup %7176 }
 0x7c0   : > { %v1777_v33 = vrot.slane %v7177_v32, 2 }
 0x7c2   : > { %v1779_v38 = vmul.f32 %v1777_v33, %v1769_v37 }
 0x7c4   : > { %1780 = vst [vmem:[#allocation3 + $0xa] sm:$0x3] %v1779_v38  ;;  %v1781_v41 = vpack.c.bf16 %v1779_v38, %v1779_v38 }
 0x7c6   : > { %1790 = vmatmul.bf16.vlgmr.msrb.gmra.mxu3 %v1781_v41  ;;  %1803 = vmatmul.bf16.vlgmr.msrb.gmra.mxu0 %v1781_v41 }
 0x843   : > { %v1804_v43 = vpop.f32.mrf.mxu0 }
 0x844   : > { %v1811_v50 = vrot.slane %v1804_v43, 4 }
 0x846   : > { %v1815_v51 = vadd.f32 %v1811_v50, %v7963_v13 }
 0x848   : > { %v5791_v52 = vmul.f32 -1.442695, %v1815_v51 }
 0x849   : > { %v1791_v53 = vpop.f32.mrf.mxu3 }
 0x84a   : > { %7178 = vpow2.f32 %v5791_v52  ;;  %v1810_v54 = vrot.slane %v1791_v53, 4 }
 0x84b   : > { %v1806_v55 = vpop.f32.mrf.mxu0 }
 0x84c   : > { %v1814_v57 = vadd.f32 %v1810_v54, %v7969_v24 }
 0x84e   : > { %v5790_v58 = vmul.f32 -1.442695, %v1814_v57 }
 0x850   : > { %v7179_v61 = vpop.eup %7178  ;;  %7180 = vpow2.f32 %v5790_v58 }
 0x851   : > { %v1840_v62 = vadd.f32 1.0, %v7179_v61  ;;  %v1793_v63 = vpop.f32.mrf.mxu3 }
 0x853   : > { %7182 = vrcp.f32 %v1840_v62  ;;  %v1852_v5 = vand.u32 2147483648, %v1840_v62  ;;  %v1850_v9 = vand.u32 2147483647, %v1840_v62  ;;  %vm1846_vm10 = vweird.f32 %v1840_v62 }
 0x855   : > { %v1853_v16 = vor.u32 1.1754944e-38, %v1852_v5  ;;  %vm1851_vm13 = vcmp.eq.f32.partialorder %v1850_v9, 8.507059e+37 }
 0x856   : > { %v7181_v0 = vpop.eup %7180 }
 0x857   : > { %v1819_v1 = vadd.f32 1.0, %v7181_v0 }
 0x859   : > { %v7183_v36 = vpop.eup %7182  ;;  %7184 = vrcp.f32 %v1819_v1  ;;  %v1831_v10 = vand.u32 2147483648, %v1819_v1  ;;  %v1829_v23 = vand.u32 2147483647, %v1819_v1  ;;  %vm1825_vm15 = vweird.f32 %v1819_v1 }
 0x85a   : > { %v1842_v2 = vmul.f32 %v7183_v36, %v1840_v62  ;;  %vm1847_vm9 = vweird.f32 %v7183_v36  ;;  %7186 = vtanh.f32 %v1814_v57 }
 0x85b   : > { %vm1848_vm12 = vmor %vm1846_vm10, %vm1847_vm9  ;;  %v1832_v45 = vor.u32 1.1754944e-38, %v1831_v10  ;;  %vm1830_vm1 = vcmp.eq.f32.partialorder %v1829_v23, 8.507059e+37 }
 0x85c   : > { %v1843_v3 = vsub.f32 1.0, %v1842_v2 }
 0x85e   : > { %v1844_v6 = vmul.f32 %v7183_v36, %v1843_v3 }
 0x85f   : > { %v7185_v11 = vpop.eup %7184 }
 0x860   : > { %v1845_v12 = vadd.f32 %v7183_v36, %v1844_v6  ;;  %v1821_v15 = vmul.f32 %v7185_v11, %v1819_v1  ;;  %vm1826_vm14 = vweird.f32 %v7185_v11  ;;  %v7187_v31 = vpop.eup %7186 }
 0x861   : > { %vm1827_vm0 = vmor %vm1825_vm15, %vm1826_vm14 }
 0x862   : > { %v1849_v19 = vsel %vm1848_vm12, %v7183_v36, %v1845_v12  ;;  %v1822_v22 = vsub.f32 1.0, %v1821_v15 }
 0x863   : > { %v1854_v7 = vsel %vm1851_vm13, %v1853_v16, %v1849_v19 }
 0x864   : > { %v1866_v14 = vrot.slane %v1854_v7, 4  ;;  %v1823_v18 = vmul.f32 %v7185_v11, %v1822_v22 }
 0x866   : > { %1868 = vrot.lane.b32.xlu0 %v1866_v14, %s9055_s29  ;;  %v1824_v27 = vadd.f32 %v7185_v11, %v1823_v18  ;;  %v5918_v18 = vld [vmem:[%s9091_s24 + $0x78] sm:$0xf0] }
 0x868   : > { %v1828_v48 = vsel %vm1827_vm0, %v7185_v11, %v1824_v27  ;;  %v6876_v27 = vld [vmem:[%s9091_s24 + $0x64] sm:$0xf] }
 0x869   : > { %v1833_v34 = vsel %vm1830_vm1, %v1832_v45, %v1828_v48  ;;  %v5910_v45 = vld [vmem:[%s9091_s24 + $0x68] sm:$0xf0] }
 0x86a   : > { %v1836_v35 = vsel %vm1013_vm11, %v1833_v34, %v7187_v31  ;;  %v8041_v48 = vor.u32 %v6876_v27, %v5910_v45  ;;  %v6874_v31 = vld [vmem:[%s9091_s24 + $0x54] sm:$0xf]  ;;  %v5852_v34 = vld [vmem:[%s9092_s17 + $0x70] sm:$0xf]  ;;  %v6864_v27 = vld [vmem:[%s9091_s24 + $0x4] sm:$0xf] }
 0x86b   : > { %v1857_v39 = vrot.slane %v1836_v35, 4  ;;  %v5862_v45 = vld [vmem:[%s9091_s24 + $0x8] sm:$0xf0] }
 0x86d   : > { %1859 = vrot.lane.b32.xlu1 %v1857_v39, %s9055_s29  ;;  %v5902_v39 = vld [vmem:[%s9091_s24 + $0x58] sm:$0xf0] }
 0x8d8   : > { %v1869_v44 = vpop.permute.xlu0 %1868 }
 0x8d9   : > { %v1871_v40 = vrot.slane %v1869_v44, 4  ;;  %v1874_v25 = vsel %vm1013_vm11, %v1869_v44, %v1866_v14  ;;  %v6878_v14 = vld [vmem:[%s9091_s24 + $0x74] sm:$0xf] }
 0x8da   : > { %v8032_v23 = vor.u32 %v6878_v14, %v5918_v18 }
 0x8db   : > { %v1873_v46 = vsel %vm1013_vm11, %v1854_v7, %v1871_v40  ;;  %v6862_v40 = vld [vmem:[%s9092_s17 + $0x74] sm:$0xf] }
 0x8dc   : > { %v1878_v4 = vmul.f32 %v1876_v56, %v1873_v46  ;;  %2233 = vmatpush.bf16.msra.mxu2 %v8032_v23  ;;  %v5854_v46 = vld [vmem:[%s9092_s17 + $0x78] sm:$0xf0]  ;;  %v8062_v56 = vor.u32 %v6874_v31, %v5902_v39  ;;  %v8181_v31 = vor.u32 %v6864_v27, %v5862_v45 }
 0x8df   : > { %v1860_v47 = vpop.permute.xlu1 %1859 }
 0x8e0   : > { %v1862_v59 = vrot.slane %v1860_v47, 4  ;;  %v5857_v47 = vor.u32 %v6862_v40, %v5854_v46  ;;  %2234 = vmatpush.bf16.msra.mxu2 %v8041_v48  ;;  %v5814_v40 = vld [vmem:[%s9092_s17 + $0x28] sm:$0xf0]  ;;  %v5892_v46 = vld [vmem:[%s9091_s24 + $0x40] sm:$0xf] }
 0x8e2   : > { %v1864_v8 = vmul.f32 %v1862_v59, %v1836_v35  ;;  %v6863_v35 = vld [vmem:[%s9092_s17 + $0x74] sm:$0xf0]  ;;  %2126 = vmatpush.bf16.msra.mxu0 %v5857_v47  ;;  %v6872_v59 = vld [vmem:[%s9091_s24 + $0x44] sm:$0xf] }
 0x8e3   : > { %v5853_v44 = vor.u32 %v6863_v35, %v5852_v34  ;;  %v5812_v34 = vld [vmem:[%s9092_s17 + $0x20] sm:$0xf]  ;;  %v6853_v35 = vld [vmem:[%s9092_s17 + $0x24] sm:$0xf0] }
 0x8e4   : > { %v8007_v21 = vadd.f32 %v1878_v4, %v1864_v8  ;;  %v5894_v4 = vld [vmem:[%s9091_s24 + $0x48] sm:$0xf0]  ;;  %2235 = vmatpush.bf16.msra.mxu2 %v8062_v56  ;;  %v5813_v39 = vor.u32 %v6853_v35, %v5812_v34  ;;  %v8344_v35 = vld [vmem:[%s9093_s11] sm:$0x3] }
 0x8e5   : > { %2112 = vmatpush.bf16.msra.mxu3 %v5853_v44  ;;  %v8071_v8 = vor.u32 %v6872_v59, %v5894_v4  ;;  %v6852_v44 = vld [vmem:[%s9092_s17 + $0x24] sm:$0xf]  ;;  %v6873_v59 = vld [vmem:[%s9091_s24 + $0x44] sm:$0xf0] }
 0x8e6   : > { %7188 = vtanh.f32 %v8007_v21  ;;  %v5817_v47 = vor.u32 %v6852_v44, %v5814_v40  ;;  %v8204_v4 = vor.u32 %v6873_v59, %v5892_v46 }
 0x8e8   : > { %2236 = vmatpush.bf16.msra.mxu2 %v8071_v8 }
 0x8ec   : > { %v7189_v60 = vpop.eup %7188 }
 0x8ed   : > { %v1882_v42 = vrot.slane %v7189_v60, 4  ;;  %v5844_v60 = vld [vmem:[%s9092_s17 + $0x60] sm:$0xf] }
 0x8ef   : > { %v1884_v26 = vmul.f32 %v1882_v42, %v1874_v25  ;;  %v6861_v42 = vld [vmem:[%s9092_s17 + $0x64] sm:$0xf0]  ;;  %v6860_v25 = vld [vmem:[%s9092_s17 + $0x64] sm:$0xf] }
 0x8f1   : > { %1885 = vst [vmem:[#allocation3 + $0xc] sm:$0x3] %v1884_v26  ;;  %v1886_v28 = vpack.c.bf16 %v1884_v26, %v1884_v26  ;;  %v5845_v26 = vor.u32 %v6861_v42, %v5844_v60  ;;  %v5804_v60 = vld [vmem:[%s9092_s17 + $0x10] sm:$0xf]  ;;  %v6851_v42 = vld [vmem:[%s9092_s17 + $0x14] sm:$0xf0] }
 0x8f3   : > { %1895 = vmatmul.bf16.vlgmr.msra.gmra.mxu1 %v1886_v28  ;;  %1908 = vmatmul.bf16.vlgmr.msrb.gmra.mxu2 %v1886_v28  ;;  %v5846_v28 = vld [vmem:[%s9092_s17 + $0x68] sm:$0xf0] }
 0x8f4   : > { %2113 = vmatpush.bf16.msra.mxu3 %v5845_v26  ;;  %v5805_v26 = vor.u32 %v6851_v42, %v5804_v60 }
 0x970   : > { %v1896_v29 = vpop.f32.mrf.mxu1 }
 0x971   : > { %v1915_v49 = vrot.slane %v1896_v29, 2  ;;  %v6870_v29 = vld [vmem:[%s9091_s24 + $0x34] sm:$0xf] }
 0x973   : > { %v1919_v30 = vadd.f32 %v1915_v49, %v7969_v24  ;;  %v5886_v49 = vld [vmem:[%s9091_s24 + $0x38] sm:$0xf0] }
 0x975   : > { %v5792_v32 = vmul.f32 -1.442695, %v1919_v30 }
 0x976   : > { %v1909_v33 = vpop.f32.mrf.mxu2 }
 0x977   : > { %7190 = vpow2.f32 %v5792_v32  ;;  %v1916_v37 = vrot.slane %v1909_v33, 2  ;;  %v8092_v32 = vor.u32 %v6870_v29, %v5886_v49  ;;  %v5836_v33 = vld [vmem:[%s9092_s17 + $0x50] sm:$0xf]  ;;  %v6871_v49 = vld [vmem:[%s9091_s24 + $0x34] sm:$0xf0] }
 0x978   : > { %v1898_v38 = vpop.f32.mrf.mxu1  ;;  %v5884_v29 = vld [vmem:[%s9091_s24 + $0x30] sm:$0xf] }
 0x979   : > { %v1920_v41 = vadd.f32 %v1916_v37, %v7963_v13  ;;  %2237 = vmatpush.bf16.msra.mxu2 %v8092_v32  ;;  %v6859_v37 = vld [vmem:[%s9092_s17 + $0x54] sm:$0xf0]  ;;  %v6858_v38 = vld [vmem:[%s9092_s17 + $0x54] sm:$0xf] }
 0x97b   : > { %v5793_v43 = vmul.f32 -1.442695, %v1920_v41  ;;  %v5837_v41 = vor.u32 %v6859_v37, %v5836_v33  ;;  %v8226_v33 = vor.u32 %v6871_v49, %v5884_v29  ;;  %v5796_v37 = vld [vmem:[%s9092_s17] sm:$0xf] }
 0x97d   : > { %v7191_v50 = vpop.eup %7190  ;;  %7192 = vpow2.f32 %v5793_v43  ;;  %v5838_v43 = vld [vmem:[%s9092_s17 + $0x58] sm:$0xf0]  ;;  %2114 = vmatpush.bf16.msra.mxu3 %v5837_v41  ;;  %v6848_v41 = vld [vmem:[%s9092_s17 + $0x4] sm:$0xf] }
 0x97e   : > { %v1924_v51 = vadd.f32 1.0, %v7191_v50  ;;  %v1911_v52 = vpop.f32.mrf.mxu2  ;;  %v5916_v50 = vld [vmem:[%s9091_s24 + $0x70] sm:$0xf] }
 0x97f   : > { %v5841_v52 = vor.u32 %v6858_v38, %v5838_v43  ;;  %v6849_v38 = vld [vmem:[%s9092_s17 + $0x4] sm:$0xf0] }
 0x980   : > { %7194 = vrcp.f32 %v1924_v51  ;;  %v1936_v24 = vand.u32 2147483648, %v1924_v51  ;;  %v1934_v62 = vand.u32 2147483647, %v1924_v51  ;;  %vm1930_vm4 = vweird.f32 %v1924_v51 }
 0x981   : > { %v5797_v43 = vor.u32 %v6849_v38, %v5796_v37 }
 0x982   : > { %v1937_v1 = vor.u32 1.1754944e-38, %v1936_v24  ;;  %vm1935_vm6 = vcmp.eq.f32.partialorder %v1934_v62, 8.507059e+37  ;;  %v6857_v24 = vld [vmem:[%s9092_s17 + $0x44] sm:$0xf0] }
 0x983   : > { %v7193_v53 = vpop.eup %7192 }
 0x984   : > { %v1945_v54 = vadd.f32 1.0, %v7193_v53 }
 0x986   : > { %v7195_v55 = vpop.eup %7194  ;;  %7196 = vrcp.f32 %v1945_v54  ;;  %v1957_v6 = vand.u32 2147483648, %v1945_v54  ;;  %v1955_v12 = vand.u32 2147483647, %v1945_v54  ;;  %vm1951_vm8 = vweird.f32 %v1945_v54 }
 0x987   : > { %v1926_v57 = vmul.f32 %v7195_v55, %v1924_v51  ;;  %7198 = vtanh.f32 %v1919_v30  ;;  %vm1931_vm3 = vweird.f32 %v7195_v55  ;;  %v5849_v30 = vor.u32 %v6860_v25, %v5846_v28  ;;  %v6879_v51 = vld [vmem:[%s9091_s24 + $0x74] sm:$0xf0]  ;;  %v6850_v25 = vld [vmem:[%s9092_s17 + $0x14] sm:$0xf]  ;;  %v5806_v28 = vld [vmem:[%s9092_s17 + $0x18] sm:$0xf0] }
 0x988   : > { %vm1932_vm5 = vmor %vm1930_vm4, %vm1931_vm3  ;;  %v1958_v19 = vor.u32 1.1754944e-38, %v1957_v6  ;;  %vm1956_vm10 = vcmp.eq.f32.partialorder %v1955_v12, 8.507059e+37  ;;  %v8113_v53 = vor.u32 %v6879_v51, %v5916_v50  ;;  %v5820_v6 = vld [vmem:[%s9092_s17 + $0x30] sm:$0xf]  ;;  %v6854_v12 = vld [vmem:[%s9092_s17 + $0x34] sm:$0xf] }
 0x989   : > { %v1927_v58 = vsub.f32 1.0, %v1926_v57  ;;  %2127 = vmatpush.bf16.msra.mxu0 %v5849_v30  ;;  %v5809_v30 = vor.u32 %v6850_v25, %v5806_v28  ;;  %v5798_v50 = vld [vmem:[%s9092_s17 + $0x8] sm:$0xf0]  ;;  %v5876_v51 = vld [vmem:[%s9091_s24 + $0x20] sm:$0xf] }
 0x98a   : > { %2220 = vmatpush.bf16.msrb.mxu1 %v8113_v53 }
 0x98b   : > { %v1928_v61 = vmul.f32 %v7195_v55, %v1927_v58  ;;  %v5828_v58 = vld [vmem:[%s9092_s17 + $0x40] sm:$0xf] }
 0x98c   : > { %v7197_v63 = vpop.eup %7196  ;;  %v5829_v62 = vor.u32 %v6857_v24, %v5828_v58  ;;  %v5868_v24 = vld [vmem:[%s9091_s24 + $0x10] sm:$0xf] }
 0x98d   : > { %v1929_v0 = vadd.f32 %v7195_v55, %v1928_v61  ;;  %v1947_v13 = vmul.f32 %v7197_v63, %v1945_v54  ;;  %v7199_v3 = vpop.eup %7198  ;;  %vm1952_vm7 = vweird.f32 %v7197_v63  ;;  %v6868_v54 = vld [vmem:[%s9091_s24 + $0x24] sm:$0xf]  ;;  %2128 = vmatpush.bf16.msra.mxu0 %v5841_v52  ;;  %v6869_v52 = vld [vmem:[%s9091_s24 + $0x24] sm:$0xf0] }
 0x98e   : > { %vm1953_vm9 = vmor %vm1951_vm8, %vm1952_vm7  ;;  %v6856_v61 = vld [vmem:[%s9092_s17 + $0x44] sm:$0xf]  ;;  %2115 = vmatpush.bf16.msra.mxu3 %v5829_v62 }
 0x98f   : > { %v1933_v36 = vsel %vm1932_vm5, %v7195_v55, %v1929_v0  ;;  %v1948_v2 = vsub.f32 1.0, %v1947_v13  ;;  %v5878_v55 = vld [vmem:[%s9091_s24 + $0x28] sm:$0xf0]  ;;  %v5908_v0 = vld [vmem:[%s9091_s24 + $0x60] sm:$0xf] }
 0x990   : > { %v1938_v5 = vsel %vm1935_vm6, %v1937_v1, %v1933_v36  ;;  %v8121_v57 = vor.u32 %v6868_v54, %v5878_v55  ;;  %v6877_v13 = vld [vmem:[%s9091_s24 + $0x64] sm:$0xf0]  ;;  %v5801_v54 = vor.u32 %v6848_v41, %v5798_v50  ;;  %v8248_v55 = vor.u32 %v6869_v52, %v5876_v51 }
 0x991   : > { %v8016_v9 = vsel %vm1013_vm11, %v1938_v5, %v7199_v3  ;;  %v1949_v11 = vmul.f32 %v7197_v63, %v1948_v2  ;;  %v8143_v36 = vor.u32 %v6877_v13, %v5908_v0  ;;  %v6866_v2 = vld [vmem:[%s9091_s24 + $0x14] sm:$0xf]  ;;  %v5870_v3 = vld [vmem:[%s9091_s24 + $0x18] sm:$0xf0]  ;;  %v5860_v0 = vld [vmem:[%s9091_s24] sm:$0xf] }
 0x992   : > { %v1962_v15 = vrot.slane %v8016_v9, 6  ;;  %2238 = vmatpush.bf16.msra.mxu2 %v8121_v57  ;;  %v8151_v5 = vor.u32 %v6866_v2, %v5870_v3  ;;  %v6865_v13 = vld [vmem:[%s9091_s24 + $0x4] sm:$0xf0] }
 0x993   : > { %v1950_v16 = vadd.f32 %v7197_v63, %v1949_v11  ;;  %2221 = vmatpush.bf16.msrb.mxu1 %v8143_v36  ;;  %v6855_v11 = vld [vmem:[%s9092_s17 + $0x34] sm:$0xf0] }
 0x994   : > { %1964 = vrot.lane.b32.xlu0 %v1962_v15, %s9055_s29  ;;  %v5821_v15 = vor.u32 %v6855_v11, %v5820_v6  ;;  %v1981_v6 = vrot.slane %v8007_v21, 6 }
 0x995   : > { %v1954_v22 = vsel %vm1953_vm9, %v7197_v63, %v1950_v16  ;;  %v5830_v63 = vld [vmem:[%s9092_s17 + $0x48] sm:$0xf0]  ;;  %v5822_v16 = vld [vmem:[%s9092_s17 + $0x38] sm:$0xf0] }
 0x996   : > { %v8020_v7 = vsel %vm1956_vm10, %v1958_v19, %v1954_v22  ;;  %v5833_v1 = vor.u32 %v6856_v61, %v5830_v63  ;;  %2239 = vmatpush.bf16.msra.mxu2 %v8151_v5  ;;  %v5900_v19 = vld [vmem:[%s9091_s24 + $0x50] sm:$0xf]  ;;  %v6875_v22 = vld [vmem:[%s9091_s24 + $0x54] sm:$0xf0]  ;;  %v5825_v14 = vor.u32 %v6854_v12, %v5822_v16  ;;  %2116 = vmatpush.bf16.msra.mxu3 %v5821_v15 }
 0x997   : > { %v1971_v10 = vrot.slane %v8020_v7, 6  ;;  %v8173_v18 = vor.u32 %v6875_v22, %v5900_v19  ;;  %v6867_v61 = vld [vmem:[%s9091_s24 + $0x14] sm:$0xf0] }
 0x998   : > { %2129 = vmatpush.bf16.msra.mxu0 %v5833_v1  ;;  %v8259_v62 = vor.u32 %v6867_v61, %v5868_v24  ;;  %v8271_v1 = vor.u32 %v6865_v13, %v5860_v0 }
 0x999   : > { %1973 = vrot.lane.b32.xlu2 %v1971_v10, %s9055_s29  ;;  %2222 = vmatpush.bf16.msrb.mxu1 %v8173_v18  ;;  %s9094_s29 = smov 64  }
 0x99a   : > { %2240 = vmatpush.bf16.msra.mxu2 %v8181_v31  ;;  %2117 = vmatpush.bf16.msra.mxu3 %v5813_v39  ;;  %v2029_v39 = vperm.slane %v8344_v35, 1 }
 0x99c   : > { %2130 = vmatpush.bf16.msra.mxu0 %v5825_v14 }
 0x99d   : > { %2241 = vmatmul.bf16.vlgmr.msra.gmra.mxu2 %v7343_v20  ;;  %2223 = vmatpush.bf16.msrb.mxu1 %v8204_v4 }
 0x99e   : > { %2419 = vmatpush.bf16.msrb.mxu2 %v8032_v23  ;;  %2118 = vmatpush.bf16.msra.mxu3 %v5805_v26 }
 0x9a0   : > { %2131 = vmatpush.bf16.msra.mxu0 %v5817_v47  ;;  %v2028_v47 = vperm.slane %v8344_v35, 0 }
 0x9a1   : > { %2224 = vmatpush.bf16.msrb.mxu1 %v8226_v33 }
 0x9a2   : > { %2420 = vmatpush.bf16.msrb.mxu2 %v8041_v48  ;;  %2119 = vmatpush.bf16.msra.mxu3 %v5797_v43 }
 0x9a4   : > { %2132 = vmatpush.bf16.msra.mxu0 %v5809_v30 }
 0x9a5   : > { %2225 = vmatpush.bf16.msrb.mxu1 %v8248_v55 }
 0x9a6   : > { %2421 = vmatpush.bf16.msrb.mxu2 %v8062_v56  ;;  %2301 = vmatpush.bf16.msrb.mxu3 %v8113_v53 }
 0x9a8   : > { %2133 = vmatpush.bf16.msra.mxu0 %v5801_v54 }
 0x9a9   : > { %2226 = vmatpush.bf16.msrb.mxu1 %v8259_v62 }
 0x9aa   : > { %2422 = vmatpush.bf16.msrb.mxu2 %v8071_v8  ;;  %2302 = vmatpush.bf16.msrb.mxu3 %v8143_v36 }
 0x9ac   : > { %2314 = vmatpush.bf16.msrb.mxu0 %v8032_v23 }
 0x9ad   : > { %2227 = vmatpush.bf16.msrb.mxu1 %v8271_v1 }
 0x9ae   : > { %2423 = vmatpush.bf16.msrb.mxu2 %v8092_v32  ;;  %2303 = vmatpush.bf16.msrb.mxu3 %v8173_v18 }
 0x9b0   : > { %2315 = vmatpush.bf16.msrb.mxu0 %v8041_v48  ;;  %2228 = vmatmul.bf16.vlgmr.msrb.gmra.mxu1 %v7343_v20 }
 0x9b1   : > { %2406 = vmatpush.bf16.msra.mxu1 %v8113_v53 }
 0x9b2   : > { %2424 = vmatpush.bf16.msrb.mxu2 %v8121_v57  ;;  %2304 = vmatpush.bf16.msrb.mxu3 %v8204_v4 }
 0x9b4   : > { %2316 = vmatpush.bf16.msrb.mxu0 %v8062_v56 }
 0x9b5   : > { %2407 = vmatpush.bf16.msra.mxu1 %v8143_v36 }
 0x9b6   : > { %2425 = vmatpush.bf16.msrb.mxu2 %v8151_v5  ;;  %2305 = vmatpush.bf16.msrb.mxu3 %v8226_v33 }
 0x9b8   : > { %2317 = vmatpush.bf16.msrb.mxu0 %v8071_v8 }
 0x9b9   : > { %2408 = vmatpush.bf16.msra.mxu1 %v8173_v18 }
 0x9ba   : > { %2426 = vmatpush.bf16.msrb.mxu2 %v8181_v31  ;;  %2306 = vmatpush.bf16.msrb.mxu3 %v8248_v55 }
 0x9bc   : > { %2318 = vmatpush.bf16.msrb.mxu0 %v8092_v32 }
 0x9bd   : > { %2409 = vmatpush.bf16.msra.mxu1 %v8204_v4 }
 0x9be   : > { %2629 = vmatpush.bf16.msra.mxu2 %v8032_v23  ;;  %2307 = vmatpush.bf16.msrb.mxu3 %v8259_v62 }
 0x9c0   : > { %2319 = vmatpush.bf16.msrb.mxu0 %v8121_v57 }
 0x9c1   : > { %2410 = vmatpush.bf16.msra.mxu1 %v8226_v33 }
 0x9c2   : > { %2630 = vmatpush.bf16.msra.mxu2 %v8041_v48  ;;  %2308 = vmatpush.bf16.msrb.mxu3 %v8271_v1 }
 0x9c4   : > { %2320 = vmatpush.bf16.msrb.mxu0 %v8151_v5 }
 0x9c5   : > { %2411 = vmatpush.bf16.msra.mxu1 %v8248_v55 }
 0x9c6   : > { %2631 = vmatpush.bf16.msra.mxu2 %v8062_v56 }
 0x9c8   : > { %2321 = vmatpush.bf16.msrb.mxu0 %v8181_v31 }
 0x9c9   : > { %2412 = vmatpush.bf16.msra.mxu1 %v8259_v62 }
 0x9ca   : > { %2632 = vmatpush.bf16.msra.mxu2 %v8071_v8 }
 0x9cd   : > { %2413 = vmatpush.bf16.msra.mxu1 %v8271_v1 }
 0x9ce   : > { %2633 = vmatpush.bf16.msra.mxu2 %v8092_v32 }
 0x9d1   : > { %2616 = vmatpush.bf16.msrb.mxu1 %v8113_v53 }
 0x9d2   : > { %2634 = vmatpush.bf16.msra.mxu2 %v8121_v57 }
 0x9d5   : > { %2617 = vmatpush.bf16.msrb.mxu1 %v8143_v36 }
 0x9d6   : > { %2635 = vmatpush.bf16.msra.mxu2 %v8151_v5 }
 0x9d9   : > { %2618 = vmatpush.bf16.msrb.mxu1 %v8173_v18 }
 0x9da   : > { %2636 = vmatpush.bf16.msra.mxu2 %v8181_v31 }
 0x9dd   : > { %2619 = vmatpush.bf16.msrb.mxu1 %v8204_v4 }
 0x9e1   : > { %2620 = vmatpush.bf16.msrb.mxu1 %v8226_v33 }
 0x9e5   : > { %2621 = vmatpush.bf16.msrb.mxu1 %v8248_v55 }
 0x9e9   : > { %2622 = vmatpush.bf16.msrb.mxu1 %v8259_v62 }
 0x9ed   : > { %2623 = vmatpush.bf16.msrb.mxu1 %v8271_v1 }
 0x9f3   : > { %v1974_v58 = vpop.permute.xlu2 %1973 }
 0x9f4   : > { %v1976_v63 = vrot.slane %v1974_v58, 2 }
 0x9f6   : > { %v1978_v2 = vsel %vm1013_vm11, %v8020_v7, %v1976_v63  ;;  %v1991_v7 = vld [vmem:[#allocation3] sm:$0xff] }
 0x9f7   : > { %v1983_v12 = vmul.f32 %v1981_v6, %v1978_v2 }
 0xa06   : > { %v1965_v3 = vpop.permute.xlu0 %1964 }
 0xa07   : > { %v1967_v11 = vrot.slane %v1965_v3, 2 }
 0xa09   : > { %v1969_v15 = vmul.f32 %v1967_v11, %v8016_v9  ;;  %v1979_v9 = vsel %vm1013_vm11, %v1974_v58, %v1971_v10 }
 0xa0b   : > { %v1984_v16 = vadd.f32 %v1983_v12, %v1969_v15 }
 0xa0d   : > { %7200 = vtanh.f32 %v1984_v16 }
 0xa13   : > { %v7201_v21 = vpop.eup %7200 }
 0xa14   : > { %v1987_v20 = vrot.slane %v7201_v21, 6 }
 0xa16   : > { %v1989_v19 = vmul.f32 %v1987_v20, %v1979_v9 }
 0xa18   : > { %1990 = vst [vmem:[#allocation3 + $0xe] sm:$0x3] %v1989_v19 }
 0xa1f   : > { %v1992_v10 = vld [vmem:[#allocation3 + $0x8] sm:$0xff] }
 0xa20   : > { %v2026_v22 = vpack.c.bf16 %v1992_v10, %v1991_v7  ;;  %v2242_v14 = vpop.f32.mrf.mxu2 }
 0xa22   : > { %2120 = vmatmul.bf16.vlgmr.msra.gmra.mxu3 %v2026_v22  ;;  %2134 = vmatmul.bf16.vlgmr.msra.gmra.mxu0 %v2026_v22 }
 0xa23   : > { %2511 = vmatpush.bf16.msra.mxu3 %v8113_v53  ;;  %2524 = vmatpush.bf16.msra.mxu0 %v8032_v23 }
 0xa27   : > { %2512 = vmatpush.bf16.msra.mxu3 %v8143_v36  ;;  %2525 = vmatpush.bf16.msra.mxu0 %v8041_v48 }
 0xa28   : > { %v2244_v27 = vpop.f32.mrf.mxu2 }
 0xa2b   : > { %2513 = vmatpush.bf16.msra.mxu3 %v8173_v18  ;;  %2526 = vmatpush.bf16.msra.mxu0 %v8062_v56 }
 0xa2d   : > { %v2229_v45 = vpop.f32.mrf.mxu1 }
 0xa2f   : > { %2514 = vmatpush.bf16.msra.mxu3 %v8204_v4  ;;  %2527 = vmatpush.bf16.msra.mxu0 %v8071_v8 }
 0xa33   : > { %2515 = vmatpush.bf16.msra.mxu3 %v8226_v33  ;;  %2528 = vmatpush.bf16.msra.mxu0 %v8092_v32 }
 0xa35   : > { %v2231_v34 = vpop.f32.mrf.mxu1 }
 0xa37   : > { %2516 = vmatpush.bf16.msra.mxu3 %v8248_v55  ;;  %2529 = vmatpush.bf16.msra.mxu0 %v8121_v57 }
 0xa3b   : > { %2517 = vmatpush.bf16.msra.mxu3 %v8259_v62  ;;  %2530 = vmatpush.bf16.msra.mxu0 %v8151_v5 }
 0xa3f   : > { %2518 = vmatpush.bf16.msra.mxu3 %v8271_v1  ;;  %2531 = vmatpush.bf16.msra.mxu0 %v8181_v31 }
 0xa9f   : > { %v2135_v44 = vpop.f32.mrf.mxu0 }
 0xaa0   : > { %v8349_v40 = vadd.f32 %v2135_v44, %v2029_v39 }
 0xaa2   : > { %v2247_v46 = vadd.f32 %v2242_v14, %v8349_v40 }
 0xaa4   : > { %v5923_v59 = vmul.f32 -1.442695, %v2247_v46 }
 0xaa5   : > { %v2121_v60 = vpop.f32.mrf.mxu3 }
 0xaa6   : > { %7202 = vpow2.f32 %v5923_v59  ;;  %v8355_v42 = vadd.f32 %v2121_v60, %v2028_v47 }
 0xaa7   : > { %v8385_v44 = vpop.f32.mrf.mxu0 }
 0xaa8   : > { %v2246_v25 = vadd.f32 %v2229_v45, %v8355_v42 }
 0xaaa   : > { %v5922_v26 = vmul.f32 -1.442695, %v2246_v25 }
 0xaac   : > { %v7203_v28 = vpop.eup %7202  ;;  %7204 = vpow2.f32 %v5922_v26 }
 0xaad   : > { %v2272_v29 = vadd.f32 1.0, %v7203_v28  ;;  %v8387_v46 = vpop.f32.mrf.mxu3 }
 0xaaf   : > { %7206 = vrcp.f32 %v2272_v29  ;;  %v2284_v43 = vand.u32 2147483648, %v2272_v29  ;;  %v2282_v51 = vand.u32 2147483647, %v2272_v29  ;;  %vm2278_vm13 = vweird.f32 %v2272_v29 }
 0xab1   : > { %v2285_v24 = vor.u32 1.1754944e-38, %v2284_v43  ;;  %vm2283_vm15 = vcmp.eq.f32.partialorder %v2282_v51, 8.507059e+37 }
 0xab2   : > { %v7205_v49 = vpop.eup %7204 }
 0xab3   : > { %v2251_v30 = vadd.f32 1.0, %v7205_v49 }
 0xab5   : > { %v7207_v37 = vpop.eup %7206  ;;  %7208 = vrcp.f32 %v2251_v30  ;;  %v2263_v13 = vand.u32 2147483648, %v2251_v30  ;;  %v2261_v3 = vand.u32 2147483647, %v2251_v30  ;;  %vm2257_vm1 = vweird.f32 %v2251_v30 }
 0xab6   : > { %v2274_v38 = vmul.f32 %v7207_v37, %v2272_v29  ;;  %vm2279_vm12 = vweird.f32 %v7207_v37  ;;  %7210 = vtanh.f32 %v2246_v25 }
 0xab7   : > { %vm2280_vm14 = vmor %vm2278_vm13, %vm2279_vm12  ;;  %v2264_v11 = vor.u32 1.1754944e-38, %v2263_v13  ;;  %vm2262_vm4 = vcmp.eq.f32.partialorder %v2261_v3, 8.507059e+37 }
 0xab8   : > { %v2275_v41 = vsub.f32 1.0, %v2274_v38 }
 0xaba   : > { %v2276_v50 = vmul.f32 %v7207_v37, %v2275_v41 }
 0xabb   : > { %v7209_v52 = vpop.eup %7208 }
 0xabc   : > { %v2277_v54 = vadd.f32 %v7207_v37, %v2276_v50  ;;  %v2253_v58 = vmul.f32 %v7209_v52, %v2251_v30  ;;  %vm2258_vm0 = vweird.f32 %v7209_v52  ;;  %v7211_v15 = vpop.eup %7210 }
 0xabd   : > { %vm2259_vm3 = vmor %vm2257_vm1, %vm2258_vm0 }
 0xabe   : > { %v2281_v61 = vsel %vm2280_vm14, %v7207_v37, %v2277_v54  ;;  %v2254_v63 = vsub.f32 1.0, %v2253_v58 }
 0xabf   : > { %v2286_v0 = vsel %vm2283_vm15, %v2285_v24, %v2281_v61 }
 0xac0   : > { %2291 = vrot.lane.b32.xlu1 %v2286_v0, %s9094_s29  ;;  %v2255_v2 = vmul.f32 %v7209_v52, %v2254_v63 }
 0xac2   : > { %v2256_v6 = vadd.f32 %v7209_v52, %v2255_v2 }
 0xac4   : > { %v2260_v12 = vsel %vm2259_vm3, %v7209_v52, %v2256_v6 }
 0xac5   : > { %v2265_v16 = vsel %vm2262_vm4, %v2264_v11, %v2260_v12 }
 0xac6   : > { %v2268_v21 = vsel %vm1013_vm11, %v2265_v16, %v7211_v15 }
 0xac7   : > { %2288 = vrot.lane.b32.xlu2 %v2268_v21, %s9094_s29 }
 0xb21   : > { %v2289_v20 = vpop.permute.xlu2 %2288 }
 0xb22   : > { %v2290_v7 = vmul.f32 %v2289_v20, %v2268_v21 }
 0xb32   : > { %v2292_v9 = vpop.permute.xlu1 %2291 }
 0xb33   : > { %v2293_v19 = vsel %vm1013_vm11, %v2286_v0, %v2292_v9  ;;  %v2294_v27 = vsel %vm1013_vm11, %v2292_v9, %v2286_v0 }
 0xb34   : > { %v2295_v10 = vmul.f32 0.0, %v2293_v19 }
 0xb36   : > { %v8364_v22 = vadd.f32 %v2295_v10, %v2290_v7 }
 0xb38   : > { %7212 = vtanh.f32 %v8364_v22 }
 0xb3e   : > { %v7213_v14 = vpop.eup %7212 }
 0xb3f   : > { %v2298_v45 = vmul.f32 %v7213_v14, %v2294_v27 }
 0xb41   : > { %2299 = vst [vmem:[#allocation4] sm:$0x3] %v2298_v45  ;;  %v2300_v34 = vpack.c.bf16 %v2298_v45, %v2298_v45 }
 0xb43   : > { %2309 = vmatmul.bf16.vlgmr.msrb.gmra.mxu3 %v2300_v34  ;;  %2322 = vmatmul.bf16.vlgmr.msrb.gmra.mxu0 %v2300_v34 }
 0xb44   : > { %2700 = vmatpush.bf16.msrb.mxu3 %v8113_v53  ;;  %2713 = vmatpush.bf16.msrb.mxu0 %v8032_v23 }
 0xb48   : > { %2701 = vmatpush.bf16.msrb.mxu3 %v8143_v36  ;;  %2714 = vmatpush.bf16.msrb.mxu0 %v8041_v48 }
 0xb4c   : > { %2702 = vmatpush.bf16.msrb.mxu3 %v8173_v18  ;;  %2715 = vmatpush.bf16.msrb.mxu0 %v8062_v56 }
 0xb50   : > { %2703 = vmatpush.bf16.msrb.mxu3 %v8204_v4  ;;  %2716 = vmatpush.bf16.msrb.mxu0 %v8071_v8 }
 0xb54   : > { %2704 = vmatpush.bf16.msrb.mxu3 %v8226_v33  ;;  %2717 = vmatpush.bf16.msrb.mxu0 %v8092_v32 }
 0xb58   : > { %2705 = vmatpush.bf16.msrb.mxu3 %v8248_v55  ;;  %2718 = vmatpush.bf16.msrb.mxu0 %v8121_v57 }
 0xb5c   : > { %2706 = vmatpush.bf16.msrb.mxu3 %v8259_v62  ;;  %2719 = vmatpush.bf16.msrb.mxu0 %v8151_v5 }
 0xb60   : > { %2707 = vmatpush.bf16.msrb.mxu3 %v8271_v1  ;;  %2720 = vmatpush.bf16.msrb.mxu0 %v8181_v31 }
 0xbc0   : > { %v2323_v59 = vpop.f32.mrf.mxu0 }
 0xbc1   : > { %v2330_v60 = vrot.slane %v2323_v59, 6 }
 0xbc3   : > { %v2334_v25 = vadd.f32 %v2330_v60, %v8349_v40 }
 0xbc5   : > { %v5925_v26 = vmul.f32 -1.442695, %v2334_v25 }
 0xbc6   : > { %v2310_v28 = vpop.f32.mrf.mxu3 }
 0xbc7   : > { %7214 = vpow2.f32 %v5925_v26  ;;  %v2329_v29 = vrot.slane %v2310_v28, 6  ;;  %v2395_v26 = vrot.slane %v8364_v22, 6 }
 0xbc8   : > { %v2325_v49 = vpop.f32.mrf.mxu0 }
 0xbc9   : > { %v2333_v30 = vadd.f32 %v2329_v29, %v8355_v42 }
 0xbcb   : > { %v5924_v37 = vmul.f32 -1.442695, %v2333_v30 }
 0xbcd   : > { %v7215_v38 = vpop.eup %7214  ;;  %7216 = vpow2.f32 %v5924_v37 }
 0xbce   : > { %v2359_v41 = vadd.f32 1.0, %v7215_v38  ;;  %v2312_v43 = vpop.f32.mrf.mxu3 }
 0xbd0   : > { %7218 = vrcp.f32 %v2359_v41  ;;  %v2371_v24 = vand.u32 2147483648, %v2359_v41  ;;  %v2369_v63 = vand.u32 2147483647, %v2359_v41  ;;  %vm2365_vm6 = vweird.f32 %v2359_v41 }
 0xbd2   : > { %v2372_v3 = vor.u32 1.1754944e-38, %v2371_v24  ;;  %vm2370_vm8 = vcmp.eq.f32.partialorder %v2369_v63, 8.507059e+37 }
 0xbd3   : > { %v7217_v50 = vpop.eup %7216 }
 0xbd4   : > { %v2338_v51 = vadd.f32 1.0, %v7217_v50 }
 0xbd6   : > { %v7219_v52 = vpop.eup %7218  ;;  %7220 = vrcp.f32 %v2338_v51  ;;  %v2350_v15 = vand.u32 2147483648, %v2338_v51  ;;  %v2348_v20 = vand.u32 2147483647, %v2338_v51  ;;  %vm2344_vm10 = vweird.f32 %v2338_v51 }
 0xbd7   : > { %v2361_v54 = vmul.f32 %v7219_v52, %v2359_v41  ;;  %vm2366_vm5 = vweird.f32 %v7219_v52  ;;  %7222 = vtanh.f32 %v2333_v30 }
 0xbd8   : > { %vm2367_vm7 = vmor %vm2365_vm6, %vm2366_vm5  ;;  %v2351_v19 = vor.u32 1.1754944e-38, %v2350_v15  ;;  %vm2349_vm13 = vcmp.eq.f32.partialorder %v2348_v20, 8.507059e+37 }
 0xbd9   : > { %v2362_v58 = vsub.f32 1.0, %v2361_v54 }
 0xbdb   : > { %v2363_v61 = vmul.f32 %v7219_v52, %v2362_v58 }
 0xbdc   : > { %v7221_v0 = vpop.eup %7220 }
 0xbdd   : > { %v2364_v13 = vadd.f32 %v7219_v52, %v2363_v61  ;;  %v2340_v2 = vmul.f32 %v7221_v0, %v2338_v51  ;;  %vm2345_vm9 = vweird.f32 %v7221_v0  ;;  %v7223_v10 = vpop.eup %7222 }
 0xbde   : > { %vm2346_vm12 = vmor %vm2344_vm10, %vm2345_vm9 }
 0xbdf   : > { %v2368_v6 = vsel %vm2367_vm7, %v7219_v52, %v2364_v13  ;;  %v2341_v11 = vsub.f32 1.0, %v2340_v2 }
 0xbe0   : > { %v2373_v12 = vsel %vm2370_vm8, %v2372_v3, %v2368_v6 }
 0xbe1   : > { %v2385_v16 = vrot.slane %v2373_v12, 2  ;;  %v2342_v21 = vmul.f32 %v7221_v0, %v2341_v11 }
 0xbe3   : > { %2387 = vrot.lane.b32.xlu0 %v2385_v16, %s9094_s29  ;;  %v2343_v9 = vadd.f32 %v7221_v0, %v2342_v21 }
 0xbe5   : > { %v2347_v7 = vsel %vm2346_vm12, %v7221_v0, %v2343_v9 }
 0xbe6   : > { %v2352_v14 = vsel %vm2349_vm13, %v2351_v19, %v2347_v7 }
 0xbe7   : > { %v2355_v27 = vsel %vm1013_vm11, %v2352_v14, %v7223_v10 }
 0xbe8   : > { %v2376_v45 = vrot.slane %v2355_v27, 2 }
 0xbea   : > { %2378 = vrot.lane.b32.xlu1 %v2376_v45, %s9094_s29 }
 0xc55   : > { %v2388_v34 = vpop.permute.xlu0 %2387 }
 0xc56   : > { %v2390_v59 = vrot.slane %v2388_v34, 6  ;;  %v2393_v41 = vsel %vm1013_vm11, %v2388_v34, %v2385_v16 }
 0xc58   : > { %v2392_v60 = vsel %vm1013_vm11, %v2373_v12, %v2390_v59 }
 0xc59   : > { %v2397_v29 = vmul.f32 %v2395_v26, %v2392_v60 }
 0xc5c   : > { %v2379_v25 = vpop.permute.xlu1 %2378 }
 0xc5d   : > { %v2381_v28 = vrot.slane %v2379_v25, 6 }
 0xc5f   : > { %v2383_v49 = vmul.f32 %v2381_v28, %v2355_v27 }
 0xc61   : > { %v8398_v30 = vadd.f32 %v2397_v29, %v2383_v49 }
 0xc63   : > { %7224 = vtanh.f32 %v8398_v30 }
 0xc69   : > { %v7225_v37 = vpop.eup %7224 }
 0xc6a   : > { %v2401_v38 = vrot.slane %v7225_v37, 2 }
 0xc6c   : > { %v2403_v43 = vmul.f32 %v2401_v38, %v2393_v41 }
 0xc6e   : > { %2404 = vst [vmem:[#allocation4 + $0x2] sm:$0x3] %v2403_v43  ;;  %v2405_v50 = vpack.c.bf16 %v2403_v43, %v2403_v43 }
 0xc70   : > { %2414 = vmatmul.bf16.vlgmr.msra.gmra.mxu1 %v2405_v50  ;;  %2427 = vmatmul.bf16.vlgmr.msrb.gmra.mxu2 %v2405_v50 }
 0xc71   : > { %2805 = vmatpush.bf16.msra.mxu1 %v8113_v53  ;;  %2818 = vmatpush.bf16.msrb.mxu2 %v8032_v23 }
 0xc75   : > { %2806 = vmatpush.bf16.msra.mxu1 %v8143_v36  ;;  %2819 = vmatpush.bf16.msrb.mxu2 %v8041_v48 }
 0xc79   : > { %2807 = vmatpush.bf16.msra.mxu1 %v8173_v18  ;;  %2820 = vmatpush.bf16.msrb.mxu2 %v8062_v56 }
 0xc7d   : > { %2808 = vmatpush.bf16.msra.mxu1 %v8204_v4  ;;  %2821 = vmatpush.bf16.msrb.mxu2 %v8071_v8 }
 0xc81   : > { %2809 = vmatpush.bf16.msra.mxu1 %v8226_v33  ;;  %2822 = vmatpush.bf16.msrb.mxu2 %v8092_v32 }
 0xc85   : > { %2810 = vmatpush.bf16.msra.mxu1 %v8248_v55  ;;  %2823 = vmatpush.bf16.msrb.mxu2 %v8121_v57 }
 0xc89   : > { %2811 = vmatpush.bf16.msra.mxu1 %v8259_v62  ;;  %2824 = vmatpush.bf16.msrb.mxu2 %v8151_v5 }
 0xc8d   : > { %2812 = vmatpush.bf16.msra.mxu1 %v8271_v1  ;;  %2825 = vmatpush.bf16.msrb.mxu2 %v8181_v31 }
 0xced   : > { %v2415_v22 = vpop.f32.mrf.mxu1 }
 0xcee   : > { %v2434_v51 = vrot.slane %v2415_v22, 4 }
 0xcf0   : > { %v2438_v52 = vadd.f32 %v2434_v51, %v8355_v42 }
 0xcf2   : > { %v5926_v54 = vmul.f32 -1.442695, %v2438_v52 }
 0xcf3   : > { %v2428_v58 = vpop.f32.mrf.mxu2 }
 0xcf4   : > { %7226 = vpow2.f32 %v5926_v54  ;;  %v2435_v24 = vrot.slane %v2428_v58, 4  ;;  %v2500_v54 = vrot.slane %v8398_v30, 6 }
 0xcf5   : > { %v2417_v61 = vpop.f32.mrf.mxu1 }
 0xcf6   : > { %v2439_v63 = vadd.f32 %v2435_v24, %v8349_v40 }
 0xcf8   : > { %v5927_v0 = vmul.f32 -1.442695, %v2439_v63 }
 0xcfa   : > { %v7227_v13 = vpop.eup %7226  ;;  %7228 = vpow2.f32 %v5927_v0 }
 0xcfb   : > { %v2443_v2 = vadd.f32 1.0, %v7227_v13  ;;  %v2430_v3 = vpop.f32.mrf.mxu2 }
 0xcfd   : > { %7230 = vrcp.f32 %v2443_v2  ;;  %v2455_v21 = vand.u32 2147483648, %v2443_v2  ;;  %v2453_v9 = vand.u32 2147483647, %v2443_v2  ;;  %vm2449_vm15 = vweird.f32 %v2443_v2 }
 0xcff   : > { %v2456_v14 = vor.u32 1.1754944e-38, %v2455_v21  ;;  %vm2454_vm1 = vcmp.eq.f32.partialorder %v2453_v9, 8.507059e+37 }
 0xd00   : > { %v7229_v6 = vpop.eup %7228 }
 0xd01   : > { %v2464_v11 = vadd.f32 1.0, %v7229_v6 }
 0xd03   : > { %v7231_v12 = vpop.eup %7230  ;;  %7232 = vrcp.f32 %v2464_v11  ;;  %v2476_v60 = vand.u32 2147483648, %v2464_v11  ;;  %v2474_v28 = vand.u32 2147483647, %v2464_v11  ;;  %vm2470_vm4 = vweird.f32 %v2464_v11 }
 0xd04   : > { %v2445_v15 = vmul.f32 %v7231_v12, %v2443_v2  ;;  %7234 = vtanh.f32 %v2438_v52  ;;  %vm2450_vm14 = vweird.f32 %v7231_v12 }
 0xd05   : > { %vm2451_vm0 = vmor %vm2449_vm15, %vm2450_vm14  ;;  %v2477_v37 = vor.u32 1.1754944e-38, %v2476_v60  ;;  %vm2475_vm6 = vcmp.eq.f32.partialorder %v2474_v28, 8.507059e+37 }
 0xd06   : > { %v2446_v16 = vsub.f32 1.0, %v2445_v15 }
 0xd08   : > { %v2447_v20 = vmul.f32 %v7231_v12, %v2446_v16 }
 0xd09   : > { %v7233_v19 = vpop.eup %7232 }
 0xd0a   : > { %v2448_v7 = vadd.f32 %v7231_v12, %v2447_v20  ;;  %v2466_v10 = vmul.f32 %v7233_v19, %v2464_v11  ;;  %v7235_v34 = vpop.eup %7234  ;;  %vm2471_vm3 = vweird.f32 %v7233_v19 }
 0xd0b   : > { %vm2472_vm5 = vmor %vm2470_vm4, %vm2471_vm3 }
 0xd0c   : > { %v2452_v27 = vsel %vm2451_vm0, %v7231_v12, %v2448_v7  ;;  %v2467_v45 = vsub.f32 1.0, %v2466_v10 }
 0xd0d   : > { %v2457_v59 = vsel %vm2454_vm1, %v2456_v14, %v2452_v27 }
 0xd0e   : > { %v2460_v25 = vsel %vm1013_vm11, %v2457_v59, %v7235_v34  ;;  %v2468_v26 = vmul.f32 %v7233_v19, %v2467_v45 }
 0xd0f   : > { %v2481_v29 = vrot.slane %v2460_v25, 4 }
 0xd10   : > { %v2469_v49 = vadd.f32 %v7233_v19, %v2468_v26 }
 0xd11   : > { %2483 = vrot.lane.b32.xlu0 %v2481_v29, %s9094_s29 }
 0xd12   : > { %v2473_v38 = vsel %vm2472_vm5, %v7233_v19, %v2469_v49 }
 0xd13   : > { %v2478_v41 = vsel %vm2475_vm6, %v2477_v37, %v2473_v38 }
 0xd14   : > { %v2490_v43 = vrot.slane %v2478_v41, 4 }
 0xd16   : > { %2492 = vrot.lane.b32.xlu2 %v2490_v43, %s9094_s29 }
 0xd70   : > { %v2493_v50 = vpop.permute.xlu2 %2492 }
 0xd71   : > { %v2495_v22 = vrot.slane %v2493_v50, 4  ;;  %v2498_v2 = vsel %vm1013_vm11, %v2493_v50, %v2490_v43 }
 0xd73   : > { %v2497_v51 = vsel %vm1013_vm11, %v2478_v41, %v2495_v22 }
 0xd74   : > { %v2502_v24 = vmul.f32 %v2500_v54, %v2497_v51 }
 0xd83   : > { %v2484_v52 = vpop.permute.xlu0 %2483 }
 0xd84   : > { %v2486_v58 = vrot.slane %v2484_v52, 4 }
 0xd86   : > { %v2488_v61 = vmul.f32 %v2486_v58, %v2460_v25 }
 0xd88   : > { %v8428_v63 = vadd.f32 %v2502_v24, %v2488_v61 }
 0xd8a   : > { %7236 = vtanh.f32 %v8428_v63  ;;  %v2605_v41 = vrot.slane %v8428_v63, 6  ;;  %v8466_v63 = vadd.f32 %v8387_v46, %v2028_v47 }
 0xd90   : > { %v7237_v0 = vpop.eup %7236 }
 0xd91   : > { %v2506_v13 = vrot.slane %v7237_v0, 4 }
 0xd93   : > { %v2508_v3 = vmul.f32 %v2506_v13, %v2498_v2 }
 0xd95   : > { %2509 = vst [vmem:[#allocation4 + $0x4] sm:$0x3] %v2508_v3  ;;  %v2510_v6 = vpack.c.bf16 %v2508_v3, %v2508_v3  ;;  %v8472_v3 = vadd.f32 %v8385_v44, %v2029_v39 }
 0xd97   : > { %2519 = vmatmul.bf16.vlgmr.msra.gmra.mxu3 %v2510_v6  ;;  %2532 = vmatmul.bf16.vlgmr.msra.gmra.mxu0 %v2510_v6 }
 0xd98   : > { %2910 = vmatpush.bf16.msra.mxu3 %v8113_v53  ;;  %2923 = vmatpush.bf16.msra.mxu0 %v8032_v23 }
 0xd9c   : > { %2911 = vmatpush.bf16.msra.mxu3 %v8143_v36  ;;  %2924 = vmatpush.bf16.msra.mxu0 %v8041_v48 }
 0xda0   : > { %2912 = vmatpush.bf16.msra.mxu3 %v8173_v18  ;;  %2925 = vmatpush.bf16.msra.mxu0 %v8062_v56 }
 0xda4   : > { %2913 = vmatpush.bf16.msra.mxu3 %v8204_v4  ;;  %2926 = vmatpush.bf16.msra.mxu0 %v8071_v8 }
 0xda8   : > { %2914 = vmatpush.bf16.msra.mxu3 %v8226_v33  ;;  %2927 = vmatpush.bf16.msra.mxu0 %v8092_v32 }
 0xdac   : > { %2915 = vmatpush.bf16.msra.mxu3 %v8248_v55  ;;  %2928 = vmatpush.bf16.msra.mxu0 %v8121_v57 }
 0xdb0   : > { %2916 = vmatpush.bf16.msra.mxu3 %v8259_v62  ;;  %2929 = vmatpush.bf16.msra.mxu0 %v8151_v5 }
 0xdb4   : > { %2917 = vmatpush.bf16.msra.mxu3 %v8271_v1  ;;  %2930 = vmatpush.bf16.msra.mxu0 %v8181_v31 }
 0xe14   : > { %v2533_v23 = vpop.f32.mrf.mxu0 }
 0xe15   : > { %v2540_v48 = vrot.slane %v2533_v23, 2 }
 0xe17   : > { %v2544_v56 = vadd.f32 %v2540_v48, %v8349_v40 }
 0xe19   : > { %v5929_v8 = vmul.f32 -1.442695, %v2544_v56 }
 0xe1a   : > { %v2520_v53 = vpop.f32.mrf.mxu3 }
 0xe1b   : > { %7238 = vpow2.f32 %v5929_v8  ;;  %v2539_v32 = vrot.slane %v2520_v53, 2 }
 0xe1c   : > { %v2535_v36 = vpop.f32.mrf.mxu0 }
 0xe1d   : > { %v2543_v18 = vadd.f32 %v2539_v32, %v8355_v42 }
 0xe1f   : > { %v5928_v57 = vmul.f32 -1.442695, %v2543_v18 }
 0xe21   : > { %v7239_v4 = vpop.eup %7238  ;;  %7240 = vpow2.f32 %v5928_v57 }
 0xe22   : > { %v2569_v33 = vadd.f32 1.0, %v7239_v4  ;;  %v2522_v5 = vpop.f32.mrf.mxu3 }
 0xe24   : > { %7242 = vrcp.f32 %v2569_v33  ;;  %v2581_v40 = vand.u32 2147483648, %v2569_v33  ;;  %v2579_v12 = vand.u32 2147483647, %v2569_v33  ;;  %vm2575_vm8 = vweird.f32 %v2569_v33 }
 0xe26   : > { %v2582_v21 = vor.u32 1.1754944e-38, %v2581_v40  ;;  %vm2580_vm10 = vcmp.eq.f32.partialorder %v2579_v12, 8.507059e+37 }
 0xe27   : > { %v7241_v55 = vpop.eup %7240 }
 0xe28   : > { %v2548_v62 = vadd.f32 1.0, %v7241_v55 }
 0xe2a   : > { %v7243_v31 = vpop.eup %7242  ;;  %7244 = vrcp.f32 %v2548_v62  ;;  %v2560_v7 = vand.u32 2147483648, %v2548_v62  ;;  %v2558_v27 = vand.u32 2147483647, %v2548_v62  ;;  %vm2554_vm13 = vweird.f32 %v2548_v62 }
 0xe2b   : > { %v2571_v1 = vmul.f32 %v7243_v31, %v2569_v33  ;;  %vm2576_vm7 = vweird.f32 %v7243_v31  ;;  %7246 = vtanh.f32 %v2543_v18 }
 0xe2c   : > { %vm2577_vm9 = vmor %vm2575_vm8, %vm2576_vm7  ;;  %v2561_v34 = vor.u32 1.1754944e-38, %v2560_v7  ;;  %vm2559_vm15 = vcmp.eq.f32.partialorder %v2558_v27, 8.507059e+37 }
 0xe2d   : > { %v2572_v30 = vsub.f32 1.0, %v2571_v1 }
 0xe2f   : > { %v2573_v11 = vmul.f32 %v7243_v31, %v2572_v30 }
 0xe30   : > { %v7245_v15 = vpop.eup %7244 }
 0xe31   : > { %v2574_v16 = vadd.f32 %v7243_v31, %v2573_v11  ;;  %v2550_v42 = vmul.f32 %v7245_v15, %v2548_v62  ;;  %vm2555_vm12 = vweird.f32 %v7245_v15  ;;  %v7247_v60 = vpop.eup %7246 }
 0xe32   : > { %vm2556_vm14 = vmor %vm2554_vm13, %vm2555_vm12 }
 0xe33   : > { %v2578_v20 = vsel %vm2577_vm9, %v7243_v31, %v2574_v16  ;;  %v2551_v9 = vsub.f32 1.0, %v2550_v42 }
 0xe34   : > { %v2583_v19 = vsel %vm2580_vm10, %v2582_v21, %v2578_v20 }
 0xe35   : > { %v2595_v10 = vrot.slane %v2583_v19, 6  ;;  %v2552_v14 = vmul.f32 %v7245_v15, %v2551_v9 }
 0xe37   : > { %2597 = vrot.lane.b32.xlu1 %v2595_v10, %s9094_s29  ;;  %v2553_v45 = vadd.f32 %v7245_v15, %v2552_v14 }
 0xe39   : > { %v2557_v59 = vsel %vm2556_vm14, %v7245_v15, %v2553_v45 }
 0xe3a   : > { %v2562_v25 = vsel %vm2559_vm15, %v2561_v34, %v2557_v59 }
 0xe3b   : > { %v2565_v26 = vsel %vm1013_vm11, %v2562_v25, %v7247_v60 }
 0xe3c   : > { %v2586_v28 = vrot.slane %v2565_v26, 6 }
 0xe3e   : > { %2588 = vrot.lane.b32.xlu2 %v2586_v28, %s9094_s29 }
 0xe98   : > { %v2589_v29 = vpop.permute.xlu2 %2588 }
 0xe99   : > { %v2591_v49 = vrot.slane %v2589_v29, 2 }
 0xe9b   : > { %v2593_v50 = vmul.f32 %v2591_v49, %v2565_v26 }
 0xea9   : > { %v2598_v37 = vpop.permute.xlu1 %2597 }
 0xeaa   : > { %v2600_v38 = vrot.slane %v2598_v37, 2  ;;  %v2603_v58 = vsel %vm1013_vm11, %v2598_v37, %v2595_v10 }
 0xeac   : > { %v2602_v43 = vsel %vm1013_vm11, %v2583_v19, %v2600_v38 }
 0xead   : > { %v2607_v22 = vmul.f32 %v2605_v41, %v2602_v43 }
 0xeaf   : > { %v8458_v51 = vadd.f32 %v2607_v22, %v2593_v50 }
 0xeb1   : > { %7248 = vtanh.f32 %v8458_v51  ;;  %v2692_v19 = vrot.slane %v8458_v51, 6 }
 0xeb7   : > { %v7249_v52 = vpop.eup %7248 }
 0xeb8   : > { %v2611_v54 = vrot.slane %v7249_v52, 6 }
 0xeba   : > { %v2613_v24 = vmul.f32 %v2611_v54, %v2603_v58 }
 0xebc   : > { %2614 = vst [vmem:[#allocation4 + $0x6] sm:$0x3] %v2613_v24  ;;  %v2615_v61 = vpack.c.bf16 %v2613_v24, %v2613_v24 }
 0xebe   : > { %2624 = vmatmul.bf16.vlgmr.msrb.gmra.mxu1 %v2615_v61  ;;  %2637 = vmatmul.bf16.vlgmr.msra.gmra.mxu2 %v2615_v61 }
 0xf3b   : > { %v2625_v0 = vpop.f32.mrf.mxu1 }
 0xf3c   : > { %v2642_v13 = vadd.f32 %v2625_v0, %v8466_v63 }
 0xf3e   : > { %v5930_v2 = vmul.f32 -1.442695, %v2642_v13 }
 0xf40   : > { %7250 = vpow2.f32 %v5930_v2 }
 0xf41   : > { %v2638_v6 = vpop.f32.mrf.mxu2 }
 0xf42   : > { %v2643_v23 = vadd.f32 %v2638_v6, %v8472_v3 }
 0xf43   : > { %v2627_v48 = vpop.f32.mrf.mxu1 }
 0xf44   : > { %v5931_v56 = vmul.f32 -1.442695, %v2643_v23 }
 0xf46   : > { %v7251_v8 = vpop.eup %7250  ;;  %7252 = vpow2.f32 %v5931_v56 }
 0xf47   : > { %v2647_v53 = vadd.f32 1.0, %v7251_v8 }
 0xf49   : > { %7254 = vrcp.f32 %v2647_v53  ;;  %v2640_v47 = vpop.f32.mrf.mxu2  ;;  %v2659_v39 = vand.u32 2147483648, %v2647_v53  ;;  %v2657_v57 = vand.u32 2147483647, %v2647_v53  ;;  %vm2653_vm1 = vweird.f32 %v2647_v53 }
 0xf4b   : > { %v2660_v55 = vor.u32 1.1754944e-38, %v2659_v39  ;;  %vm2658_vm4 = vcmp.eq.f32.partialorder %v2657_v57, 8.507059e+37 }
 0xf4c   : > { %v7253_v46 = vpop.eup %7252 }
 0xf4d   : > { %v2668_v32 = vadd.f32 1.0, %v7253_v46 }
 0xf4f   : > { %v7255_v36 = vpop.eup %7254  ;;  %7256 = vrcp.f32 %v2668_v32  ;;  %v2680_v40 = vand.u32 2147483648, %v2668_v32  ;;  %v2678_v15 = vand.u32 2147483647, %v2668_v32  ;;  %vm2674_vm6 = vweird.f32 %v2668_v32 }
 0xf50   : > { %v2649_v18 = vmul.f32 %v7255_v36, %v2647_v53  ;;  %7258 = vtanh.f32 %v2642_v13  ;;  %vm2654_vm0 = vweird.f32 %v7255_v36 }
 0xf51   : > { %vm2655_vm3 = vmor %vm2653_vm1, %vm2654_vm0  ;;  %v2681_v42 = vor.u32 1.1754944e-38, %v2680_v40  ;;  %vm2679_vm8 = vcmp.eq.f32.partialorder %v2678_v15, 8.507059e+37 }
 0xf52   : > { %v2650_v35 = vsub.f32 1.0, %v2649_v18 }
 0xf54   : > { %v2651_v44 = vmul.f32 %v7255_v36, %v2650_v35 }
 0xf55   : > { %v7257_v4 = vpop.eup %7256 }
 0xf56   : > { %v2652_v33 = vadd.f32 %v7255_v36, %v2651_v44  ;;  %v2670_v5 = vmul.f32 %v7257_v4, %v2668_v32  ;;  %v7259_v1 = vpop.eup %7258  ;;  %vm2675_vm5 = vweird.f32 %v7257_v4 }
 0xf57   : > { %vm2676_vm7 = vmor %vm2674_vm6, %vm2675_vm5 }
 0xf58   : > { %v2656_v62 = vsel %vm2655_vm3, %v7255_v36, %v2652_v33  ;;  %v2671_v31 = vsub.f32 1.0, %v2670_v5 }
 0xf59   : > { %v2661_v30 = vsel %vm2658_vm4, %v2660_v55, %v2656_v62 }
 0xf5a   : > { %v2664_v11 = vsel %vm1013_vm11, %v2661_v30, %v7259_v1  ;;  %v2672_v12 = vmul.f32 %v7257_v4, %v2671_v31 }
 0xf5b   : > { %2684 = vrot.lane.b32.xlu1 %v2664_v11, %s9094_s29 }
 0xf5c   : > { %v2673_v16 = vadd.f32 %v7257_v4, %v2672_v12 }
 0xf5e   : > { %v2677_v21 = vsel %vm2676_vm7, %v7257_v4, %v2673_v16 }
 0xf5f   : > { %v2682_v20 = vsel %vm2679_vm8, %v2681_v42, %v2677_v21 }
 0xf60   : > { %2687 = vrot.lane.b32.xlu0 %v2682_v20, %s9094_s29 }
 0xfcd   : > { %v2685_v9 = vpop.permute.xlu1 %2684 }
 0xfce   : > { %v2686_v14 = vmul.f32 %v2685_v9, %v2664_v11 }
 0xfd2   : > { %v2688_v7 = vpop.permute.xlu0 %2687 }
 0xfd3   : > { %v2689_v10 = vsel %vm1013_vm11, %v2682_v20, %v2688_v7  ;;  %v2690_v59 = vsel %vm1013_vm11, %v2688_v7, %v2682_v20 }
 0xfd4   : > { %v2694_v27 = vmul.f32 %v2692_v19, %v2689_v10 }
 0xfd6   : > { %v8482_v45 = vadd.f32 %v2694_v27, %v2686_v14 }
 0xfd8   : > { %7260 = vtanh.f32 %v8482_v45  ;;  %v2794_v40 = vrot.slane %v8482_v45, 6 }
 0xfde   : > { %v7261_v34 = vpop.eup %7260 }
 0xfdf   : > { %v2697_v60 = vmul.f32 %v7261_v34, %v2690_v59 }
 0xfe1   : > { %2698 = vst [vmem:[#allocation4 + $0x8] sm:$0x3] %v2697_v60  ;;  %v2699_v25 = vpack.c.bf16 %v2697_v60, %v2697_v60 }
 0xfe3   : > { %2708 = vmatmul.bf16.vlgmr.msrb.gmra.mxu3 %v2699_v25  ;;  %2721 = vmatmul.bf16.vlgmr.msrb.gmra.mxu0 %v2699_v25 }
0x1060   : > { %v2722_v26 = vpop.f32.mrf.mxu0 }
0x1061   : > { %v2729_v28 = vrot.slane %v2722_v26, 6 }
0x1063   : > { %v2733_v29 = vadd.f32 %v2729_v28, %v8472_v3 }
0x1065   : > { %v5933_v49 = vmul.f32 -1.442695, %v2733_v29 }
0x1066   : > { %v2709_v37 = vpop.f32.mrf.mxu3 }
0x1067   : > { %7262 = vpow2.f32 %v5933_v49  ;;  %v2728_v38 = vrot.slane %v2709_v37, 6 }
0x1068   : > { %v2724_v41 = vpop.f32.mrf.mxu0 }
0x1069   : > { %v2732_v43 = vadd.f32 %v2728_v38, %v8466_v63 }
0x106b   : > { %v5932_v50 = vmul.f32 -1.442695, %v2732_v43 }
0x106d   : > { %v7263_v22 = vpop.eup %7262  ;;  %7264 = vpow2.f32 %v5932_v50 }
0x106e   : > { %v2758_v51 = vadd.f32 1.0, %v7263_v22  ;;  %v2711_v52 = vpop.f32.mrf.mxu3 }
0x1070   : > { %7266 = vrcp.f32 %v2758_v51  ;;  %v2770_v13 = vand.u32 2147483648, %v2758_v51  ;;  %v2768_v6 = vand.u32 2147483647, %v2758_v51  ;;  %vm2764_vm10 = vweird.f32 %v2758_v51 }
0x1072   : > { %v2771_v8 = vor.u32 1.1754944e-38, %v2770_v13  ;;  %vm2769_vm13 = vcmp.eq.f32.partialorder %v2768_v6, 8.507059e+37 }
0x1073   : > { %v7265_v54 = vpop.eup %7264 }
0x1074   : > { %v2737_v58 = vadd.f32 1.0, %v7265_v54 }
0x1076   : > { %v7267_v24 = vpop.eup %7266  ;;  %7268 = vrcp.f32 %v2737_v58  ;;  %v2749_v32 = vand.u32 2147483648, %v2737_v58  ;;  %v2747_v35 = vand.u32 2147483647, %v2737_v58  ;;  %vm2743_vm15 = vweird.f32 %v2737_v58 }
0x1077   : > { %v2760_v61 = vmul.f32 %v7267_v24, %v2758_v51  ;;  %vm2765_vm9 = vweird.f32 %v7267_v24  ;;  %7270 = vtanh.f32 %v2732_v43 }
0x1078   : > { %vm2766_vm12 = vmor %vm2764_vm10, %vm2765_vm9  ;;  %v2750_v44 = vor.u32 1.1754944e-38, %v2749_v32  ;;  %vm2748_vm1 = vcmp.eq.f32.partialorder %v2747_v35, 8.507059e+37 }
0x1079   : > { %v2761_v0 = vsub.f32 1.0, %v2760_v61 }
0x107b   : > { %v2762_v2 = vmul.f32 %v7267_v24, %v2761_v0 }
0x107c   : > { %v7269_v23 = vpop.eup %7268 }
0x107d   : > { %v2763_v48 = vadd.f32 %v7267_v24, %v2762_v2  ;;  %v2739_v56 = vmul.f32 %v7269_v23, %v2737_v58  ;;  %vm2744_vm14 = vweird.f32 %v7269_v23  ;;  %v7271_v4 = vpop.eup %7270 }
0x107e   : > { %vm2745_vm0 = vmor %vm2743_vm15, %vm2744_vm14 }
0x107f   : > { %v2767_v53 = vsel %vm2766_vm12, %v7267_v24, %v2763_v48  ;;  %v2740_v47 = vsub.f32 1.0, %v2739_v56 }
0x1080   : > { %v2772_v46 = vsel %vm2769_vm13, %v2771_v8, %v2767_v53 }
0x1081   : > { %v2784_v36 = vrot.slane %v2772_v46, 2  ;;  %v2741_v18 = vmul.f32 %v7269_v23, %v2740_v47 }
0x1083   : > { %2786 = vrot.lane.b32.xlu2 %v2784_v36, %s9094_s29  ;;  %v2742_v39 = vadd.f32 %v7269_v23, %v2741_v18 }
0x1085   : > { %v2746_v57 = vsel %vm2745_vm0, %v7269_v23, %v2742_v39 }
0x1086   : > { %v2751_v33 = vsel %vm2748_vm1, %v2750_v44, %v2746_v57 }
0x1087   : > { %v2754_v5 = vsel %vm1013_vm11, %v2751_v33, %v7271_v4 }
0x1088   : > { %v2775_v55 = vrot.slane %v2754_v5, 2 }
0x108a   : > { %2777 = vrot.lane.b32.xlu0 %v2775_v55, %s9094_s29 }
0x10dd   : > { %v2787_v62 = vpop.permute.xlu2 %2786 }
0x10de   : > { %v2789_v31 = vrot.slane %v2787_v62, 6  ;;  %v2792_v20 = vsel %vm1013_vm11, %v2787_v62, %v2784_v36 }
0x10e0   : > { %v2791_v1 = vsel %vm1013_vm11, %v2772_v46, %v2789_v31 }
0x10e1   : > { %v2796_v12 = vmul.f32 %v2794_v40, %v2791_v1 }
0x10fc   : > { %v2778_v30 = vpop.permute.xlu0 %2777 }
0x10fd   : > { %v2780_v11 = vrot.slane %v2778_v30, 6 }
0x10ff   : > { %v2782_v15 = vmul.f32 %v2780_v11, %v2754_v5 }
0x1101   : > { %v8496_v16 = vadd.f32 %v2796_v12, %v2782_v15 }
0x1103   : > { %7272 = vtanh.f32 %v8496_v16  ;;  %v2899_v57 = vrot.slane %v8496_v16, 6 }
0x1109   : > { %v7273_v42 = vpop.eup %7272 }
0x110a   : > { %v2800_v21 = vrot.slane %v7273_v42, 2 }
0x110c   : > { %v2802_v9 = vmul.f32 %v2800_v21, %v2792_v20 }
0x110e   : > { %2803 = vst [vmem:[#allocation4 + $0xa] sm:$0x3] %v2802_v9  ;;  %v2804_v19 = vpack.c.bf16 %v2802_v9, %v2802_v9 }
0x1110   : > { %2813 = vmatmul.bf16.vlgmr.msra.gmra.mxu1 %v2804_v19  ;;  %2826 = vmatmul.bf16.vlgmr.msrb.gmra.mxu2 %v2804_v19 }
0x118d   : > { %v2814_v7 = vpop.f32.mrf.mxu1 }
0x118e   : > { %v2833_v10 = vrot.slane %v2814_v7, 4 }
0x1190   : > { %v2837_v14 = vadd.f32 %v2833_v10, %v8466_v63 }
0x1192   : > { %v5934_v27 = vmul.f32 -1.442695, %v2837_v14 }
0x1193   : > { %v2827_v45 = vpop.f32.mrf.mxu2 }
0x1194   : > { %7274 = vpow2.f32 %v5934_v27  ;;  %v2834_v34 = vrot.slane %v2827_v45, 4 }
0x1195   : > { %v2816_v59 = vpop.f32.mrf.mxu1 }
0x1196   : > { %v2838_v60 = vadd.f32 %v2834_v34, %v8472_v3 }
0x1198   : > { %v5935_v25 = vmul.f32 -1.442695, %v2838_v60 }
0x119a   : > { %v7275_v26 = vpop.eup %7274  ;;  %7276 = vpow2.f32 %v5935_v25 }
0x119b   : > { %v2842_v28 = vadd.f32 1.0, %v7275_v26  ;;  %v2829_v29 = vpop.f32.mrf.mxu2 }
0x119d   : > { %7278 = vrcp.f32 %v2842_v28  ;;  %v2854_v50 = vand.u32 2147483648, %v2842_v28  ;;  %v2852_v51 = vand.u32 2147483647, %v2842_v28  ;;  %vm2848_vm4 = vweird.f32 %v2842_v28 }
0x119f   : > { %v2855_v24 = vor.u32 1.1754944e-38, %v2854_v50  ;;  %vm2853_vm6 = vcmp.eq.f32.partialorder %v2852_v51, 8.507059e+37 }
0x11a0   : > { %v7277_v49 = vpop.eup %7276 }
0x11a1   : > { %v2863_v37 = vadd.f32 1.0, %v7277_v49 }
0x11a3   : > { %v7279_v38 = vpop.eup %7278  ;;  %7280 = vrcp.f32 %v2863_v37  ;;  %v2875_v6 = vand.u32 2147483648, %v2863_v37  ;;  %v2873_v56 = vand.u32 2147483647, %v2863_v37  ;;  %vm2869_vm8 = vweird.f32 %v2863_v37 }
0x11a4   : > { %v2844_v41 = vmul.f32 %v7279_v38, %v2842_v28  ;;  %7282 = vtanh.f32 %v2837_v14  ;;  %vm2849_vm3 = vweird.f32 %v7279_v38 }
0x11a5   : > { %vm2850_vm5 = vmor %vm2848_vm4, %vm2849_vm3  ;;  %v2876_v47 = vor.u32 1.1754944e-38, %v2875_v6  ;;  %vm2874_vm10 = vcmp.eq.f32.partialorder %v2873_v56, 8.507059e+37 }
0x11a6   : > { %v2845_v43 = vsub.f32 1.0, %v2844_v41 }
0x11a8   : > { %v2846_v22 = vmul.f32 %v7279_v38, %v2845_v43 }
0x11a9   : > { %v7281_v52 = vpop.eup %7280 }
0x11aa   : > { %v2847_v54 = vadd.f32 %v7279_v38, %v2846_v22  ;;  %v2865_v58 = vmul.f32 %v7281_v52, %v2863_v37  ;;  %v7283_v13 = vpop.eup %7282  ;;  %vm2870_vm7 = vweird.f32 %v7281_v52 }
0x11ab   : > { %vm2871_vm9 = vmor %vm2869_vm8, %vm2870_vm7 }
0x11ac   : > { %v2851_v61 = vsel %vm2850_vm5, %v7279_v38, %v2847_v54  ;;  %v2866_v0 = vsub.f32 1.0, %v2865_v58  ;;  %vm3024_vm5 = vcmask 130048  }
0x11ad   : > { %v2856_v2 = vsel %vm2853_vm6, %v2855_v24, %v2851_v61 }
0x11ae   : > { %v2859_v23 = vsel %vm1013_vm11, %v2856_v2, %v7283_v13  ;;  %v2867_v48 = vmul.f32 %v7281_v52, %v2866_v0 }
0x11af   : > { %v2880_v8 = vrot.slane %v2859_v23, 4 }
0x11b0   : > { %v2868_v53 = vadd.f32 %v7281_v52, %v2867_v48 }
0x11b1   : > { %2882 = vrot.lane.b32.xlu2 %v2880_v8, %s9094_s29 }
0x11b2   : > { %v2872_v46 = vsel %vm2871_vm9, %v7281_v52, %v2868_v53 }
0x11b3   : > { %v2877_v32 = vsel %vm2874_vm10, %v2876_v47, %v2872_v46 }
0x11b4   : > { %v2889_v36 = vrot.slane %v2877_v32, 4 }
0x11b6   : > { %2891 = vrot.lane.b32.xlu1 %v2889_v36, %s9094_s29 }
0x120b   : > { %v2883_v18 = vpop.permute.xlu2 %2882 }
0x120c   : > { %v2885_v35 = vrot.slane %v2883_v18, 4 }
0x120e   : > { %v2887_v33 = vmul.f32 %v2885_v35, %v2859_v23 }
0x1228   : > { %v2892_v39 = vpop.permute.xlu1 %2891 }
0x1229   : > { %v2894_v44 = vrot.slane %v2892_v39, 4  ;;  %v2897_v1 = vsel %vm1013_vm11, %v2892_v39, %v2889_v36  ;;  %v3014_v39 = vld [vmem:[#allocation4] sm:$0xff] }
0x122b   : > { %v2896_v4 = vsel %vm1013_vm11, %v2877_v32, %v2894_v44 }
0x122c   : > { %v2901_v5 = vmul.f32 %v2899_v57, %v2896_v4  ;;  %v6880_v4 = vld [vmem:[%s9095_s4] sm:$0xff] }
0x122e   : > { %v8510_v55 = vadd.f32 %v2901_v5, %v2887_v33 }
0x1230   : > { %7284 = vtanh.f32 %v8510_v55  ;;  %v3004_v56 = vrot.slane %v8510_v55, 6 }
0x1236   : > { %v7285_v62 = vpop.eup %7284 }
0x1237   : > { %v2905_v31 = vrot.slane %v7285_v62, 4 }
0x1239   : > { %v2907_v30 = vmul.f32 %v2905_v31, %v2897_v1 }
0x123b   : > { %2908 = vst [vmem:[#allocation4 + $0xc] sm:$0x3] %v2907_v30  ;;  %v2909_v40 = vpack.c.bf16 %v2907_v30, %v2907_v30 }
0x123d   : > { %2918 = vmatmul.bf16.vlgmr.msra.gmra.mxu3 %v2909_v40  ;;  %2931 = vmatmul.bf16.vlgmr.msra.gmra.mxu0 %v2909_v40 }
0x12ba   : > { %v2932_v11 = vpop.f32.mrf.mxu0 }
0x12bb   : > { %v2939_v12 = vrot.slane %v2932_v11, 2 }
0x12bd   : > { %v2943_v15 = vadd.f32 %v2939_v12, %v8472_v3 }
0x12bf   : > { %v5937_v16 = vmul.f32 -1.442695, %v2943_v15 }
0x12c0   : > { %v2919_v42 = vpop.f32.mrf.mxu3 }
0x12c1   : > { %7286 = vpow2.f32 %v5937_v16  ;;  %v2938_v21 = vrot.slane %v2919_v42, 2 }
0x12c2   : > { %v2934_v20 = vpop.f32.mrf.mxu0 }
0x12c3   : > { %v2942_v9 = vadd.f32 %v2938_v21, %v8466_v63 }
0x12c5   : > { %v5936_v19 = vmul.f32 -1.442695, %v2942_v9 }
0x12c7   : > { %v7287_v7 = vpop.eup %7286  ;;  %7288 = vpow2.f32 %v5936_v19 }
0x12c8   : > { %v2968_v10 = vadd.f32 1.0, %v7287_v7  ;;  %v2921_v14 = vpop.f32.mrf.mxu3 }
0x12ca   : > { %7290 = vrcp.f32 %v2968_v10  ;;  %v2980_v3 = vand.u32 2147483648, %v2968_v10  ;;  %v2978_v26 = vand.u32 2147483647, %v2968_v10  ;;  %vm2974_vm13 = vweird.f32 %v2968_v10 }
0x12cc   : > { %v2981_v49 = vor.u32 1.1754944e-38, %v2980_v3  ;;  %vm2979_vm15 = vcmp.eq.f32.partialorder %v2978_v26, 8.507059e+37 }
0x12cd   : > { %v7289_v27 = vpop.eup %7288 }
0x12ce   : > { %v2947_v45 = vadd.f32 1.0, %v7289_v27 }
0x12d0   : > { %v7291_v34 = vpop.eup %7290  ;;  %7292 = vrcp.f32 %v2947_v45  ;;  %v2959_v43 = vand.u32 2147483648, %v2947_v45  ;;  %v2957_v51 = vand.u32 2147483647, %v2947_v45  ;;  %vm2953_vm1 = vweird.f32 %v2947_v45 }
0x12d1   : > { %v2970_v59 = vmul.f32 %v7291_v34, %v2968_v10  ;;  %vm2975_vm12 = vweird.f32 %v7291_v34  ;;  %7294 = vtanh.f32 %v2942_v9 }
0x12d2   : > { %vm2976_vm14 = vmor %vm2974_vm13, %vm2975_vm12  ;;  %v2960_v54 = vor.u32 1.1754944e-38, %v2959_v43  ;;  %vm2958_vm4 = vcmp.eq.f32.partialorder %v2957_v51, 8.507059e+37 }
0x12d3   : > { %v2971_v60 = vsub.f32 1.0, %v2970_v59 }
0x12d5   : > { %v2972_v25 = vmul.f32 %v7291_v34, %v2971_v60 }
0x12d6   : > { %v7293_v28 = vpop.eup %7292 }
0x12d7   : > { %v2973_v29 = vadd.f32 %v7291_v34, %v2972_v25  ;;  %v2949_v63 = vmul.f32 %v7293_v28, %v2947_v45  ;;  %vm2954_vm0 = vweird.f32 %v7293_v28  ;;  %v7295_v24 = vpop.eup %7294 }
0x12d8   : > { %vm2955_vm3 = vmor %vm2953_vm1, %vm2954_vm0 }
0x12d9   : > { %v2977_v37 = vsel %vm2976_vm14, %v7291_v34, %v2973_v29  ;;  %v2950_v38 = vsub.f32 1.0, %v2949_v63 }
0x12da   : > { %v2982_v41 = vsel %vm2979_vm15, %v2981_v49, %v2977_v37 }
0x12db   : > { %v2994_v50 = vrot.slane %v2982_v41, 6  ;;  %v2951_v22 = vmul.f32 %v7293_v28, %v2950_v38 }
0x12dd   : > { %2996 = vrot.lane.b32.xlu0 %v2994_v50, %s9094_s29  ;;  %v2952_v52 = vadd.f32 %v7293_v28, %v2951_v22 }
0x12df   : > { %v2956_v58 = vsel %vm2955_vm3, %v7293_v28, %v2952_v52 }
0x12e0   : > { %v2961_v61 = vsel %vm2958_vm4, %v2960_v54, %v2956_v58 }
0x12e1   : > { %v2964_v0 = vsel %vm1013_vm11, %v2961_v61, %v7295_v24 }
0x12e2   : > { %v2985_v13 = vrot.slane %v2964_v0, 6 }
0x12e4   : > { %2987 = vrot.lane.b32.xlu1 %v2985_v13, %s9094_s29 }
0x134f   : > { %v2997_v2 = vpop.permute.xlu0 %2996 }
0x1350   : > { %v2999_v6 = vrot.slane %v2997_v2, 2  ;;  %v3002_v18 = vsel %vm1013_vm11, %v2997_v2, %v2994_v50 }
0x1352   : > { %v3001_v23 = vsel %vm1013_vm11, %v2982_v41, %v2999_v6 }
0x1353   : > { %v3006_v53 = vmul.f32 %v3004_v56, %v3001_v23 }
0x1356   : > { %v2988_v48 = vpop.permute.xlu1 %2987 }
0x1357   : > { %v2990_v8 = vrot.slane %v2988_v48, 2 }
0x1359   : > { %v2992_v47 = vmul.f32 %v2990_v8, %v2964_v0 }
0x135b   : > { %v3007_v46 = vadd.f32 %v3006_v53, %v2992_v47 }
0x135d   : > { %7296 = vtanh.f32 %v3007_v46 }
0x1363   : > { %v7297_v32 = vpop.eup %7296 }
0x1364   : > { %v3010_v36 = vrot.slane %v7297_v32, 6 }
0x1366   : > { %v3012_v35 = vmul.f32 %v3010_v36, %v3002_v18 }
0x1368   : > { %3013 = vst [vmem:[#allocation4 + $0xe] sm:$0x3] %v3012_v35 }
0x136f   : > { %v3015_v44 = vld [vmem:[#allocation4 + $0x8] sm:$0xff] }
0x1370   : > { %v3018_v57 = vpack.c.bf16 %v3015_v44, %v3014_v39 }
0x1372   : > { %3035 = vmatpush.bf16.msrb.mxu1 %v3018_v57 }
0x1375   : > { %5942 = vmatmul.msk.bf16.vlgmr.msrb.gmra.mxu1 %vm3024_vm5, %v6880_v4 }
0x13f2   : > { %v3037_v33 = vpop.f32.mrf.mxu1 }
0x13f3   : > { %3042 = vst.msk [vmem:[#allocation2] sm:$0xff] %vm1085_vm2, %v3037_v33 }
0x13fa   : > { %v3039_v5 = vpop.f32.mrf.mxu1 }
0x13fb   : > { %3043 = vst.msk [vmem:[#allocation2 + $0x8] sm:$0xff] %vm1085_vm2, %v3039_v5 }
0x13fc PF: > { %v5969_v17 = vld [vmem:[%s7501_s0 + $0x30] sm:$0xf]  ;;  %v6888_v55 = vld [vmem:[%s7501_s0 + $0x34] sm:$0xf0]  ;;  %v5961_v62 = vld [vmem:[%s7501_s0 + $0x20] sm:$0xf]  ;;  %s9097_s8 = scalar_lea.vmem %s9034_s15, %s7494_s7  ;;  %s9098_s9 = scalar_lea.vmem %s9039_s20, %s7494_s7 }
0x13fd   : > { %v5970_v31 = vor.u32 %v6888_v55, %v5969_v17  ;;  %v6886_v1 = vld [vmem:[%s7501_s0 + $0x24] sm:$0xf0]  ;;  %v5953_v40 = vld [vmem:[%s7501_s0 + $0x10] sm:$0xf]  ;;  %v6884_v11 = vld [vmem:[%s7501_s0 + $0x14] sm:$0xf0]  ;;  %s9099_s16 = scalar_lea.vmem %s9040_s21, %s7494_s7  ;;  %s9101_s29 = scalar_lea.vmem %s9041_s22, %s7494_s7 }
0x13fe   : > { %v5962_v30 = vor.u32 %v6886_v1, %v5961_v62  ;;  %v5954_v12 = vor.u32 %v6884_v11, %v5953_v40  ;;  %v5945_v15 = vld [vmem:[%s7501_s0] sm:$0xf]  ;;  %v6882_v16 = vld [vmem:[%s7501_s0 + $0x4] sm:$0xf0]  ;;  %vm3101_vm2 = vcmask 523264   ;;  %s9096_s26 = sld [smem:[#allocation16_spill]] }
0x13ff   : > { %3109 = vmatpush.bf16.msra.mxu0 %v5970_v31  ;;  %v5946_v42 = vor.u32 %v6882_v16, %v5945_v15  ;;  %v8539_v21 = vld [vmem:[#allocation2] sm:$0xff]  ;;  %s7345_s27 = smov 64   ;;  %v6887_v25 = vld [vmem:[%s7501_s0 + $0x34] sm:$0xf]  ;;  %v5971_v26 = vld [vmem:[%s7501_s0 + $0x38] sm:$0xf0] }
0x1400   : > { %v8550_v7 = vld [vmem:[%s7506_s2] sm:$0x3]  ;;  %v6885_v28 = vld [vmem:[%s7501_s0 + $0x24] sm:$0xf]  ;;  %v5974_v29 = vor.u32 %v6887_v25, %v5971_v26  ;;  %v5963_v63 = vld [vmem:[%s7501_s0 + $0x28] sm:$0xf0] }
0x1401   : > { %v3057_v10 = vperm.slane %v8550_v7, 0  ;;  %v5966_v37 = vor.u32 %v6885_v28, %v5963_v63  ;;  %v6883_v38 = vld [vmem:[%s7501_s0 + $0x14] sm:$0xf]  ;;  %v5955_v41 = vld [vmem:[%s7501_s0 + $0x18] sm:$0xf0]  ;;  %v6894_v57 = vld [vmem:[%s7516_s25 + $0x8] sm:$0xff] }
0x1402   : > { %v8541_v20 = vld [vmem:[#allocation2 + $0x8] sm:$0xff]  ;;  %3123 = vmatpush.bf16.msra.mxu1 %v5974_v29  ;;  %v5958_v43 = vor.u32 %v6883_v38, %v5955_v41  ;;  %v6881_v50 = vld [vmem:[%s7501_s0 + $0x4] sm:$0xf]  ;;  %v6896_v46 = vld [vmem:[%s7516_s25 + $0x18] sm:$0xff]  ;;  %p6796_p5 = scmp.ne.s32.totalorder %s7488_s3, 1 }
0x1403   : > { %3110 = vmatpush.bf16.msra.mxu0 %v5962_v30  ;;  %v3046_v9 = vpack.c.bf16 %v8541_v20, %v8539_v21  ;;  %v5947_v22 = vld [vmem:[%s7501_s0 + $0x8] sm:$0xf0]  ;;  %3304 = vmatpush.bf16.msra.mxu3 %v6896_v46  ;;  %v6895_v18 = vld [vmem:[%s7516_s25 + $0x10] sm:$0xff]  ;;  %v6893_v55 = vld [vmem:[%s7516_s25] sm:$0xff]  ;;  %s9102_s0 = scalar_lea.vmem %s9042_s23, %s7494_s7  ;;  %s9103_s4 = sld [smem:[#allocation23_spill]] (!%p6796_p5) }
0x1404   : > { %v6892_v19 = vld [vmem:[%s9096_s26 + $0x18] sm:$0xff]  ;;  %v6891_v59 = vld [vmem:[%s9096_s26 + $0x10] sm:$0xff]  ;;  %v6890_v60 = vld [vmem:[%s9096_s26 + $0x8] sm:$0xff]  ;;  %v5950_v52 = vor.u32 %v6881_v50, %v5947_v22 }
0x1405   : > { %3189 = vmatpush.bf16.msra.mxu2 %v6892_v19  ;;  %v6889_v3 = vld [vmem:[%s9096_s26] sm:$0xff] }
0x1406   : > { %3124 = vmatpush.bf16.msra.mxu1 %v5966_v37 }
0x1407   : > { %3111 = vmatpush.bf16.msra.mxu0 %v5954_v12  ;;  %3305 = vmatpush.bf16.msra.mxu3 %v6895_v18 }
0x1409   : > { %3190 = vmatpush.bf16.msra.mxu2 %v6891_v59 }
0x140a   : > { %3125 = vmatpush.bf16.msra.mxu1 %v5958_v43 }
0x140b   : > { %3112 = vmatpush.bf16.msra.mxu0 %v5946_v42  ;;  %3306 = vmatpush.bf16.msra.mxu3 %v6894_v57 }
0x140d   : > { %3191 = vmatpush.bf16.msra.mxu2 %v6890_v60 }
0x140e   : > { %5975 = vmatmul.msk.bf16.vlgmr.msra.gmra.mxu0 %vm3101_vm2, %v3046_v9  ;;  %3126 = vmatpush.bf16.msra.mxu1 %v5950_v52 }
0x140f   : > { %3307 = vmatpush.bf16.msra.mxu3 %v6893_v55 }
0x1411   : > { %3192 = vmatpush.bf16.msra.mxu2 %v6889_v3  ;;  %5976 = vmatmul.msk.bf16.vlgmr.msra.gmra.mxu1 %vm3101_vm2, %v3046_v9 }
0x148b   : > { %v3114_v14 = vpop.f32.mrf.mxu0 }
0x148c   : > { %v3115_v27 = vadd.f32 %v3114_v14, %v3057_v10 }
0x148e   : > { %3134 = vrot.lane.b32.xlu0 %v3115_v27, %s7345_s27  ;;  %v3128_v12 = vpop.f32.mrf.mxu1 }
0x1493   : > { %v3116_v45 = vpop.f32.mrf.mxu0 }
0x1494   : > { %v3117_v34 = vadd.f32 %v3116_v45, %v3057_v10 }
0x1496   : > { %3139 = vrot.lane.b32.xlu0 %v3117_v34, %s7345_s27  ;;  %v3130_v59 = vpop.f32.mrf.mxu1  ;;  %s9104_s27 = sld [smem:[#allocation17_spill]] (!%p6796_p5) }
0x1500   : > { %v3135_v49 = vpop.permute.xlu0 %3134 }
0x1501   : > { %v3137_v54 = vmul.f32 %v3135_v49, %v3115_v27  ;;  %v3143_v0 = vmul.f32 %v3135_v49, %v3117_v34 }
0x1508   : > { %v3140_v51 = vpop.permute.xlu0 %3139 }
0x1509   : > { %v3142_v58 = vmul.f32 %v3140_v51, %v3115_v27  ;;  %v3144_v61 = vmul.f32 %v3140_v51, %v3117_v34  ;;  %v3058_v27 = vperm.slane %v8550_v7, 1 }
0x150b   : > { %v3145_v24 = vpack.c.bf16 %v3142_v58, %v3137_v54  ;;  %v3146_v13 = vpack.c.bf16 %v3144_v61, %v3143_v0  ;;  %v3129_v28 = vadd.f32 %v3128_v12, %v3058_v27  ;;  %v3131_v29 = vadd.f32 %v3130_v59, %v3058_v27  ;;  %v7298_v0 = vld [vmem:[%s9097_s8] ss:$0 sm:$0xff]  ;;  %v6908_v27 = vld [vmem:[%s7522_s28 + $0x144] sm:$0xf0] }
0x150c   : > { %v6062_v12 = vld [vmem:[%s7522_s28 + $0x180] sm:$0xf] }
0x150d   : > { %5993 = vmatmul.msk.bf16.vlgmr.msra.gmra.mxu2 %vm3101_vm2, %v3145_v24  ;;  %v6907_v59 = vld [vmem:[%s7522_s28 + $0x13c] sm:$0xf0] }
0x151d   : > { %5994 = vmatmul.msk.bf16.gmra.mxu2 %vm3101_vm2, %v3146_v13 }
0x1590   : > { %v3194_v2 = vpop.f32.mrf.mxu2 }
0x1598   : > { %v3196_v6 = vpop.f32.mrf.mxu2 }
0x1599   : > { %v3204_v23 = vmax.f32 %v3194_v2, %v3196_v6 }
0x159b   : > { %v3205_v48 = vsub.f32 %v3194_v2, %v3204_v23  ;;  %v3208_v56 = vsub.f32 %v3196_v6, %v3204_v23 }
0x159d   : > { %v3206_v8 = vmul.f32 1.442695, %v3205_v48  ;;  %v3209_v53 = vmul.f32 1.442695, %v3208_v56 }
0x159f   : > { %7304 = vpow2.f32 %v3206_v8 }
0x15a0   : > { %7306 = vpow2.f32 %v3209_v53  ;;  %v3199_v47 = vpop.f32.mrf.mxu2 }
0x15a5   : > { %v7305_v32 = vpop.eup %7304 }
0x15a6   : > { %v7307_v36 = vpop.eup %7306 }
0x15a7   : > { %v3211_v35 = vadd.f32 %v7307_v36, %v7305_v32 }
0x15a8   : > { %v3201_v39 = vpop.f32.mrf.mxu2 }
0x15a9   : > { %7308 = vrcp.f32 %v3211_v35  ;;  %v3232_v44 = vmax.f32 %v3199_v47, %v3201_v39  ;;  %v3223_v42 = vand.u32 2147483648, %v3211_v35  ;;  %vm3217_vm6 = vweird.f32 %v3211_v35 }
0x15aa   : > { %v3221_v9 = vand.u32 2147483647, %v3211_v35 }
0x15ab   : > { %v3233_v4 = vsub.f32 %v3199_v47, %v3232_v44  ;;  %v3236_v33 = vsub.f32 %v3201_v39, %v3232_v44  ;;  %v3224_v45 = vor.u32 1.1754944e-38, %v3223_v42  ;;  %v7346_v47 = vmov 64.0  }
0x15ac   : > { %vm3222_vm8 = vcmp.eq.f32.partialorder %v3221_v9, 8.507059e+37  ;;  %v6909_v9 = vld [vmem:[%s7522_s28 + $0x184] sm:$0xf] }
0x15ad   : > { %v3234_v5 = vmul.f32 1.442695, %v3233_v4  ;;  %v3237_v17 = vmul.f32 1.442695, %v3236_v33 }
0x15af   : > { %v7309_v62 = vpop.eup %7308  ;;  %7310 = vpow2.f32 %v3234_v5 }
0x15b0   : > { %7312 = vpow2.f32 %v3237_v17  ;;  %v3213_v31 = vmul.f32 %v7309_v62, %v3211_v35  ;;  %vm3218_vm11 = vweird.f32 %v7309_v62 }
0x15b1   : > { %vm3219_vm7 = vmor %vm3217_vm6, %vm3218_vm11 }
0x15b2   : > { %v3214_v1 = vsub.f32 1.0, %v3213_v31  ;;  %v6957_v31 = vld [vmem:[%s7522_s28 + $0x194] sm:$0xf] }
0x15b4   : > { %v3215_v15 = vmul.f32 %v7309_v62, %v3214_v1  ;;  %v6132_v1 = vld [vmem:[%s7522_s28 + $0x1d0] sm:$0xf0] }
0x15b5   : > { %v7311_v30 = vpop.eup %7310 }
0x15b6   : > { %v7313_v40 = vpop.eup %7312  ;;  %v3216_v16 = vadd.f32 %v7309_v62, %v3215_v15  ;;  %v6911_v15 = vld [vmem:[%s7522_s28 + $0x1bc] sm:$0xf0] }
0x15b7   : > { %v3239_v11 = vadd.f32 %v7313_v40, %v7311_v30  ;;  %v6063_v42 = vor.u32 %v6911_v15, %v6062_v12  ;;  %v6056_v12 = vld [vmem:[%s7522_s28 + $0x148] sm:$0xf0]  ;;  %v6114_v15 = vld [vmem:[%s7522_s28 + $0x110] sm:$0xf] }
0x15b8   : > { %v3220_v10 = vsel %vm3219_vm7, %v7309_v62, %v3216_v16 }
0x15b9   : > { %7314 = vrcp.f32 %v3239_v11  ;;  %v3225_v60 = vsel %vm3222_vm8, %v3224_v45, %v3220_v10  ;;  %v3251_v3 = vand.u32 2147483648, %v3239_v11  ;;  %v3249_v26 = vand.u32 2147483647, %v3239_v11  ;;  %3493 = vmatpush.bf16.msrb.mxu0 %v6063_v42  ;;  %v6046_v45 = vld [vmem:[%s7522_s28 + $0x100] sm:$0xf] }
0x15ba   : > { %v3227_v63 = vmul.f32 %v7305_v32, %v3225_v60  ;;  %vm3245_vm10 = vweird.f32 %v3239_v11  ;;  %v3229_v37 = vmul.f32 %v7307_v36, %v3225_v60  ;;  %7316 = vrcp.f32 %v7346_v47  ;;  %v6905_v60 = vld [vmem:[%s7522_s28 + $0x104] sm:$0xf]  ;;  %v6945_v47 = vld [vmem:[%s7522_s28 + $0x14] sm:$0xf] }
0x15bb   : > { %v3252_v38 = vor.u32 1.1754944e-38, %v3251_v3  ;;  %vm3250_vm13 = vcmp.eq.f32.partialorder %v3249_v26, 8.507059e+37  ;;  %v6048_v3 = vld [vmem:[%s7522_s28 + $0x140] sm:$0xf0] }
0x15bc   : > { %v3228_v43 = vmul.f32 %v3227_v63, %v3129_v28  ;;  %v3230_v22 = vmul.f32 %v3229_v37, %v3131_v29  ;;  %v6051_v26 = vor.u32 %v6905_v60, %v6048_v3  ;;  %v6904_v37 = vld [vmem:[%s7522_s28 + $0xc4] sm:$0xf0]  ;;  %v6951_v3 = vld [vmem:[%s7522_s28 + $0xcc] sm:$0xf0] }
0x15be   : > { %v3231_v58 = vadd.f32 %v3230_v22, %v3228_v43  ;;  %v6901_v43 = vld [vmem:[%s7522_s28 + $0x84] sm:$0xf] }
0x15bf   : > { %v7315_v19 = vpop.eup %7314 }
0x15c0   : > { %v3241_v14 = vmul.f32 %v7315_v19, %v3239_v11  ;;  %vm3246_vm9 = vweird.f32 %v7315_v19  ;;  %v7317_v46 = vpop.eup %7316  ;;  %v6912_v11 = vld [vmem:[%s7522_s28 + $0x1c4] sm:$0xf0] }
0x15c1   : > { %vm3247_vm12 = vmor %vm3245_vm10, %vm3246_vm9  ;;  %v3325_v32 = vmul.f32 64.0, %v7317_v46  ;;  %vm3329_vm14 = vweird.f32 %v7317_v46 }
0x15c2   : > { %v3242_v34 = vsub.f32 1.0, %v3241_v14  ;;  %v6054_v14 = vld [vmem:[%s7522_s28 + $0x108] sm:$0xf] }
0x15c3   : > { %v3326_v36 = vsub.f32 1.0, %v3325_v32 }
0x15c4   : > { %v3243_v25 = vmul.f32 %v7315_v19, %v3242_v34  ;;  %v6055_v34 = vor.u32 %v6908_v27, %v6054_v14  ;;  %v6902_v14 = vld [vmem:[%s7522_s28 + $0x8c] sm:$0xf] }
0x15c5   : > { %v3327_v18 = vmul.f32 %v7317_v46, %v3326_v36 }
0x15c6   : > { %v3244_v49 = vadd.f32 %v7315_v19, %v3243_v25  ;;  %v6047_v25 = vor.u32 %v6907_v59, %v6046_v45  ;;  %v6098_v59 = vld [vmem:[%s7522_s28 + $0x90] sm:$0xf] }
0x15c7   : > { %v3328_v35 = vadd.f32 %v7317_v46, %v3327_v18  ;;  %v6138_v18 = vld [vmem:[%s7522_s28 + $0x198] sm:$0xf] }
0x15c8   : > { %v3248_v41 = vsel %vm3247_vm12, %v7315_v19, %v3244_v49  ;;  %v6064_v19 = vld [vmem:[%s7522_s28 + $0x1c0] sm:$0xf0]  ;;  %3494 = vmatpush.bf16.msrb.mxu0 %v6047_v25  ;;  %v6038_v49 = vld [vmem:[%s7522_s28 + $0x88] sm:$0xf] }
0x15c9   : > { %v3253_v7 = vsel %vm3250_vm13, %v3252_v38, %v3248_v41  ;;  %v6067_v10 = vor.u32 %v6909_v9, %v6064_v19  ;;  %v6030_v38 = vld [vmem:[%s7522_s28 + $0x80] sm:$0xf]  ;;  %v6039_v41 = vor.u32 %v6904_v37, %v6038_v49  ;;  %v6106_v19 = vld [vmem:[%s7522_s28 + $0x98] sm:$0xf]  ;;  %v6898_v37 = vld [vmem:[%s7522_s28 + $0xc] sm:$0xf] }
0x15ca   : > { %v3255_v50 = vmul.f32 %v7311_v30, %v3253_v7  ;;  %v3257_v51 = vmul.f32 %v7313_v40, %v3253_v7  ;;  %v6070_v30 = vld [vmem:[%s7522_s28 + $0x188] sm:$0xf]  ;;  %v6135_v40 = vor.u32 %v6957_v31, %v6132_v1  ;;  %v6903_v7 = vld [vmem:[%s7522_s28 + $0xbc] sm:$0xf0]  ;;  %v6122_v31 = vld [vmem:[%s7522_s28 + $0x118] sm:$0xf] }
0x15cb   : > { %v6071_v16 = vor.u32 %v6912_v11, %v6070_v30  ;;  %3507 = vmatpush.bf16.msrb.mxu1 %v6067_v10  ;;  %v6956_v1 = vld [vmem:[%s7522_s28 + $0x154] sm:$0xf0]  ;;  %v6906_v30 = vld [vmem:[%s7522_s28 + $0x10c] sm:$0xf] }
0x15cc   : > { %v3256_v52 = vmul.f32 %v3255_v50, %v3129_v28  ;;  %v3258_v54 = vmul.f32 %v3257_v51, %v3131_v29  ;;  %3745 = vmatpush.bf16.msrb.mxu2 %v6135_v40  ;;  %v6953_v28 = vld [vmem:[%s7522_s28 + $0x114] sm:$0xf]  ;;  %v6032_v50 = vld [vmem:[%s7522_s28 + $0xc0] sm:$0xf0]  ;;  %v6031_v51 = vor.u32 %v6903_v7, %v6030_v38  ;;  %v6123_v11 = vor.u32 %v6956_v1, %v6122_v31  ;;  %v6952_v10 = vld [vmem:[%s7522_s28 + $0xd4] sm:$0xf0] }
0x15cd   : > { %3521 = vmatpush.bf16.msrb.mxu3 %v6071_v16  ;;  %v6116_v29 = vld [vmem:[%s7522_s28 + $0x150] sm:$0xf0]  ;;  %v6955_v16 = vld [vmem:[%s7522_s28 + $0x14c] sm:$0xf0]  ;;  %v6059_v42 = vor.u32 %v6906_v30, %v6056_v12  ;;  %v6107_v25 = vor.u32 %v6952_v10, %v6106_v19  ;;  %v6948_v49 = vld [vmem:[%s7522_s28 + $0x54] sm:$0xf0] }
0x15ce   : > { %v3259_v24 = vadd.f32 %v3258_v54, %v3256_v52  ;;  %v6119_v63 = vor.u32 %v6953_v28, %v6116_v29  ;;  %v6035_v52 = vor.u32 %v6901_v43, %v6032_v50  ;;  %v6949_v54 = vld [vmem:[%s7522_s28 + $0x94] sm:$0xf]  ;;  %3495 = vmatpush.bf16.msrb.mxu0 %v6031_v51  ;;  %v6115_v9 = vor.u32 %v6955_v16, %v6114_v15  ;;  %v6024_v38 = vld [vmem:[%s7522_s28 + $0x48] sm:$0xf0]  ;;  %v6947_v7 = vld [vmem:[%s7522_s28 + $0x4c] sm:$0xf0] }
0x15cf   : > { %3508 = vmatpush.bf16.msrb.mxu1 %v6051_v26  ;;  %v6099_v29 = vor.u32 %v6951_v3, %v6098_v59  ;;  %v6027_v51 = vor.u32 %v6898_v37, %v6024_v38  ;;  %v6108_v31 = vld [vmem:[%s7522_s28 + $0xd8] sm:$0xf0]  ;;  %v6967_v1 = vld [vmem:[%s7534_s1 + $0x130] sm:$0xff]  ;;  %v6966_v16 = vld [vmem:[%s7534_s1 + $0x128] sm:$0xff] }
0x15d0   : > { %v3260_v61 = vpack.c.bf16 %v3259_v24, %v3231_v58  ;;  %3746 = vmatpush.bf16.msrb.mxu2 %v6119_v63  ;;  %v6100_v58 = vld [vmem:[%s7522_s28 + $0xd0] sm:$0xf0]  ;;  %v6090_v63 = vld [vmem:[%s7522_s28 + $0x18] sm:$0xf]  ;;  %v6946_v12 = vld [vmem:[%s7522_s28 + $0x1c] sm:$0xf] }
0x15d1   : > { %3522 = vmatpush.bf16.msrb.mxu3 %v6055_v34  ;;  %v6040_v34 = vld [vmem:[%s7522_s28 + $0xc8] sm:$0xf0]  ;;  %v6091_v50 = vor.u32 %v6948_v49, %v6090_v63  ;;  %v6983_v30 = vld [vmem:[%s7534_s1 + $0x1b0] sm:$0xff]  ;;  %v6092_v15 = vld [vmem:[%s7522_s28 + $0x58] sm:$0xf0] }
0x15d2   : > { %6011 = vmatmul.msk.bf16.vlgmr.msra.gmra.mxu3 %vm3101_vm2, %v3260_v61  ;;  %v6103_v61 = vor.u32 %v6949_v54, %v6100_v58  ;;  %v6043_v28 = vor.u32 %v6902_v14, %v6040_v34  ;;  %v6965_v19 = vld [vmem:[%s7534_s1 + $0x120] sm:$0xff]  ;;  %v6972_v10 = vld [vmem:[%s7534_s1 + $0x158] sm:$0xff]  ;;  %v6971_v14 = vld [vmem:[%s7534_s1 + $0x150] sm:$0xff] }
0x15d3   : > { %3509 = vmatpush.bf16.msrb.mxu1 %v6035_v52  ;;  %v6964_v34 = vld [vmem:[%s7534_s1 + $0x118] sm:$0xff]  ;;  %v6981_v3 = vld [vmem:[%s7534_s1 + $0x1a0] sm:$0xff]  ;;  %v6927_v63 = vld [vmem:[%s7534_s1 + $0x70] sm:$0xff] }
0x15d4   : > { %3747 = vmatpush.bf16.msrb.mxu2 %v6103_v61  ;;  %v6992_v59 = vld [vmem:[%s7534_s1 + $0x1f8] sm:$0xff]  ;;  %v6962_v49 = vld [vmem:[%s7534_s1 + $0x108] sm:$0xff]  ;;  %v6979_v38 = vld [vmem:[%s7534_s1 + $0x190] sm:$0xff] }
0x15d5   : > { %3523 = vmatpush.bf16.msrb.mxu3 %v6039_v41  ;;  %v6082_v41 = vld [vmem:[%s7522_s28 + $0x10] sm:$0xf]  ;;  %v6990_v37 = vld [vmem:[%s7534_s1 + $0x1e8] sm:$0xff] }
0x15d6   : > { %v6083_v52 = vor.u32 %v6947_v7, %v6082_v41  ;;  %v6926_v41 = vld [vmem:[%s7534_s1 + $0x68] sm:$0xff]  ;;  %v6961_v7 = vld [vmem:[%s7534_s1 + $0x100] sm:$0xff] }
0x1655   : > { %v3309_v13 = vpop.f32.mrf.mxu3 }
0x1656   : > { %v3310_v2 = vadd.f32 %v7298_v0, %v3309_v13  ;;  %v6900_v13 = vld [vmem:[%s7522_s28 + $0x44] sm:$0xf0] }
0x1658   : > { %v3314_v6 = vadd.f32 %v3310_v2, %v8539_v21  ;;  %v8588_v21 = vsel %vm3329_vm14, %v7317_v46, %v3328_v35  ;;  %v6014_v2 = vld [vmem:[%s7522_s28] sm:$0xf]  ;;  %v6084_v46 = vld [vmem:[%s7522_s28 + $0x50] sm:$0xf0]  ;;  %v6960_v35 = vld [vmem:[%s7522_s28 + $0x1d4] sm:$0xf0] }
0x1659   : > { %v6087_v36 = vor.u32 %v6945_v47, %v6084_v46 }
0x165a   : > { %v3318_v23 = vsel %vm3101_vm2, %v3314_v6, 0.0 }
0x165b   : > { %3319 = vadd.xlane.f32.xlu1 %v3318_v23  ;;  %3748 = vmatpush.bf16.msrb.mxu2 %v6087_v36  ;;  %v6140_v36 = vld [vmem:[%s7522_s28 + $0x1d8] sm:$0xf0] }
0x165d   : > { %v3311_v48 = vpop.f32.mrf.mxu3 }
0x165e   : > { %v3312_v56 = vadd.f32 %v7298_v0, %v3311_v48  ;;  %v6022_v0 = vld [vmem:[%s7522_s28 + $0x8] sm:$0xf]  ;;  %v6899_v48 = vld [vmem:[%s7522_s28 + $0x3c] sm:$0xf0] }
0x165f   : > { %v6023_v23 = vor.u32 %v6900_v13, %v6022_v0 }
0x1660   : > { %v3315_v8 = vadd.f32 %v3312_v56, %v8541_v20  ;;  %v6897_v56 = vld [vmem:[%s7522_s28 + $0x4] sm:$0xf] }
0x1661   : > { %3524 = vmatpush.bf16.msrb.mxu3 %v6023_v23  ;;  %v7299_v23 = vld [vmem:[%s9098_s9] ss:$0 sm:$0xff] }
0x1662   : > { %v3321_v53 = vsel %vm3101_vm2, %v3315_v8, 0.0 }
0x1663   : > { %3322 = vadd.xlane.f32.xlu1 %v3321_v53  ;;  %v6016_v53 = vld [vmem:[%s7522_s28 + $0x40] sm:$0xf0] }
0x1664   : > { %v6019_v32 = vor.u32 %v6897_v56, %v6016_v53 }
0x1666   : > { %3510 = vmatpush.bf16.msrb.mxu1 %v6019_v32  ;;  %v6958_v32 = vld [vmem:[%s7522_s28 + $0x19c] sm:$0xf] }
0x16ce   : > { %v3320_v39 = vpop.xlane.xlu1 %3319 }
0x16cf   : > { %v3331_v20 = vmul.f32 %v8588_v21, %v3320_v39  ;;  %v6910_v39 = vld [vmem:[%s7522_s28 + $0x18c] sm:$0xf] }
0x16d1   : > { %v8591_v44 = vsub.f32 %v3314_v6, %v3331_v20  ;;  %v6139_v20 = vor.u32 %v6960_v35, %v6138_v18 }
0x16d3   : > { %v3335_v57 = vmul.f32 %v8591_v44, %v8591_v44  ;;  %3759 = vmatpush.bf16.msra.mxu3 %v6139_v20  ;;  %v6954_v20 = vld [vmem:[%s7522_s28 + $0x11c] sm:$0xf] }
0x16d5   : > { %v3337_v4 = vsel %vm3101_vm2, %v3335_v57, 0.0  ;;  %v6072_v57 = vld [vmem:[%s7522_s28 + $0x1c8] sm:$0xf0] }
0x16d6   : > { %3338 = vadd.xlane.f32.xlu2 %v3337_v4  ;;  %v3323_v33 = vpop.xlane.xlu1 %3322  ;;  %v6130_v4 = vld [vmem:[%s7522_s28 + $0x190] sm:$0xf] }
0x16d7   : > { %v3332_v5 = vmul.f32 %v8588_v21, %v3323_v33  ;;  %v6959_v33 = vld [vmem:[%s7522_s28 + $0x1cc] sm:$0xf0]  ;;  %3760 = vmatpush.bf16.msra.mxu3 %v6123_v11  ;;  %v6974_v11 = vld [vmem:[%s7534_s1 + $0x168] sm:$0xff] }
0x16d9   : > { %v8597_v17 = vsub.f32 %v3315_v8, %v3332_v5  ;;  %v6015_v8 = vor.u32 %v6899_v48, %v6014_v2 }
0x16db   : > { %v3336_v55 = vmul.f32 %v8597_v17, %v8597_v17  ;;  %3496 = vmatpush.bf16.msrb.mxu0 %v6015_v8  ;;  %3761 = vmatpush.bf16.msra.mxu3 %v6107_v25  ;;  %v7300_v8 = vld [vmem:[%s9099_s16] ss:$0 sm:$0xff]  ;;  %v6928_v25 = vld [vmem:[%s7534_s1 + $0x78] sm:$0xff] }
0x16dd   : > { %v3340_v62 = vsel %vm3101_vm2, %v3336_v55, 0.0  ;;  %v6075_v55 = vor.u32 %v6910_v39, %v6072_v57  ;;  %v6143_v39 = vor.u32 %v6958_v32, %v6140_v36  ;;  %v6124_v57 = vld [vmem:[%s7522_s28 + $0x158] sm:$0xf0] }
0x16de   : > { %3341 = vadd.xlane.f32.xlu2 %v3340_v62  ;;  %v6131_v62 = vor.u32 %v6959_v33, %v6130_v4  ;;  %v6968_v4 = vld [vmem:[%s7534_s1 + $0x138] sm:$0xff]  ;;  %v6127_v33 = vor.u32 %v6954_v20, %v6124_v57  ;;  %v6933_v20 = vld [vmem:[%s7534_s1 + $0xa0] sm:$0xff]  ;;  %v6915_v57 = vld [vmem:[%s7534_s1 + $0x10] sm:$0xff] }
0x16df   : > { %3535 = vmatpush.bf16.msra.mxu0 %v6075_v55  ;;  %3762 = vmatpush.bf16.msra.mxu3 %v6091_v50  ;;  %v6984_v55 = vld [vmem:[%s7534_s1 + $0x1b8] sm:$0xff] }
0x16e0   : > { %3731 = vmatpush.bf16.msra.mxu1 %v6131_v62  ;;  %v6950_v62 = vld [vmem:[%s7522_s28 + $0x9c] sm:$0xf] }
0x16e1   : > { %v6920_v50 = vld [vmem:[%s7534_s1 + $0x38] sm:$0xff] }
0x16e3   : > { %3536 = vmatpush.bf16.msra.mxu0 %v6059_v42  ;;  %v6095_v42 = vor.u32 %v6946_v12, %v6092_v15  ;;  %v6913_v12 = vld [vmem:[%s7534_s1] sm:$0xff] }
0x16e4   : > { %3732 = vmatpush.bf16.msra.mxu1 %v6115_v9  ;;  %v6973_v9 = vld [vmem:[%s7534_s1 + $0x160] sm:$0xff] }
0x16e5   : > { %v6941_v15 = vld [vmem:[%s7534_s1 + $0xe0] sm:$0xff] }
0x16e7   : > { %3537 = vmatpush.bf16.msra.mxu0 %v6043_v28  ;;  %v6991_v28 = vld [vmem:[%s7534_s1 + $0x1f0] sm:$0xff] }
0x16e8   : > { %3733 = vmatpush.bf16.msra.mxu1 %v6099_v29  ;;  %v6980_v29 = vld [vmem:[%s7534_s1 + $0x198] sm:$0xff] }
0x16eb   : > { %3538 = vmatpush.bf16.msra.mxu0 %v6027_v51  ;;  %v6925_v51 = vld [vmem:[%s7534_s1 + $0x60] sm:$0xff] }
0x16ec   : > { %3734 = vmatpush.bf16.msra.mxu1 %v6083_v52  ;;  %v6988_v52 = vld [vmem:[%s7534_s1 + $0x1d8] sm:$0xff] }
0x1749   : > { %v3339_v22 = vpop.xlane.xlu2 %3338 }
0x174a   : > { %v3343_v24 = vmul.f32 %v3339_v22, %v8588_v21 }
0x174c   : > { %v8630_v6 = vadd.f32 1e-05, %v3343_v24 }
0x174e   : > { %7318 = vrsqrt.f32 %v8630_v6  ;;  %vm3353_vm0 = vweird.f32 %v8630_v6 }
0x1751   : > { %v3342_v5 = vpop.xlane.xlu2 %3341 }
0x1752   : > { %v3344_v40 = vmul.f32 %v3342_v5, %v8588_v21  ;;  %v6975_v5 = vld [vmem:[%s7534_s1 + $0x170] sm:$0xff] }
0x1754   : > { %v7319_v27 = vpop.eup %7318  ;;  %v3346_v45 = vadd.f32 1e-05, %v3344_v40  ;;  %v6111_v40 = vor.u32 %v6950_v62, %v6108_v31  ;;  %v6914_v62 = vld [vmem:[%s7534_s1 + $0x8] sm:$0xff] }
0x1755   : > { %v3348_v60 = vmul.f32 %v7319_v27, %v8630_v6  ;;  %vm3354_vm15 = vweird.f32 %v7319_v27  ;;  %v6942_v31 = vld [vmem:[%s7534_s1 + $0xe8] sm:$0xff] }
0x1756   : > { %7320 = vrsqrt.f32 %v3346_v45  ;;  %vm3355_vm1 = vmor %vm3353_vm0, %vm3354_vm15  ;;  %vm3363_vm4 = vweird.f32 %v3346_v45 }
0x1757   : > { %v3349_v26 = vmul.f32 %v7319_v27, %v3348_v60  ;;  %v6969_v60 = vld [vmem:[%s7534_s1 + $0x140] sm:$0xff] }
0x1759   : > { %v3350_v43 = vmul.f32 0.5, %v3349_v26  ;;  %v6963_v26 = vld [vmem:[%s7534_s1 + $0x110] sm:$0xff] }
0x175b   : > { %v3351_v22 = vsub.f32 1.5, %v3350_v43  ;;  %v6989_v43 = vld [vmem:[%s7534_s1 + $0x1e0] sm:$0xff] }
0x175c   : > { %v7321_v54 = vpop.eup %7320 }
0x175d   : > { %v3352_v58 = vmul.f32 %v7319_v27, %v3351_v22  ;;  %v3358_v24 = vmul.f32 %v7321_v54, %v3346_v45  ;;  %vm3364_vm3 = vweird.f32 %v7321_v54  ;;  %v6982_v45 = vld [vmem:[%s7534_s1 + $0x1a8] sm:$0xff] }
0x175e   : > { %vm3365_vm5 = vmor %vm3363_vm4, %vm3364_vm3  ;;  %v6978_v22 = vld [vmem:[%s7534_s1 + $0x188] sm:$0xff] }
0x175f   : > { %v3359_v61 = vmul.f32 %v7321_v54, %v3358_v24  ;;  %v3356_v0 = vsel %vm3355_vm1, %v7319_v27, %v3352_v58  ;;  %v6970_v27 = vld [vmem:[%s7534_s1 + $0x148] sm:$0xff]  ;;  %v6977_v58 = vld [vmem:[%s7534_s1 + $0x180] sm:$0xff]  ;;  %v6924_v24 = vld [vmem:[%s7534_s1 + $0x58] sm:$0xff] }
0x1760   : > { %v3367_v48 = vmul.f32 %v3356_v0, %v8591_v44  ;;  %v6987_v0 = vld [vmem:[%s7534_s1 + $0x1d0] sm:$0xff] }
0x1761   : > { %v3360_v13 = vmul.f32 0.5, %v3359_v61  ;;  %v6936_v61 = vld [vmem:[%s7534_s1 + $0xb8] sm:$0xff] }
0x1762   : > { %v3372_v53 = vmul.f32 %v7299_v23, %v3367_v48  ;;  %v6986_v48 = vld [vmem:[%s7534_s1 + $0x1c8] sm:$0xff] }
0x1763   : > { %v3361_v2 = vsub.f32 1.5, %v3360_v13  ;;  %v6918_v13 = vld [vmem:[%s7534_s1 + $0x28] sm:$0xff] }
0x1764   : > { %v8679_v44 = vadd.f32 %v7300_v8, %v3372_v53  ;;  %v6985_v53 = vld [vmem:[%s7534_s1 + $0x1c0] sm:$0xff] }
0x1765   : > { %v3362_v6 = vmul.f32 %v7321_v54, %v3361_v2  ;;  %v6923_v2 = vld [vmem:[%s7534_s1 + $0x50] sm:$0xff] }
0x1767   : > { %v3366_v56 = vsel %vm3365_vm5, %v7321_v54, %v3362_v6  ;;  %v6919_v54 = vld [vmem:[%s7534_s1 + $0x30] sm:$0xff]  ;;  %v6917_v6 = vld [vmem:[%s7534_s1 + $0x20] sm:$0xff] }
0x1768   : > { %v3368_v47 = vmul.f32 %v3366_v56, %v8597_v17  ;;  %v6976_v17 = vld [vmem:[%s7534_s1 + $0x178] sm:$0xff]  ;;  %v6922_v56 = vld [vmem:[%s7534_s1 + $0x48] sm:$0xff] }
0x1769   : > { %4065 = vmatpush.bf16.msra.mxu2 %v6976_v17  ;;  %v6943_v17 = vld [vmem:[%s7534_s1 + $0xf0] sm:$0xff] }
0x176a   : > { %v3373_v46 = vmul.f32 %v7299_v23, %v3368_v47  ;;  %v6935_v23 = vld [vmem:[%s7534_s1 + $0xb0] sm:$0xff]  ;;  %v6916_v47 = vld [vmem:[%s7534_s1 + $0x18] sm:$0xff] }
0x176c   : > { %v8681_v18 = vadd.f32 %v7300_v8, %v3373_v46  ;;  %v6934_v8 = vld [vmem:[%s7534_s1 + $0xa8] sm:$0xff]  ;;  %v6944_v46 = vld [vmem:[%s7534_s1 + $0xf8] sm:$0xff] }
0x176d   : > { %4066 = vmatpush.bf16.msra.mxu2 %v6975_v5  ;;  %v8769_v5 = vld [vmem:[%s7528_s30 + $0x4] sm:$0xf] }
0x176e   : > { %v8685_v35 = vpack.c.bf16 %v8681_v18, %v8679_v44 }
0x1770   : > { %6076 = vmatmul.msk.bf16.vlgmr.msrb.gmra.mxu0 %vm3101_vm2, %v8685_v35  ;;  %6077 = vmatmul.msk.bf16.vlgmr.msrb.gmra.mxu1 %vm3101_vm2, %v8685_v35 }
0x1771   : > { %6078 = vmatmul.msk.bf16.vlgmr.msrb.gmra.mxu3 %vm3101_vm2, %v8685_v35  ;;  %6145 = vmatmul.msk.bf16.vlgmr.msrb.gmra.mxu2 %vm3101_vm2, %v8685_v35 }
0x1772   : > { %3773 = vmatpush.bf16.msrb.mxu0 %v6143_v39  ;;  %4051 = vmatpush.bf16.msrb.mxu1 %v6968_v4  ;;  %v6921_v39 = vld [vmem:[%s7534_s1 + $0x40] sm:$0xff]  ;;  %v6932_v4 = vld [vmem:[%s7534_s1 + $0x98] sm:$0xff] }
0x1773   : > { %4079 = vmatpush.bf16.msrb.mxu3 %v6984_v55  ;;  %4067 = vmatpush.bf16.msra.mxu2 %v6974_v11  ;;  %v3640_v11 = vperm.slane %v8769_v5, 1 }
0x1776   : > { %3774 = vmatpush.bf16.msrb.mxu0 %v6127_v33  ;;  %4052 = vmatpush.bf16.msrb.mxu1 %v6967_v1 }
0x1777   : > { %4080 = vmatpush.bf16.msrb.mxu3 %v6983_v30  ;;  %4068 = vmatpush.bf16.msra.mxu2 %v6973_v9 }
0x177a   : > { %3775 = vmatpush.bf16.msrb.mxu0 %v6111_v40  ;;  %4053 = vmatpush.bf16.msrb.mxu1 %v6966_v16  ;;  %v6931_v40 = vld [vmem:[%s7534_s1 + $0x90] sm:$0xff]  ;;  %v6930_v16 = vld [vmem:[%s7534_s1 + $0x88] sm:$0xff] }
0x177b   : > { %4069 = vmatpush.bf16.msra.mxu2 %v6972_v10  ;;  %4081 = vmatpush.bf16.msrb.mxu3 %v6982_v45  ;;  %v6940_v10 = vld [vmem:[%s7534_s1 + $0xd8] sm:$0xff] }
0x177e   : > { %3776 = vmatpush.bf16.msrb.mxu0 %v6095_v42  ;;  %4054 = vmatpush.bf16.msrb.mxu1 %v6965_v19 }
0x177f   : > { %4070 = vmatpush.bf16.msra.mxu2 %v6971_v14  ;;  %4082 = vmatpush.bf16.msrb.mxu3 %v6981_v3  ;;  %v6929_v14 = vld [vmem:[%s7534_s1 + $0x80] sm:$0xff]  ;;  %v6939_v3 = vld [vmem:[%s7534_s1 + $0xd0] sm:$0xff] }
0x1780   : > { %6079 = vmatmul.msk.bf16.vlgmr.msra.gmra.mxu0 %vm3101_vm2, %v8685_v35  ;;  %6144 = vmatmul.msk.bf16.vlgmr.msra.gmra.mxu1 %vm3101_vm2, %v8685_v35 }
0x1781   : > { %6146 = vmatmul.msk.bf16.vlgmr.msra.gmra.mxu3 %vm3101_vm2, %v8685_v35 }
0x1782   : > { %4055 = vmatpush.bf16.msrb.mxu1 %v6964_v34  ;;  %4093 = vmatpush.bf16.msra.mxu0 %v6992_v59  ;;  %v7005_v59 = vld [vmem:[%s7522_s28 + $0x1a4] sm:$0xf] }
0x1783   : > { %4071 = vmatpush.bf16.msra.mxu2 %v6970_v27  ;;  %4083 = vmatpush.bf16.msrb.mxu3 %v6980_v29 }
0x1786   : > { %4056 = vmatpush.bf16.msrb.mxu1 %v6963_v26  ;;  %4094 = vmatpush.bf16.msra.mxu0 %v6991_v28  ;;  %v3639_v28 = vperm.slane %v8769_v5, 0 }
0x1787   : > { %4072 = vmatpush.bf16.msra.mxu2 %v6969_v60  ;;  %4084 = vmatpush.bf16.msrb.mxu3 %v6979_v38  ;;  %v6456_v60 = vld [vmem:[%s7522_s28 + $0x1e0] sm:$0xf0]  ;;  %v6938_v38 = vld [vmem:[%s7534_s1 + $0xc8] sm:$0xff] }
0x1788   : > { %v6459_v29 = vor.u32 %v7005_v59, %v6456_v60 }
0x178a   : > { %4057 = vmatpush.bf16.msrb.mxu1 %v6962_v49  ;;  %4095 = vmatpush.bf16.msra.mxu0 %v6990_v37  ;;  %v7001_v49 = vld [vmem:[%s7522_s28 + $0x124] sm:$0xf] }
0x178b   : > { %4313 = vmatpush.bf16.msrb.mxu2 %v6928_v25  ;;  %4085 = vmatpush.bf16.msrb.mxu3 %v6978_v22  ;;  %v6440_v37 = vld [vmem:[%s7522_s28 + $0x160] sm:$0xf0] }
0x178e   : > { %4058 = vmatpush.bf16.msrb.mxu1 %v6961_v7  ;;  %4096 = vmatpush.bf16.msra.mxu0 %v6989_v43 }
0x178f   : > { %4314 = vmatpush.bf16.msrb.mxu2 %v6927_v63  ;;  %4086 = vmatpush.bf16.msrb.mxu3 %v6977_v58 }
0x1790   : > { %6147 = vmatmul.msk.bf16.vlgmr.msrb.gmra.mxu0 %vm3101_vm2, %v8685_v35 }
0x1792   : > { %4299 = vmatpush.bf16.msra.mxu1 %v6920_v50  ;;  %4097 = vmatpush.bf16.msra.mxu0 %v6988_v52  ;;  %v6443_v50 = vor.u32 %v7001_v49, %v6440_v37  ;;  %v6997_v52 = vld [vmem:[%s7522_s28 + $0xa4] sm:$0xf] }
0x1793   : > { %4315 = vmatpush.bf16.msrb.mxu2 %v6926_v41  ;;  %4327 = vmatpush.bf16.msra.mxu3 %v6936_v61  ;;  %v8794_v41 = vld [vmem:[%s7528_s30] sm:$0xf] }
0x1794   : > { %v7007_v61 = vld [vmem:[%s7522_s28 + $0x1dc] sm:$0xf0] }
0x1796   : > { %4300 = vmatpush.bf16.msra.mxu1 %v6919_v54  ;;  %4098 = vmatpush.bf16.msra.mxu0 %v6987_v0  ;;  %v6424_v54 = vld [vmem:[%s7522_s28 + $0xe0] sm:$0xf0] }
0x1797   : > { %4316 = vmatpush.bf16.msrb.mxu2 %v6925_v51  ;;  %4328 = vmatpush.bf16.msra.mxu3 %v6935_v23  ;;  %v6937_v0 = vld [vmem:[%s7534_s1 + $0xc0] sm:$0xff] }
0x179a   : > { %4301 = vmatpush.bf16.msra.mxu1 %v6918_v13  ;;  %4099 = vmatpush.bf16.msra.mxu0 %v6986_v48  ;;  %v3399_v13 = vperm.slane %v8794_v41, 1 }
0x179b   : > { %4317 = vmatpush.bf16.msrb.mxu2 %v6924_v24  ;;  %4329 = vmatpush.bf16.msra.mxu3 %v6934_v8  ;;  %v6454_v24 = vld [vmem:[%s7522_s28 + $0x1a0] sm:$0xf] }
0x179c   : > { %v6455_v8 = vor.u32 %v7007_v61, %v6454_v24 }
0x179e   : > { %4302 = vmatpush.bf16.msra.mxu1 %v6917_v6  ;;  %4100 = vmatpush.bf16.msra.mxu0 %v6985_v53  ;;  %v6427_v6 = vor.u32 %v6997_v52, %v6424_v54  ;;  %v6993_v53 = vld [vmem:[%s7522_s28 + $0x24] sm:$0xf]  ;;  %v6464_v52 = vld [vmem:[%s7522_s28 + $0x1e8] sm:$0xf0]  ;;  %v3400_v54 = vperm.slane %v8794_v41, 2 }
0x179f   : > { %4318 = vmatpush.bf16.msrb.mxu2 %v6923_v2  ;;  %4330 = vmatpush.bf16.msra.mxu3 %v6933_v20  ;;  %v3641_v2 = vperm.slane %v8769_v5, 2  ;;  %v7003_v20 = vld [vmem:[%s7522_s28 + $0x15c] sm:$0xf0] }
0x17a2   : > { %4303 = vmatpush.bf16.msra.mxu1 %v6916_v47  ;;  %4341 = vmatpush.bf16.msrb.mxu0 %v6944_v46  ;;  %v6408_v47 = vld [vmem:[%s7522_s28 + $0x60] sm:$0xf0] }
0x17a3   : > { %4319 = vmatpush.bf16.msrb.mxu2 %v6922_v56  ;;  %4331 = vmatpush.bf16.msra.mxu3 %v6932_v4 }
0x17a6   : > { %4304 = vmatpush.bf16.msra.mxu1 %v6915_v57  ;;  %4342 = vmatpush.bf16.msrb.mxu0 %v6943_v17 }
0x17a7   : > { %4320 = vmatpush.bf16.msrb.mxu2 %v6921_v39  ;;  %4332 = vmatpush.bf16.msra.mxu3 %v6931_v40  ;;  %v6438_v39 = vld [vmem:[%s7522_s28 + $0x120] sm:$0xf] }
0x17a8   : > { %v6439_v40 = vor.u32 %v7003_v20, %v6438_v39  ;;  %v6998_v39 = vld [vmem:[%s7522_s28 + $0xac] sm:$0xf] }
0x17a9   : > { %v6432_v20 = vld [vmem:[%s7522_s28 + $0xe8] sm:$0xf0] }
0x17aa   : > { %4305 = vmatpush.bf16.msra.mxu1 %v6914_v62  ;;  %4343 = vmatpush.bf16.msrb.mxu0 %v6942_v31 }
0x17ab   : > { %4333 = vmatpush.bf16.msra.mxu3 %v6930_v16  ;;  %v6999_v16 = vld [vmem:[%s7522_s28 + $0xdc] sm:$0xf0] }
0x17ae   : > { %4306 = vmatpush.bf16.msra.mxu1 %v6913_v12  ;;  %4344 = vmatpush.bf16.msrb.mxu0 %v6941_v15  ;;  %v7008_v12 = vld [vmem:[%s7522_s28 + $0x1e4] sm:$0xf0]  ;;  %v6422_v15 = vld [vmem:[%s7522_s28 + $0xa0] sm:$0xf] }
0x17af   : > { %4334 = vmatpush.bf16.msra.mxu3 %v6929_v14  ;;  %v3642_v14 = vperm.slane %v8769_v5, 3 }
0x17b2   : > { %4345 = vmatpush.bf16.msrb.mxu0 %v6940_v10 }
0x17b6   : > { %4346 = vmatpush.bf16.msrb.mxu0 %v6939_v3  ;;  %v6423_v3 = vor.u32 %v6999_v16, %v6422_v15  ;;  %v7023_v15 = vld [vmem:[%s7534_s1 + $0x270] sm:$0xff] }
0x17b7   : > { %v7015_v16 = vld [vmem:[%s7534_s1 + $0x230] sm:$0xff] }
0x17ba   : > { %4347 = vmatpush.bf16.msrb.mxu0 %v6938_v38 }
0x17be   : > { %4348 = vmatpush.bf16.msrb.mxu0 %v6937_v0 }
0x17ed   : > { %v8757_v32 = vpop.f32.mrf.mxu0  ;;  %v8759_v36 = vpop.f32.mrf.mxu1 }
0x17ee   : > { %v3513_v57 = vadd.f32 %v8759_v36, %v3399_v13  ;;  %v3398_v36 = vperm.slane %v8794_v41, 0 }
0x17f0   : > { %v3499_v5 = vadd.f32 %v8757_v32, %v3398_v36 }
0x17f4   : > { %v8766_v33 = vpop.f32.mrf.mxu3  ;;  %v3750_v55 = vpop.f32.mrf.mxu2 }
0x17f5   : > { %v8773_v1 = vpop.f32.mrf.mxu0  ;;  %v3514_v30 = vpop.f32.mrf.mxu1  ;;  %v3751_v42 = vadd.f32 %v3750_v55, %v3640_v11  ;;  %v6411_v55 = vor.u32 %v6993_v53, %v6408_v47  ;;  %v3527_v53 = vadd.f32 %v8766_v33, %v3400_v54 }
0x17f6   : > { %v3515_v56 = vadd.f32 %v3514_v30, %v3399_v13 }
0x17f7   : > { %v3784_v25 = vmax.f32 %v3751_v42, 0.0  ;;  %v3546_v42 = vmax.f32 %v3513_v57, 0.0  ;;  %v3547_v57 = vmax.f32 %v3527_v53, 0.0 }
0x17f8   : > { %v3550_v62 = vmax.f32 %v3515_v56, 0.0  ;;  %v7002_v56 = vld [vmem:[%s7522_s28 + $0x12c] sm:$0xf] }
0x17fa   : > { %v3554_v59 = vpack.c.bf16 %v3550_v62, %v3546_v42  ;;  %v6994_v62 = vld [vmem:[%s7522_s28 + $0x2c] sm:$0xf] }
0x17fb   : > { %v7014_v42 = vld [vmem:[%s7534_s1 + $0x228] sm:$0xff] }
0x17fc   : > { %v8780_v9 = vpop.f32.mrf.mxu3  ;;  %v3752_v19 = vpop.f32.mrf.mxu2 }
0x17fd   : > { %v3753_v27 = vadd.f32 %v3752_v19, %v3640_v11  ;;  %v8784_v45 = vpop.f32.mrf.mxu0  ;;  %v3736_v34 = vpop.f32.mrf.mxu1  ;;  %v6462_v11 = vld [vmem:[%s7522_s28 + $0x1a8] sm:$0xf]  ;;  %v3529_v61 = vadd.f32 %v8780_v9, %v3400_v54  ;;  %v6652_v54 = vld [vmem:[%s7522_s28 + $0x1f0] sm:$0xf0] }
0x17fe   : > { %v3737_v7 = vadd.f32 %v3736_v34, %v3639_v28  ;;  %v3501_v34 = vadd.f32 %v8773_v1, %v3398_v36  ;;  %v7022_v36 = vld [vmem:[%s7534_s1 + $0x268] sm:$0xff] }
0x17ff   : > { %v3788_v26 = vmax.f32 %v3753_v27, 0.0  ;;  %v6463_v27 = vor.u32 %v7008_v12, %v6462_v11  ;;  %v3551_v47 = vmax.f32 %v3529_v61, 0.0  ;;  %v7016_v12 = vld [vmem:[%s7534_s1 + $0x238] sm:$0xff] }
0x1800   : > { %v3783_v23 = vmax.f32 %v3737_v7, 0.0  ;;  %v3549_v1 = vmax.f32 %v3501_v34, 0.0  ;;  %v6430_v7 = vld [vmem:[%s7522_s28 + $0xa8] sm:$0xf] }
0x1801   : > { %v3792_v63 = vpack.c.bf16 %v3788_v26, %v3784_v25  ;;  %v6446_v25 = vld [vmem:[%s7522_s28 + $0x128] sm:$0xf] }
0x1802   : > { %v7004_v26 = vld [vmem:[%s7522_s28 + $0x164] sm:$0xf0] }
0x1803   : > { %4073 = vmatmul.bf16.vlgmr.msra.gmra.mxu2 %v3792_v63  ;;  %v6447_v49 = vor.u32 %v7004_v26, %v6446_v25  ;;  %v7040_v26 = vld [vmem:[%s7534_s1 + $0x2f8] sm:$0xff] }
0x1804   : > { %v3764_v43 = vpop.f32.mrf.mxu3  ;;  %4479 = vmatpush.bf16.msra.mxu2 %v6459_v29  ;;  %v6995_v29 = vld [vmem:[%s7522_s28 + $0x5c] sm:$0xf0] }
0x1805   : > { %v8796_v22 = vpop.f32.mrf.mxu0  ;;  %v3738_v51 = vpop.f32.mrf.mxu1  ;;  %v3765_v17 = vadd.f32 %v3764_v43, %v3641_v2 }
0x1806   : > { %v3739_v58 = vadd.f32 %v3738_v51, %v3639_v28  ;;  %v6406_v28 = vld [vmem:[%s7522_s28 + $0x20] sm:$0xf]  ;;  %v7006_v51 = vld [vmem:[%s7522_s28 + $0x1ac] sm:$0xf] }
0x1807   : > { %v3785_v19 = vmax.f32 %v3765_v17, 0.0  ;;  %v6407_v38 = vor.u32 %v6995_v29, %v6406_v28  ;;  %v6467_v13 = vor.u32 %v7006_v51, %v6464_v52  ;;  %v3401_v17 = vperm.slane %v8794_v41, 3  ;;  %v7011_v29 = vld [vmem:[%s7534_s1 + $0x210] sm:$0xff] }
0x1808   : > { %v3787_v48 = vmax.f32 %v3739_v58, 0.0  ;;  %4480 = vmatpush.bf16.msra.mxu2 %v6443_v50  ;;  %v7000_v50 = vld [vmem:[%s7522_s28 + $0xe4] sm:$0xf0]  ;;  %v3545_v58 = vmax.f32 %v3499_v5, 0.0  ;;  %v7053_v52 = vld [vmem:[%s7522_s28 + $0x1b4] sm:$0xf] }
0x1809   : > { %v6431_v0 = vor.u32 %v7000_v50, %v6430_v7  ;;  %v3543_v33 = vadd.f32 %v8796_v22, %v3401_v17  ;;  %v7018_v5 = vld [vmem:[%s7534_s1 + $0x248] sm:$0xff]  ;;  %v7029_v7 = vld [vmem:[%s7534_s1 + $0x2a0] sm:$0xff]  ;;  %v6655_v61 = vor.u32 %v7053_v52, %v6652_v54  ;;  %v6660_v54 = vld [vmem:[%s7522_s28 + $0x1f8] sm:$0xf0] }
0x180a   : > { %v3791_v46 = vpack.c.bf16 %v3787_v48, %v3783_v23  ;;  %v3553_v23 = vpack.c.bf16 %v3549_v1, %v3545_v58  ;;  %v7038_v50 = vld [vmem:[%s7534_s1 + $0x2e8] sm:$0xff]  ;;  %v7009_v58 = vld [vmem:[%s7534_s1 + $0x200] sm:$0xff] }
0x180c   : > { %v3766_v4 = vpop.f32.mrf.mxu3  ;;  %4059 = vmatmul.bf16.vlgmr.msrb.gmra.mxu1 %v3791_v46  ;;  %4481 = vmatpush.bf16.msra.mxu2 %v6427_v6  ;;  %v6996_v6 = vld [vmem:[%s7522_s28 + $0x64] sm:$0xf0] }
0x180d   : > { %v3767_v31 = vadd.f32 %v3766_v4, %v3641_v2  ;;  %v3778_v30 = vpop.f32.mrf.mxu0  ;;  %4465 = vmatpush.bf16.msrb.mxu1 %v6455_v8  ;;  %v6414_v2 = vld [vmem:[%s7522_s28 + $0x28] sm:$0xf]  ;;  %v6448_v8 = vld [vmem:[%s7522_s28 + $0x168] sm:$0xf0]  ;;  %v3555_v4 = vpack.c.bf16 %v3551_v47, %v3547_v57  ;;  %v6636_v47 = vld [vmem:[%s7522_s28 + $0x170] sm:$0xf0] }
0x180e   : > { %v3779_v63 = vadd.f32 %v3778_v30, %v3642_v14  ;;  %v6415_v9 = vor.u32 %v6996_v6, %v6414_v2  ;;  %v6451_v46 = vor.u32 %v7002_v56, %v6448_v8  ;;  %v3541_v30 = vadd.f32 %v8784_v45, %v3401_v17  ;;  %v7024_v45 = vld [vmem:[%s7534_s1 + $0x278] sm:$0xff]  ;;  %v7049_v6 = vld [vmem:[%s7522_s28 + $0x134] sm:$0xf]  ;;  %v6634_v57 = vld [vmem:[%s7522_s28 + $0x130] sm:$0xf] }
0x180f   : > { %v3789_v10 = vmax.f32 %v3767_v31, 0.0  ;;  %v6416_v31 = vld [vmem:[%s7522_s28 + $0x68] sm:$0xf0]  ;;  %v7027_v56 = vld [vmem:[%s7534_s1 + $0x290] sm:$0xff]  ;;  %v7036_v8 = vld [vmem:[%s7534_s1 + $0x2d8] sm:$0xff] }
0x1810   : > { %4482 = vmatpush.bf16.msra.mxu2 %v6411_v55  ;;  %v3786_v32 = vmax.f32 %v3779_v63, 0.0  ;;  %v6435_v55 = vor.u32 %v6998_v39, %v6432_v20  ;;  %v6419_v41 = vor.u32 %v6994_v62, %v6416_v31  ;;  %v3548_v11 = vmax.f32 %v3541_v30, 0.0  ;;  %v7030_v63 = vld [vmem:[%s7534_s1 + $0x2a8] sm:$0xff]  ;;  %v7051_v17 = vld [vmem:[%s7522_s28 + $0x16c] sm:$0xf0] }
0x1811   : > { %v3793_v60 = vpack.c.bf16 %v3789_v10, %v3785_v19  ;;  %4466 = vmatpush.bf16.msrb.mxu1 %v6439_v40  ;;  %v3552_v40 = vmax.f32 %v3543_v33, 0.0  ;;  %v7021_v19 = vld [vmem:[%s7534_s1 + $0x260] sm:$0xff]  ;;  %v6639_v39 = vor.u32 %v7049_v6, %v6636_v47  ;;  %v7026_v33 = vld [vmem:[%s7534_s1 + $0x288] sm:$0xff]  ;;  %v7035_v62 = vld [vmem:[%s7534_s1 + $0x2d0] sm:$0xff]  ;;  %v6635_v31 = vor.u32 %v7051_v17, %v6634_v57 }
0x1812   : > { %v7013_v10 = vld [vmem:[%s7534_s1 + $0x220] sm:$0xff]  ;;  %v6620_v30 = vld [vmem:[%s7522_s28 + $0xf0] sm:$0xf0] }
0x1813   : > { %4087 = vmatmul.bf16.vlgmr.msrb.gmra.mxu3 %v3793_v60  ;;  %4321 = vmatmul.bf16.vlgmr.msrb.gmra.mxu2 %v3554_v59  ;;  %v3556_v22 = vpack.c.bf16 %v3552_v40, %v3548_v11  ;;  %v7012_v59 = vld [vmem:[%s7534_s1 + $0x218] sm:$0xff]  ;;  %v7019_v60 = vld [vmem:[%s7534_s1 + $0x250] sm:$0xff] }
0x1814   : > { %4493 = vmatpush.bf16.msrb.mxu3 %v6463_v27  ;;  %4799 = vmatpush.bf16.msrb.mxu2 %v7024_v45  ;;  %v7032_v27 = vld [vmem:[%s7534_s1 + $0x2b8] sm:$0xff] }
0x1815   : > { %v3780_v37 = vpop.f32.mrf.mxu0  ;;  %4467 = vmatpush.bf16.msrb.mxu1 %v6423_v3  ;;  %v7031_v3 = vld [vmem:[%s7534_s1 + $0x2b0] sm:$0xff] }
0x1816   : > { %v3781_v43 = vadd.f32 %v3780_v37, %v3642_v14  ;;  %v7020_v14 = vld [vmem:[%s7534_s1 + $0x258] sm:$0xff]  ;;  %v7010_v37 = vld [vmem:[%s7534_s1 + $0x208] sm:$0xff] }
0x1818   : > { %v3790_v24 = vmax.f32 %v3781_v43, 0.0  ;;  %4494 = vmatpush.bf16.msrb.mxu3 %v6447_v49  ;;  %4800 = vmatpush.bf16.msrb.mxu2 %v7023_v15  ;;  %v7039_v49 = vld [vmem:[%s7534_s1 + $0x2f0] sm:$0xff] }
0x1819   : > { %4468 = vmatpush.bf16.msrb.mxu1 %v6407_v38  ;;  %v7017_v38 = vld [vmem:[%s7534_s1 + $0x240] sm:$0xff]  ;;  %v7047_v15 = vld [vmem:[%s7522_s28 + $0xec] sm:$0xf0] }
0x181a   : > { %v3794_v48 = vpack.c.bf16 %v3790_v24, %v3786_v32  ;;  %v7028_v32 = vld [vmem:[%s7534_s1 + $0x298] sm:$0xff]  ;;  %v7037_v24 = vld [vmem:[%s7534_s1 + $0x2e0] sm:$0xff] }
0x181c   : > { %4101 = vmatmul.bf16.vlgmr.msra.gmra.mxu0 %v3794_v48  ;;  %4307 = vmatmul.bf16.vlgmr.msra.gmra.mxu1 %v3553_v23  ;;  %v6650_v23 = vld [vmem:[%s7522_s28 + $0x1b0] sm:$0xf] }
0x181d   : > { %4495 = vmatpush.bf16.msrb.mxu3 %v6431_v0  ;;  %4507 = vmatpush.bf16.msra.mxu0 %v6467_v13  ;;  %v7055_v48 = vld [vmem:[%s7522_s28 + $0x1ec] sm:$0xf0] }
0x181e   : > { %4785 = vmatpush.bf16.msra.mxu1 %v7016_v12  ;;  %4801 = vmatpush.bf16.msrb.mxu2 %v7022_v36  ;;  %v6651_v53 = vor.u32 %v7055_v48, %v6650_v23  ;;  %v6618_v12 = vld [vmem:[%s7522_s28 + $0xb0] sm:$0xf]  ;;  %v7025_v36 = vld [vmem:[%s7534_s1 + $0x280] sm:$0xff]  ;;  %v6644_v23 = vld [vmem:[%s7522_s28 + $0x178] sm:$0xf0] }
0x1821   : > { %4496 = vmatpush.bf16.msrb.mxu3 %v6415_v9  ;;  %4508 = vmatpush.bf16.msra.mxu0 %v6451_v46 }
0x1822   : > { %4786 = vmatpush.bf16.msra.mxu1 %v7015_v16  ;;  %4802 = vmatpush.bf16.msrb.mxu2 %v7021_v19  ;;  %v7041_v16 = vld [vmem:[%s7522_s28 + $0x34] sm:$0xf]  ;;  %v6619_v19 = vor.u32 %v7047_v15, %v6618_v12  ;;  %v7042_v12 = vld [vmem:[%s7522_s28 + $0x3c] sm:$0xf] }
0x1823   : > { %4335 = vmatmul.bf16.vlgmr.msra.gmra.mxu3 %v3555_v4  ;;  %6469 = vmatmul.msk.bf16.vlgmr.msra.gmra.mxu2 %vm3101_vm2, %v8685_v35  ;;  %v7045_v4 = vld [vmem:[%s7522_s28 + $0xb4] sm:$0xf]  ;;  %v6612_v15 = vld [vmem:[%s7522_s28 + $0x78] sm:$0xf0] }
0x1825   : > { %4509 = vmatpush.bf16.msra.mxu0 %v6435_v55  ;;  %4813 = vmatpush.bf16.msra.mxu3 %v7032_v27 }
0x1826   : > { %4787 = vmatpush.bf16.msra.mxu1 %v7014_v42  ;;  %4803 = vmatpush.bf16.msrb.mxu2 %v7020_v14  ;;  %v7034_v42 = vld [vmem:[%s7534_s1 + $0x2c8] sm:$0xff] }
0x1829   : > { %4510 = vmatpush.bf16.msra.mxu0 %v6419_v41  ;;  %4814 = vmatpush.bf16.msra.mxu3 %v7031_v3  ;;  %v6623_v41 = vor.u32 %v7045_v4, %v6620_v30  ;;  %v7056_v3 = vld [vmem:[%s7522_s28 + $0x1f4] sm:$0xf0] }
0x182a   : > { %4788 = vmatpush.bf16.msra.mxu1 %v7013_v10  ;;  %4804 = vmatpush.bf16.msrb.mxu2 %v7019_v60  ;;  %v6604_v10 = vld [vmem:[%s7522_s28 + $0x70] sm:$0xf0]  ;;  %v6658_v60 = vld [vmem:[%s7522_s28 + $0x1b8] sm:$0xf] }
0x182c   : > { %4349 = vmatmul.bf16.vlgmr.msrb.gmra.mxu0 %v3556_v22  ;;  %6468 = vmatmul.msk.bf16.vlgmr.msrb.gmra.mxu1 %vm3101_vm2, %v8685_v35 }
0x182d   : > { %4827 = vmatpush.bf16.msrb.mxu0 %v7040_v26  ;;  %4815 = vmatpush.bf16.msra.mxu3 %v7030_v63 }
0x182e   : > { %4789 = vmatpush.bf16.msra.mxu1 %v7012_v59  ;;  %4805 = vmatpush.bf16.msrb.mxu2 %v7018_v5  ;;  %v7043_v5 = vld [vmem:[%s7522_s28 + $0x6c] sm:$0xf0] }
0x1831   : > { %4828 = vmatpush.bf16.msrb.mxu0 %v7039_v49  ;;  %4816 = vmatpush.bf16.msra.mxu3 %v7029_v7 }
0x1832   : > { %4790 = vmatpush.bf16.msra.mxu1 %v7011_v29  ;;  %4806 = vmatpush.bf16.msrb.mxu2 %v7017_v38  ;;  %v7033_v29 = vld [vmem:[%s7534_s1 + $0x2c0] sm:$0xff] }
0x1833   : > { %6470 = vmatmul.msk.bf16.vlgmr.msrb.gmra.mxu3 %vm3101_vm2, %v8685_v35 }
0x1835   : > { %4829 = vmatpush.bf16.msrb.mxu0 %v7038_v50  ;;  %4817 = vmatpush.bf16.msra.mxu3 %v7028_v32  ;;  %v7052_v50 = vld [vmem:[%s7522_s28 + $0x174] sm:$0xf0] }
0x1836   : > { %4791 = vmatpush.bf16.msra.mxu1 %v7010_v37  ;;  %4967 = vmatpush.bf16.msra.mxu2 %v6655_v61  ;;  %v7048_v32 = vld [vmem:[%s7522_s28 + $0xf4] sm:$0xf0] }
0x1839   : > { %4830 = vmatpush.bf16.msrb.mxu0 %v7037_v24  ;;  %4818 = vmatpush.bf16.msra.mxu3 %v7027_v56 }
0x183a   : > { %4792 = vmatpush.bf16.msra.mxu1 %v7009_v58  ;;  %4968 = vmatpush.bf16.msra.mxu2 %v6639_v39  ;;  %v6626_v58 = vld [vmem:[%s7522_s28 + $0xb8] sm:$0xf] }
0x183b   : > { %v6627_v6 = vor.u32 %v7048_v32, %v6626_v58  ;;  %v7060_v58 = vld [vmem:[%s7534_s1 + $0x318] sm:$0xff] }
0x183c   : > { %6471 = vmatmul.msk.bf16.vlgmr.msra.gmra.mxu0 %vm3101_vm2, %v8685_v35  ;;  %v7088_v32 = vld [vmem:[%s7534_s1 + $0x3f8] sm:$0xff] }
0x183d   : > { %4831 = vmatpush.bf16.msrb.mxu0 %v7036_v8  ;;  %4819 = vmatpush.bf16.msra.mxu3 %v7026_v33  ;;  %v6610_v8 = vld [vmem:[%s7522_s28 + $0x38] sm:$0xf] }
0x183e   : > { %4953 = vmatpush.bf16.msrb.mxu1 %v6651_v53  ;;  %4969 = vmatpush.bf16.msra.mxu2 %v6623_v41  ;;  %v7044_v53 = vld [vmem:[%s7522_s28 + $0x74] sm:$0xf0] }
0x183f   : > { %v6611_v17 = vor.u32 %v7044_v53, %v6610_v8  ;;  %v7066_v8 = vld [vmem:[%s7534_s1 + $0x348] sm:$0xff] }
0x1840   : > { %v7078_v53 = vld [vmem:[%s7534_s1 + $0x3a8] sm:$0xff] }
0x1841   : > { %4832 = vmatpush.bf16.msrb.mxu0 %v7035_v62  ;;  %4820 = vmatpush.bf16.msra.mxu3 %v7025_v36 }
0x1842   : > { %4954 = vmatpush.bf16.msrb.mxu1 %v6635_v31 }
0x1845   : > { %4833 = vmatpush.bf16.msrb.mxu0 %v7034_v42  ;;  %v6615_v42 = vor.u32 %v7042_v12, %v6612_v15  ;;  %v7073_v12 = vld [vmem:[%s7534_s1 + $0x380] sm:$0xff] }
0x1846   : > { %4955 = vmatpush.bf16.msrb.mxu1 %v6619_v19 }
0x1849   : > { %4834 = vmatpush.bf16.msrb.mxu0 %v7033_v29 }
0x1886   : > { %v4074_v34 = vpop.f32.mrf.mxu2 }
0x1889   : > { %v4060_v25 = vpop.f32.mrf.mxu1 }
0x188a   : > { %v4075_v28 = vadd.f32 %v4074_v34, %v4060_v25  ;;  %v6607_v34 = vor.u32 %v7041_v16, %v6604_v10  ;;  %v6602_v25 = vld [vmem:[%s7522_s28 + $0x30] sm:$0xf] }
0x188b   : > { %v6603_v63 = vor.u32 %v7043_v5, %v6602_v25 }
0x188c   : > { %4970 = vmatpush.bf16.msra.mxu2 %v6607_v34 }
0x188d   : > { %4956 = vmatpush.bf16.msrb.mxu1 %v6603_v63 }
0x188e   : > { %v4076_v1 = vpop.f32.mrf.mxu2 }
0x1891   : > { %v4062_v43 = vpop.f32.mrf.mxu1 }
0x1892   : > { %v4077_v51 = vadd.f32 %v4076_v1, %v4062_v43  ;;  %v8899_v1 = vld [vmem:[%s7528_s30 + $0x8] sm:$0xf]  ;;  %v6642_v43 = vld [vmem:[%s7522_s28 + $0x138] sm:$0xf] }
0x1893   : > { %v6643_v52 = vor.u32 %v7052_v50, %v6642_v43  ;;  %v4374_v24 = vperm.slane %v8899_v1, 1  ;;  %v4373_v47 = vperm.slane %v8899_v1, 0  ;;  %v4376_v34 = vperm.slane %v8899_v1, 3  ;;  %v7063_v43 = vld [vmem:[%s7534_s1 + $0x330] sm:$0xff] }
0x1894   : > { %v7071_v50 = vld [vmem:[%s7534_s1 + $0x370] sm:$0xff] }
0x1896   : > { %v4088_v0 = vpop.f32.mrf.mxu3  ;;  %v4322_v13 = vpop.f32.mrf.mxu2 }
0x1897   : > { %v4089_v2 = vadd.f32 %v4088_v0, %v4075_v28  ;;  %v6659_v28 = vor.u32 %v7056_v3, %v6658_v60 }
0x1899   : > { %v4102_v9 = vpop.f32.mrf.mxu0  ;;  %v4308_v46 = vpop.f32.mrf.mxu1  ;;  %4981 = vmatpush.bf16.msrb.mxu3 %v6659_v28 }
0x189a   : > { %v4103_v20 = vadd.f32 %v4102_v9, %v4089_v2  ;;  %v7050_v2 = vld [vmem:[%s7522_s28 + $0x13c] sm:$0xf] }
0x189b   : > { %v6647_v56 = vor.u32 %v7050_v2, %v6644_v23  ;;  %v7046_v9 = vld [vmem:[%s7522_s28 + $0xbc] sm:$0xf]  ;;  %v7067_v2 = vld [vmem:[%s7534_s1 + $0x350] sm:$0xff] }
0x189c   : > { %v4309_v55 = vadd.f32 %v4308_v46, %v4103_v20  ;;  %v6628_v46 = vld [vmem:[%s7522_s28 + $0xf8] sm:$0xf0]  ;;  %v7079_v23 = vld [vmem:[%s7534_s1 + $0x3b0] sm:$0xff] }
0x189d   : > { %4982 = vmatpush.bf16.msrb.mxu3 %v6643_v52  ;;  %v6631_v33 = vor.u32 %v7046_v9, %v6628_v46  ;;  %v7070_v52 = vld [vmem:[%s7534_s1 + $0x368] sm:$0xff]  ;;  %v7085_v9 = vld [vmem:[%s7534_s1 + $0x3e0] sm:$0xff] }
0x189e   : > { %v4090_v40 = vpop.f32.mrf.mxu3  ;;  %v4324_v11 = vpop.f32.mrf.mxu2  ;;  %v4323_v22 = vadd.f32 %v4322_v13, %v4309_v55  ;;  %v7065_v46 = vld [vmem:[%s7534_s1 + $0x340] sm:$0xff] }
0x189f   : > { %v4091_v45 = vadd.f32 %v4090_v40, %v4077_v51  ;;  %v7054_v51 = vld [vmem:[%s7522_s28 + $0x1bc] sm:$0xf] }
0x18a0   : > { %v6663_v13 = vor.u32 %v7054_v51, %v6660_v54  ;;  %v7062_v51 = vld [vmem:[%s7534_s1 + $0x328] sm:$0xff]  ;;  %v7061_v54 = vld [vmem:[%s7534_s1 + $0x320] sm:$0xff] }
0x18a1   : > { %v4104_v14 = vpop.f32.mrf.mxu0  ;;  %v4310_v27 = vpop.f32.mrf.mxu1  ;;  %4983 = vmatpush.bf16.msrb.mxu3 %v6627_v6  ;;  %v7058_v6 = vld [vmem:[%s7534_s1 + $0x308] sm:$0xff] }
0x18a2   : > { %v4105_v59 = vadd.f32 %v4104_v14, %v4091_v45  ;;  %4995 = vmatpush.bf16.msra.mxu0 %v6663_v13  ;;  %v4375_v14 = vperm.slane %v8899_v1, 2  ;;  %v7087_v13 = vld [vmem:[%s7534_s1 + $0x3f0] sm:$0xff] }
0x18a4   : > { %v4311_v26 = vadd.f32 %v4310_v27, %v4105_v59 }
0x18a5   : > { %4984 = vmatpush.bf16.msrb.mxu3 %v6611_v17  ;;  %v7076_v17 = vld [vmem:[%s7534_s1 + $0x398] sm:$0xff] }
0x18a6   : > { %v4336_v49 = vpop.f32.mrf.mxu3  ;;  %v4484_v37 = vpop.f32.mrf.mxu2  ;;  %v4325_v38 = vadd.f32 %v4324_v11, %v4311_v26  ;;  %4996 = vmatpush.bf16.msra.mxu0 %v6647_v56  ;;  %v7086_v56 = vld [vmem:[%s7534_s1 + $0x3e8] sm:$0xff] }
0x18a7   : > { %v4337_v7 = vadd.f32 %v4336_v49, %v4323_v22  ;;  %v4485_v39 = vadd.f32 %v4484_v37, %v4374_v24 }
0x18a9   : > { %v4350_v61 = vpop.f32.mrf.mxu0  ;;  %v4470_v0 = vpop.f32.mrf.mxu1  ;;  %v4518_v31 = vmax.f32 %v4485_v39, 0.0  ;;  %v7077_v39 = vld [vmem:[%s7534_s1 + $0x3a0] sm:$0xff] }
0x18aa   : > { %v8910_v48 = vadd.f32 %v4350_v61, %v4337_v7  ;;  %v4471_v62 = vadd.f32 %v4470_v0, %v4373_v47  ;;  %4997 = vmatpush.bf16.msra.mxu0 %v6631_v33  ;;  %v7072_v7 = vld [vmem:[%s7534_s1 + $0x378] sm:$0xff]  ;;  %v7059_v0 = vld [vmem:[%s7534_s1 + $0x310] sm:$0xff] }
0x18ab   : > { %v7080_v61 = vld [vmem:[%s7534_s1 + $0x3b8] sm:$0xff] }
0x18ac   : > { %v4517_v16 = vmax.f32 %v4471_v62, 0.0  ;;  %v7075_v62 = vld [vmem:[%s7534_s1 + $0x390] sm:$0xff] }
0x18ae   : > { %v4338_v20 = vpop.f32.mrf.mxu3  ;;  %v4486_v57 = vpop.f32.mrf.mxu2  ;;  %4998 = vmatpush.bf16.msra.mxu0 %v6615_v42 }
0x18af   : > { %v4339_v4 = vadd.f32 %v4338_v20, %v4325_v38  ;;  %v4487_v55 = vadd.f32 %v4486_v57, %v4374_v24  ;;  %v7064_v38 = vld [vmem:[%s7534_s1 + $0x338] sm:$0xff] }
0x18b0   : > { %v7068_v24 = vld [vmem:[%s7534_s1 + $0x358] sm:$0xff] }
0x18b1   : > { %v4522_v30 = vmax.f32 %v4487_v55, 0.0  ;;  %v4352_v41 = vpop.f32.mrf.mxu0  ;;  %v4472_v40 = vpop.f32.mrf.mxu1  ;;  %v7084_v20 = vld [vmem:[%s7534_s1 + $0x3d8] sm:$0xff]  ;;  %v7083_v55 = vld [vmem:[%s7534_s1 + $0x3d0] sm:$0xff] }
0x18b2   : > { %v8917_v11 = vadd.f32 %v4352_v41, %v4339_v4  ;;  %v4473_v22 = vadd.f32 %v4472_v40, %v4373_v47  ;;  %v7057_v47 = vld [vmem:[%s7534_s1 + $0x300] sm:$0xff]  ;;  %v7074_v41 = vld [vmem:[%s7534_s1 + $0x388] sm:$0xff] }
0x18b3   : > { %v4526_v45 = vpack.c.bf16 %v4522_v30, %v4518_v31  ;;  %v7082_v31 = vld [vmem:[%s7534_s1 + $0x3c8] sm:$0xff] }
0x18b4   : > { %v4521_v36 = vmax.f32 %v4473_v22, 0.0  ;;  %v7081_v22 = vld [vmem:[%s7534_s1 + $0x3c0] sm:$0xff] }
0x18b5   : > { %4807 = vmatmul.bf16.vlgmr.msrb.gmra.mxu2 %v4526_v45 }
0x18b6   : > { %v4525_v19 = vpack.c.bf16 %v4521_v36, %v4517_v16  ;;  %v4498_v10 = vpop.f32.mrf.mxu3  ;;  %5287 = vmatpush.bf16.msrb.mxu2 %v7072_v7  ;;  %v4859_v16 = vld [vmem:[%s7528_s30 + $0xc] sm:$0xf]  ;;  %s9100_s30 = scalar_lea.vmem %s9038_s19, %s7494_s7 }
0x18b7   : > { %v4499_v59 = vadd.f32 %v4498_v10, %v4375_v14  ;;  %v4861_v42 = vperm.slane %v4859_v16, 0 }
0x18b8   : > { %4793 = vmatmul.bf16.vlgmr.msra.gmra.mxu1 %v4525_v19 }
0x18b9   : > { %v4512_v27 = vpop.f32.mrf.mxu0  ;;  %v4519_v26 = vmax.f32 %v4499_v59, 0.0  ;;  %5273 = vmatpush.bf16.msra.mxu1 %v7064_v38 }
0x18ba   : > { %v4513_v25 = vadd.f32 %v4512_v27, %v4376_v34  ;;  %5288 = vmatpush.bf16.msrb.mxu2 %v7071_v50 }
0x18bc   : > { %v4520_v49 = vmax.f32 %v4513_v25, 0.0 }
0x18bd   : > { %5274 = vmatpush.bf16.msra.mxu1 %v7063_v43 }
0x18be   : > { %v4500_v60 = vpop.f32.mrf.mxu3  ;;  %5289 = vmatpush.bf16.msrb.mxu2 %v7070_v52 }
0x18bf   : > { %v4501_v3 = vadd.f32 %v4500_v60, %v4375_v14 }
0x18c1   : > { %v4523_v28 = vmax.f32 %v4501_v3, 0.0  ;;  %v4514_v29 = vpop.f32.mrf.mxu0  ;;  %5275 = vmatpush.bf16.msra.mxu1 %v7062_v51 }
0x18c2   : > { %v4515_v5 = vadd.f32 %v4514_v29, %v4376_v34  ;;  %v4862_v34 = vperm.slane %v4859_v16, 1 }
0x18c3   : > { %v4527_v63 = vpack.c.bf16 %v4523_v28, %v4519_v26 }
0x18c4   : > { %v4524_v37 = vmax.f32 %v4515_v5, 0.0 }
0x18c5   : > { %4821 = vmatmul.bf16.vlgmr.msra.gmra.mxu3 %v4527_v63  ;;  %6665 = vmatmul.msk.bf16.vlgmr.msra.gmra.mxu2 %vm3101_vm2, %v8685_v35 }
0x18c6   : > { %v4528_v1 = vpack.c.bf16 %v4524_v37, %v4520_v49  ;;  %5276 = vmatpush.bf16.msra.mxu1 %v7061_v54  ;;  %5301 = vmatpush.bf16.msra.mxu3 %v7080_v61 }
0x18c8   : > { %4835 = vmatmul.bf16.vlgmr.msrb.gmra.mxu0 %v4528_v1  ;;  %6664 = vmatmul.msk.bf16.vlgmr.msrb.gmra.mxu1 %vm3101_vm2, %v8685_v35 }
0x18c9   : > { %5315 = vmatpush.bf16.msrb.mxu0 %v7088_v32 }
0x18ca   : > { %5277 = vmatpush.bf16.msra.mxu1 %v7060_v58  ;;  %5302 = vmatpush.bf16.msra.mxu3 %v7079_v23  ;;  %v4863_v58 = vperm.slane %v4859_v16, 2 }
0x18cd   : > { %5316 = vmatpush.bf16.msrb.mxu0 %v7087_v13 }
0x18ce   : > { %5278 = vmatpush.bf16.msra.mxu1 %v7059_v0  ;;  %5303 = vmatpush.bf16.msra.mxu3 %v7078_v53 }
0x18d1   : > { %5317 = vmatpush.bf16.msrb.mxu0 %v7086_v56 }
0x18d2   : > { %5279 = vmatpush.bf16.msra.mxu1 %v7058_v6  ;;  %5304 = vmatpush.bf16.msra.mxu3 %v7077_v39 }
0x18d5   : > { %6666 = vmatmul.msk.bf16.vlgmr.msrb.gmra.mxu3 %vm3101_vm2, %v8685_v35  ;;  %5318 = vmatpush.bf16.msrb.mxu0 %v7085_v9 }
0x18d6   : > { %5280 = vmatpush.bf16.msra.mxu1 %v7057_v47  ;;  %5305 = vmatpush.bf16.msra.mxu3 %v7076_v17 }
0x18d8   : > { %6667 = vmatmul.msk.bf16.vlgmr.msra.gmra.mxu0 %vm3101_vm2, %v8685_v35  ;;  %v7069_v35 = vld [vmem:[%s7534_s1 + $0x360] sm:$0xff] }
0x18d9   : > { %5290 = vmatpush.bf16.msrb.mxu2 %v7069_v35  ;;  %5319 = vmatpush.bf16.msrb.mxu0 %v7084_v20 }
0x18da   : > { %5306 = vmatpush.bf16.msra.mxu3 %v7075_v62 }
0x18dd   : > { %5291 = vmatpush.bf16.msrb.mxu2 %v7068_v24  ;;  %5320 = vmatpush.bf16.msrb.mxu0 %v7083_v55 }
0x18de   : > { %5307 = vmatpush.bf16.msra.mxu3 %v7074_v41 }
0x18e1   : > { %5292 = vmatpush.bf16.msrb.mxu2 %v7067_v2  ;;  %5321 = vmatpush.bf16.msrb.mxu0 %v7082_v31 }
0x18e2   : > { %5308 = vmatpush.bf16.msra.mxu3 %v7073_v12 }
0x18e5   : > { %5293 = vmatpush.bf16.msrb.mxu2 %v7066_v8  ;;  %5322 = vmatpush.bf16.msrb.mxu0 %v7081_v22 }
0x18e9   : > { %5294 = vmatpush.bf16.msrb.mxu2 %v7065_v46 }
0x1935   : > { %v4794_v57 = vpop.f32.mrf.mxu1 }
0x1938   : > { %v4808_v4 = vpop.f32.mrf.mxu2 }
0x1939   : > { %v4809_v33 = vadd.f32 %v4808_v4, %v4794_v57  ;;  %v7301_v4 = vld [vmem:[%s9100_s30] ss:$0 sm:$0xff] }
0x193d   : > { %v4796_v30 = vpop.f32.mrf.mxu1 }
0x1940   : > { %v4810_v40 = vpop.f32.mrf.mxu2 }
0x1941   : > { %v4811_v45 = vadd.f32 %v4810_v40, %v4796_v30 }
0x1945   : > { %v4836_v15 = vpop.f32.mrf.mxu0  ;;  %v4958_v36 = vpop.f32.mrf.mxu1 }
0x1946   : > { %v4959_v59 = vadd.f32 %v4958_v36, %v4861_v42 }
0x1948   : > { %v4822_v19 = vpop.f32.mrf.mxu3  ;;  %v4972_v10 = vpop.f32.mrf.mxu2  ;;  %v5005_v29 = vmax.f32 %v4959_v59, 0.0 }
0x1949   : > { %v4823_v14 = vadd.f32 %v4822_v19, %v4809_v33  ;;  %v4973_v28 = vadd.f32 %v4972_v10, %v4862_v34 }
0x194b   : > { %v4837_v27 = vadd.f32 %v4836_v15, %v4823_v14  ;;  %v5006_v7 = vmax.f32 %v4973_v28, 0.0 }
0x194d   : > { %v4841_v60 = vadd.f32 %v4837_v27, %v8910_v48  ;;  %v4838_v3 = vpop.f32.mrf.mxu0  ;;  %v4960_v25 = vpop.f32.mrf.mxu1  ;;  %v4864_v48 = vperm.slane %v4859_v16, 3 }
0x194e   : > { %v4961_v26 = vadd.f32 %v4960_v25, %v4861_v42 }
0x1950   : > { %v5009_v5 = vmax.f32 %v4961_v26, 0.0  ;;  %v4824_v63 = vpop.f32.mrf.mxu3  ;;  %v4974_v49 = vpop.f32.mrf.mxu2 }
0x1951   : > { %v4825_v37 = vadd.f32 %v4824_v63, %v4811_v45  ;;  %v4975_v1 = vadd.f32 %v4974_v49, %v4862_v34 }
0x1952   : > { %v5013_v38 = vpack.c.bf16 %v5009_v5, %v5005_v29 }
0x1953   : > { %v4839_v43 = vadd.f32 %v4838_v3, %v4825_v37  ;;  %v5010_v50 = vmax.f32 %v4975_v1, 0.0 }
0x1954   : > { %5281 = vmatmul.bf16.vlgmr.msra.gmra.mxu1 %v5013_v38 }
0x1955   : > { %v4842_v51 = vadd.f32 %v4839_v43, %v8917_v11  ;;  %v5014_v52 = vpack.c.bf16 %v5010_v50, %v5006_v7  ;;  %v5000_v54 = vpop.f32.mrf.mxu0 }
0x1956   : > { %v5001_v32 = vadd.f32 %v5000_v54, %v4864_v48  ;;  %v7302_v54 = vld [vmem:[%s9101_s29] ss:$0 sm:$0xff]  ;;  %s9105_s29 = sld [smem:[#allocation24_spill]] (!%p6796_p5) }
0x1957   : > { %5295 = vmatmul.bf16.vlgmr.msrb.gmra.mxu2 %v5014_v52 }
0x1958   : > { %v4986_v35 = vpop.f32.mrf.mxu3  ;;  %v5008_v13 = vmax.f32 %v5001_v32, 0.0 }
0x1959   : > { %v4987_v0 = vadd.f32 %v4986_v35, %v4863_v58  ;;  %v7303_v35 = vld [vmem:[%s9102_s0] ss:$0 sm:$0xff]  ;;  %s9106_s0 = sld [smem:[#allocation25_spill]] (!%p6796_p5) }
0x195b   : > { %v5007_v8 = vmax.f32 %v4987_v0, 0.0 }
0x195d   : > { %v5002_v24 = vpop.f32.mrf.mxu0 }
0x195e   : > { %v5003_v61 = vadd.f32 %v5002_v24, %v4864_v48 }
0x1960   : > { %v5012_v2 = vmax.f32 %v5003_v61, 0.0  ;;  %v4988_v23 = vpop.f32.mrf.mxu3 }
0x1961   : > { %v4989_v6 = vadd.f32 %v4988_v23, %v4863_v58 }
0x1962   : > { %v5016_v56 = vpack.c.bf16 %v5012_v2, %v5008_v13 }
0x1963   : > { %v5011_v53 = vmax.f32 %v4989_v6, 0.0 }
0x1964   : > { %5323 = vmatmul.bf16.vlgmr.msrb.gmra.mxu0 %v5016_v56 }
0x1965   : > { %v5015_v11 = vpack.c.bf16 %v5011_v53, %v5007_v8 }
0x1967   : > { %5309 = vmatmul.bf16.vlgmr.msra.gmra.mxu3 %v5015_v11 }
0x19d1   : > { %v5282_v9 = vpop.f32.mrf.mxu1 }
0x19d9   : > { %v5284_v62 = vpop.f32.mrf.mxu1 }
0x19da   : > { %v5296_v47 = vpop.f32.mrf.mxu2 }
0x19db   : > { %v5297_v46 = vadd.f32 %v5296_v47, %v5282_v9 }
0x19e1   : > { %v5324_v39 = vpop.f32.mrf.mxu0 }
0x19e2   : > { %v5298_v55 = vpop.f32.mrf.mxu2 }
0x19e3   : > { %v5299_v31 = vadd.f32 %v5298_v55, %v5284_v62 }
0x19e9   : > { %v5326_v45 = vpop.f32.mrf.mxu0 }
0x19ea   : > { %v5310_v20 = vpop.f32.mrf.mxu3 }
0x19eb   : > { %v5311_v57 = vadd.f32 %v5310_v20, %v5297_v46 }
0x19ed   : > { %v5325_v17 = vadd.f32 %v5324_v39, %v5311_v57 }
0x19ef   : > { %v5329_v33 = vadd.f32 %v5325_v17, %v4841_v60 }
0x19f1   : > { %v5335_v30 = vadd.f32 %v7301_v4, %v5329_v33 }
0x19f2   : > { %v5312_v41 = vpop.f32.mrf.mxu3 }
0x19f3   : > { %v5313_v40 = vadd.f32 %v5312_v41, %v5299_v31  ;;  %v5337_v22 = vadd.f32 %v5335_v30, %v8679_v44 }
0x19f5   : > { %v5327_v12 = vadd.f32 %v5326_v45, %v5313_v40  ;;  %v5341_v15 = vsel %vm3101_vm2, %v5337_v22, 0.0 }
0x19f6   : > { %5342 = vadd.xlane.f32.xlu0 %v5341_v15 }
0x19f7   : > { %v5330_v16 = vadd.f32 %v5327_v12, %v4842_v51 }
0x19f9   : > { %v5336_v36 = vadd.f32 %v7301_v4, %v5330_v16 }
0x19fb   : > { %v5338_v42 = vadd.f32 %v5336_v36, %v8681_v18 }
0x19fd   : > { %v5344_v19 = vsel %vm3101_vm2, %v5338_v42, 0.0 }
0x19fe   : > { %5345 = vadd.xlane.f32.xlu1 %v5344_v19 }
0x1a69   : > { %v5343_v10 = vpop.xlane.xlu0 %5342 }
0x1a6a   : > { %v5347_v14 = vmul.f32 %v5343_v10, %v8588_v21 }
0x1a6c   : > { %v5349_v27 = vsub.f32 %v5337_v22, %v5347_v14 }
0x1a6e   : > { %v5351_v34 = vmul.f32 %v5349_v27, %v5349_v27 }
0x1a70   : > { %v5353_v59 = vsel %vm3101_vm2, %v5351_v34, 0.0 }
0x1a71   : > { %v5346_v44 = vpop.xlane.xlu1 %5345  ;;  %5354 = vadd.xlane.f32.xlu2 %v5353_v59 }
0x1a72   : > { %v5348_v60 = vmul.f32 %v5346_v44, %v8588_v21 }
0x1a74   : > { %v5350_v3 = vsub.f32 %v5338_v42, %v5348_v60 }
0x1a76   : > { %v5352_v25 = vmul.f32 %v5350_v3, %v5350_v3 }
0x1a78   : > { %v5356_v26 = vsel %vm3101_vm2, %v5352_v25, 0.0 }
0x1a79   : > { %5357 = vadd.xlane.f32.xlu1 %v5356_v26 }
0x1ae4   : > { %v5355_v18 = vpop.xlane.xlu2 %5354 }
0x1ae5   : > { %v5359_v28 = vmul.f32 %v5355_v18, %v8588_v21 }
0x1ae7   : > { %v5361_v29 = vadd.f32 1e-05, %v5359_v28 }
0x1ae9   : > { %7322 = vrsqrt.f32 %v5361_v29  ;;  %vm5369_vm6 = vweird.f32 %v5361_v29 }
0x1aec   : > { %v5358_v5 = vpop.xlane.xlu1 %5357 }
0x1aed   : > { %v5360_v63 = vmul.f32 %v5358_v5, %v8588_v21 }
0x1aef   : > { %v7323_v49 = vpop.eup %7322  ;;  %v5362_v37 = vadd.f32 1e-05, %v5360_v63 }
0x1af0   : > { %v5364_v1 = vmul.f32 %v7323_v49, %v5361_v29  ;;  %vm5370_vm11 = vweird.f32 %v7323_v49 }
0x1af1   : > { %7324 = vrsqrt.f32 %v5362_v37  ;;  %vm5371_vm7 = vmor %vm5369_vm6, %vm5370_vm11  ;;  %vm5379_vm9 = vweird.f32 %v5362_v37 }
0x1af2   : > { %v5365_v38 = vmul.f32 %v7323_v49, %v5364_v1 }
0x1af4   : > { %v5366_v7 = vmul.f32 0.5, %v5365_v38 }
0x1af6   : > { %v5367_v43 = vsub.f32 1.5, %v5366_v7 }
0x1af7   : > { %v7325_v50 = vpop.eup %7324 }
0x1af8   : > { %v5368_v51 = vmul.f32 %v7323_v49, %v5367_v43  ;;  %v5374_v52 = vmul.f32 %v7325_v50, %v5362_v37  ;;  %vm5380_vm8 = vweird.f32 %v7325_v50 }
0x1af9   : > { %vm5381_vm10 = vmor %vm5379_vm9, %vm5380_vm8 }
0x1afa   : > { %v5372_v21 = vsel %vm5371_vm7, %v7323_v49, %v5368_v51  ;;  %v5375_v48 = vmul.f32 %v7325_v50, %v5374_v52 }
0x1afb   : > { %v5383_v58 = vmul.f32 %v5372_v21, %v5349_v27 }
0x1afc   : > { %v5376_v32 = vmul.f32 0.5, %v5375_v48 }
0x1afd   : > { %v5388_v24 = vmul.f32 %v7302_v54, %v5383_v58 }
0x1afe   : > { %v5377_v61 = vsub.f32 1.5, %v5376_v32 }
0x1aff   : > { %v5393_v0 = vadd.f32 %v7303_v35, %v5388_v24 }
0x1b00   : > { %v5378_v13 = vmul.f32 %v7325_v50, %v5377_v61 }
0x1b01   : > { %5395 = vst.msk [vmem:[#allocation2] sm:$0xff] %vm3101_vm2, %v5393_v0 }
0x1b02   : > { %v5382_v2 = vsel %vm5381_vm10, %v7325_v50, %v5378_v13 }
0x1b03   : > { %v5384_v23 = vmul.f32 %v5382_v2, %v5350_v3 }
0x1b05   : > { %v5389_v6 = vmul.f32 %v7302_v54, %v5384_v23  ;;  %5400 = sbr.rel (%p6796_p5) target bundleno = 7220 (0x1c34), region = 132 }
0x1b07   : > { %v5394_v56 = vadd.f32 %v7303_v35, %v5389_v6 }
0x1b09   : > { %5396 = vst.msk [vmem:[#allocation2 + $0x8] sm:$0xff] %vm3101_vm2, %v5394_v56 }
0x1b0a   : > { %v5402_v8 = vld [vmem:[#allocation2] sm:$0xff]  ;;  %v7092_v47 = vld [vmem:[%s9103_s4 + $0x18] sm:$0xff]  ;;  %vm5405_vm12 = vcmask 130048   ;;  %v7091_v46 = vld [vmem:[%s9103_s4 + $0x10] sm:$0xff]  ;;  %v5489_v42 = vlaneseq  ;;  %vm5512_vm4 = vcmask 9216  }
0x1b0b   : > { %v5401_v9 = vld [vmem:[%s9104_s27] sm:$0x1]  ;;  %5466 = vmatpush.bf16.msra.mxu1 %v7092_v47  ;;  %v7090_v39 = vld [vmem:[%s9103_s4 + $0x8] sm:$0xff] }
0x1b0c   : > { %v7089_v20 = vld [vmem:[%s9103_s4] sm:$0xff]  ;;  %v5490_v44 = vand.u32 127, %v5489_v42 }
0x1b0d   : > { %v7326_v55 = vld [vmem:[%s9105_s29] ss:$0 sm:$0xff] }
0x1b0e   : > { %vm5491_vm15 = vcmp.eq.s32.totalorder %v5490_v44, 0 }
0x1b0f   : > { %5467 = vmatpush.bf16.msra.mxu1 %v7091_v46 }
0x1b10   : > { %v5403_v53 = vld [vmem:[#allocation2 + $0x8] sm:$0xff] }
0x1b11   : > { %v5404_v11 = vpack.c.bf16 %v5403_v53, %v5402_v8 }
0x1b13   : > { %5416 = vmatpush.bf16.msra.mxu0 %v5404_v11  ;;  %5468 = vmatpush.bf16.msra.mxu1 %v7090_v39 }
0x1b16   : > { %6797 = vmatmul.msk.bf16.vlgmr.msra.gmra.mxu0 %vm5405_vm12, %v5401_v9 }
0x1b17   : > { %5469 = vmatpush.bf16.msra.mxu1 %v7089_v20 }
0x1b93   : > { %v5418_v57 = vpop.f32.mrf.mxu0 }
0x1b94   : > { %v5422_v17 = vpack.c.bf16 %v5418_v57, %v5418_v57 }
0x1b96   : > { %6814 = vmatmul.msk.bf16.vlgmr.msra.gmra.mxu1 %vm3101_vm2, %v5422_v17 }
0x1b9b   : > { %v5420_v4 = vpop.f32.mrf.mxu0 }
0x1c13   : > { %v5471_v33 = vpop.f32.mrf.mxu1 }
0x1c14   : > { %v5472_v62 = vadd.f32 %v7326_v55, %v5471_v33 }
0x1c16   : > { %v5476_v31 = vmin.f32 %v5472_v62, 20.0  ;;  %v6815_v30 = vmul.f32 -1.442695, %v5472_v62  ;;  %vm5475_vm1 = vcmp.gt.f32.partialorder %v5472_v62, 20.0 }
0x1c18   : > { %v5477_v41 = vmul.f32 1.442695, %v5476_v31  ;;  %7327 = vpow2.f32 %v6815_v30 }
0x1c1a   : > { %7329 = vpow2.f32 %v5477_v41 }
0x1c1b   : > { %v5473_v40 = vpop.f32.mrf.mxu1 }
0x1c1e   : > { %v7328_v22 = vpop.eup %7327 }
0x1c1f   : > { %v5495_v45 = vadd.f32 1.0, %v7328_v22 }
0x1c20   : > { %v7330_v12 = vpop.eup %7329 }
0x1c21   : > { %v5479_v15 = vadd.f32 1.0, %v7330_v12  ;;  %7331 = vrcp.f32 %v5495_v45  ;;  %v5482_v16 = vmul.f32 -0.5, %v7330_v12  ;;  %v5485_v27 = vand.u32 2147483647, %v7330_v12 }
0x1c22   : > { %v5507_v60 = vand.u32 2147483648, %v5495_v45  ;;  %v5505_v26 = vand.u32 2147483647, %v5495_v45  ;;  %vm5501_vm14 = vweird.f32 %v5495_v45 }
0x1c23   : > { %7333 = vlog2.f32 %v5479_v15  ;;  %v5483_v19 = vadd.f32 1.0, %v5482_v16  ;;  %vm5486_vm13 = vcmp.lt.f32.partialorder %v5485_v27, 0.0004427343 }
0x1c24   : > { %v5508_v29 = vor.u32 1.1754944e-38, %v5507_v60  ;;  %vm5506_vm3 = vcmp.eq.f32.partialorder %v5505_v26, 8.507059e+37 }
0x1c25   : > { %v5484_v3 = vmul.f32 %v7330_v12, %v5483_v19 }
0x1c27   : > { %v7332_v36 = vpop.eup %7331 }
0x1c28   : > { %v5497_v10 = vmul.f32 %v7332_v36, %v5495_v45  ;;  %vm5502_vm2 = vweird.f32 %v7332_v36 }
0x1c29   : > { %v7334_v14 = vpop.eup %7333  ;;  %vm5503_vm0 = vmor %vm5501_vm14, %vm5502_vm2 }
0x1c2a   : > { %v5481_v34 = vmul.f32 0.6931472, %v7334_v14  ;;  %v5498_v59 = vsub.f32 1.0, %v5497_v10 }
0x1c2c   : > { %v5499_v25 = vmul.f32 %v7332_v36, %v5498_v59  ;;  %v5487_v18 = vsel %vm5486_vm13, %v5484_v3, %v5481_v34 }
0x1c2d   : > { %v5488_v63 = vsel %vm5475_vm1, %v5472_v62, %v5487_v18 }
0x1c2e   : > { %v5500_v28 = vadd.f32 %v7332_v36, %v5499_v25 }
0x1c30   : > { %v5504_v5 = vsel %vm5503_vm0, %v7332_v36, %v5500_v28 }
0x1c31   : > { %v5509_v49 = vsel %vm5506_vm3, %v5508_v29, %v5504_v5 }
0x1c32   : > { %v5511_v37 = vsel %vm5491_vm15, %v5509_v49, %v5488_v63 }
0x1c33   : > { %5513 = vst.msk [vmem:[%s9106_s0] sm:$0x3] %vm5512_vm4, %v5511_v37 }
0x1c34 PF: > { %s9107_s7 = sld [smem:[#allocation5_spill]] }
0x1c3a   : > { %s36_s27 = sadd.s32 1, %s9107_s7  }
0x1c3b   : > { %p33_p6 = scmp.ge.s32.totalorder %s36_s27, 4  }
0x1c3d   :  { %35 = sbr.rel (!%p33_p6) target bundleno = 21 (0x15), region = 191 }

</bundles_post_ra>
